<compile_context>
chip_gen: v6e
topology: v6e:2x2x1
jax: 0.10.0
libtpu: 0.0.40
codegen_flags: <defaults>
</compile_context>

<pallas_src>
import functools

import numpy as np
import jax
import jax.numpy as jnp
from jax import lax
from jax.experimental import pallas as pl
from jax.experimental.pallas import tpu as pltpu


# ------------------------------ config (args) --------------------------------
class Args:
    char_len = 48        # vocabulary size
    embedding_dim = 16
    hidden_size = 32
    num_layers = 2
    max_len = 4          # chunk size used by torch.split(..., dim=1)
    batch_size = 4       # expand target along dim 1


ARGS = Args()
SEQ_LEN = 8              # inputs.shape[0]
N_IN = 5                 # inputs.shape[1]; N_IN % max_len == 1 so expand() is legal
VOCAB_PAD = 128          # lane-dense one-hot / folded-embedding table

_VMEM = pl.BlockSpec(memory_space=pltpu.MemorySpace.VMEM)


def _round_up(x, m):
    return ((x + m - 1) // m) * m


# ------------------------------ fused Pallas kernel ---------------------------
def fused_forward_kernel(ids_ref, we0_ref, b0_ref, wh0_ref,
                         ws1_ref, b1_ref,
                         wsd0_ref, bd0_ref,
                         wsd1_ref, bd1_ref,
                         wfc_ref, bfc_ref, out_ref,
                         *, seq_len, enc_rows, dec_rows, hidden, last_col):
    """Entire forward pass; everything lives in VMEM, single invocation (no grid)."""
    G = 4 * hidden                                            # = 128 lanes
    H = hidden

    # ---- embedding lookup as lane-dense one-hot matmul, folded with enc-L0 in-proj ----
    ids = ids_ref[...]                                                    # (T*enc_rows, 1)
    token = lax.broadcasted_iota(jnp.int32, (seq_len * enc_rows, VOCAB_PAD), 1)
    onehot = (ids == token).astype(jnp.float32)                           # (T*enc_rows, 128)
    gx_e0_all = (jnp.dot(onehot, we0_ref[...], preferred_element_type=jnp.float32)
                 + b0_ref[...])                                           # hoisted over T

    def make_gmask(rows):
        lane = lax.broadcasted_iota(jnp.int32, (rows, G), 1)
        return (lane >= 2 * H) & (lane < 3 * H)
    gm_e = make_gmask(enc_rows)
    gm_d = make_gmask(dec_rows)

    def lstm_cell(gates, c, gm):
        # g-gate weight/bias columns are pre-scaled by 2 host-side, so
        # tanh(x) = 2*sigmoid(2x) - 1: a single EUP sigmoid per step covers
        # all four gate blocks [ i | f | g | o ].
        sig = jax.nn.sigmoid(gates)
        acts = jnp.where(gm, 2.0 * sig - 1.0, sig)
        f_al = pltpu.roll(acts, 3 * H, axis=1)          # f -> lanes [0, H)  (XLU)
        g_al = pltpu.roll(acts, 2 * H, axis=1)          # g -> lanes [0, H)
        o_al = pltpu.roll(acts, H, axis=1)              # o -> lanes [0, H)
        c = f_al * c + acts * g_al                      # lanes >= H: bounded junk,
        h = o_al * jnp.tanh(c)                          # killed by zero-padded weights
        return h, c

    def step_e0(t, h, c):
        # encoder L0: input projection hoisted (gx_e0_all), K=128 recurrence only.
        gx = gx_e0_all[t * enc_rows:(t + 1) * enc_rows, :]
        gates = gx + jnp.dot(h.astype(jnp.bfloat16), wh0_ref[...],
                             preferred_element_type=jnp.float32)
        return lstm_cell(gates, c, gm_e)

    def step_fused(x_in, h, c, ws_ref, b_ref, gm):
        # fused input+recurrent projection: (rows, 2G) x (2G, G) single bf16 pass.
        cat = jnp.concatenate([x_in, h], axis=1).astype(jnp.bfloat16)
        gates = (jnp.dot(cat, ws_ref[...], preferred_element_type=jnp.float32)
                 + b_ref[...])
        return lstm_cell(gates, c, gm)

    zeros_e = jnp.zeros((enc_rows, G), jnp.float32)
    zeros_d = jnp.zeros((dec_rows, G), jnp.float32)
    h0, c0 = zeros_e, zeros_e      # encoder L0
    h1, c1 = zeros_e, zeros_e      # encoder L1
    h2, c2 = zeros_d, zeros_d      # decoder L0
    h3, c3 = zeros_d, zeros_d      # decoder L1
    pend01 = pend12 = pend23 = None
    d1_out = [None] * seq_len

    # ---- wavefront over the 4 layers: diagonal s -> layer k runs timestep s-k ----
    for s in range(seq_len + 3):                              # fully unrolled (static)
        new01 = new12 = new23 = None
        if s < seq_len:                                       # encoder L0, timestep s
            h0, c0 = step_e0(s, h0, c0)
            new01 = h0
        if 0 <= s - 1 < seq_len:                              # encoder L1, timestep s-1
            h1, c1 = step_fused(pend01, h1, c1, ws1_ref, b1_ref, gm_e)
            new12 = h1
        if 0 <= s - 2 < seq_len:                              # decoder L0, timestep s-2
            # torch.split(...)[-1] + expand: broadcast encoder-L1 column `last_col`
            # of this timestep across the decoder batch (sublane broadcast).
            x_d0 = jnp.broadcast_to(pend12[last_col:last_col + 1, :], (dec_rows, G))
            h2, c2 = step_fused(x_d0, h2, c2, wsd0_ref, bd0_ref, gm_d)
            new23 = h2
        if 0 <= s - 3 < seq_len:                              # decoder L1, timestep s-3
            h3, c3 = step_fused(pend23, h3, c3, wsd1_ref, bd1_ref, gm_d)
            d1_out[s - 3] = h3
        pend01, pend12, pend23 = new01, new12, new23

    # ---- final Linear: one hoisted f32 matmul, lane-dense (T*dec_rows, 128) store ----
    h_all = jnp.concatenate(d1_out, axis=0)
    out_ref[...] = (jnp.dot(h_all, wfc_ref[...], preferred_element_type=jnp.float32)
                    + bfc_ref[...])


# ------------------------------ wrapper ----------------------------------------
def forward(params, inputs):
    kp = params["kernel"]
    T, N = inputs.shape
    H = ARGS.hidden_size
    G = 4 * H

    rem = N % ARGS.max_len
    last_chunk = rem if rem != 0 else ARGS.max_len
    # torch.expand in the reference requires the last split chunk to be one column wide.
    assert last_chunk == 1, "reference expand() semantics require N % max_len == 1"
    last_col = N - last_chunk

    enc_rows = _round_up(N, 8)               # pad encoder "batch" columns to a sublane tile
    dec_rows = _round_up(ARGS.batch_size, 8) # pad decoder batch to a sublane tile

    ids = jnp.pad(inputs.astype(jnp.int32), ((0, 0), (0, enc_rows - N)))
    ids = ids.reshape(T * enc_rows, 1)

    kernel = functools.partial(
        fused_forward_kernel, seq_len=T, enc_rows=enc_rows, dec_rows=dec_rows,
        hidden=H, last_col=last_col)

    out = pl.pallas_call(
        kernel,
        out_shape=jax.ShapeDtypeStruct((T * dec_rows, G), jnp.float32),
        in_specs=[_VMEM] * 12,
        out_specs=_VMEM,
    )(ids,
      kp["we0"], kp["b0"], kp["wh0"],
      kp["ws1"], kp["b1"],
      kp["wsd0"], kp["bd0"],
      kp["wsd1"], kp["bd1"],
      kp["wfc"], kp["bfc"])

    out = out.reshape(T, dec_rows, G)
    return out[:, :ARGS.batch_size, :ARGS.char_len]          # (T, batch_size, char_len)


# ------------------------------ parameters --------------------------------------
def init_lstm_params(key, input_size, hidden_size, num_layers):
    layers = []
    bound = 1.0 / np.sqrt(hidden_size)
    in_sz = input_size
    for _ in range(num_layers):
        key, k1, k2, k3, k4 = jax.random.split(key, 5)
        w_ih = jax.random.uniform(k1, (4 * hidden_size, in_sz), jnp.float32, -bound, bound)
        w_hh = jax.random.uniform(k2, (4 * hidden_size, hidden_size), jnp.float32, -bound, bound)
        b_ih = jax.random.uniform(k3, (4 * hidden_size,), jnp.float32, -bound, bound)
        b_hh = jax.random.uniform(k4, (4 * hidden_size,), jnp.float32, -bound, bound)
        layers.append((w_ih.T, w_hh.T, (b_ih + b_hh)[None, :]))
        in_sz = hidden_size
    return key, layers


def _pad2(x, rows, cols):
    return jnp.pad(x, ((0, rows - x.shape[0]), (0, cols - x.shape[1])))


def prepare_kernel_params(raw):
    """Kernel-ready weights:
       * contraction dims zero-padded to 128 so lane-dense (rows, 128) states feed
         every matmul directly (junk lanes contribute 0);
       * g-gate columns pre-scaled by 2 (tanh-via-sigmoid trick);
       * embedding folded into the encoder-L0 input projection, vocab padded to 128;
       * input + recurrent weights of enc-L1 / dec-L0 / dec-L1 vertically stacked
         into one (256, 128) matrix for the fused per-step matmul;
       * recurrent-path weights pre-cast to bf16 (f32 accumulation in-kernel)."""
    H = ARGS.hidden_size
    G = 4 * H

    def gscale(w):   # scale g-gate columns [2H, 3H) by 2
        return w.at[..., 2 * H:3 * H].multiply(2.0)

    def stack(w_in_t, w_hh_t):
        a = _pad2(gscale(w_in_t), G, G)
        b = _pad2(gscale(w_hh_t), G, G)
        return jnp.concatenate([a, b], axis=0).astype(jnp.bfloat16)   # (2G, G)

    (wi0, wh0, b0), (wi1, wh1, b1) = raw["encoder"]
    (wd0, whd0, bd0), (wd1, whd1, bd1) = raw["decoder"]

    we0 = jnp.dot(raw["embedding"], wi0, precision=jax.lax.Precision.HIGHEST)  # (char_len, 4H)
    we0 = _pad2(gscale(we0), VOCAB_PAD, G)                                     # (128, 128)

    return dict(
        we0=we0,
        b0=gscale(b0),
        wh0=_pad2(gscale(wh0), G, G).astype(jnp.bfloat16),
        ws1=stack(wi1, wh1), b1=gscale(b1),
        wsd0=stack(wd0, whd0), bd0=gscale(bd0),
        wsd1=stack(wd1, whd1), bd1=gscale(bd1),
        wfc=_pad2(raw["fc_w_t"], G, G),
        bfc=_pad2(raw["fc_b"], 1, G),
    )


def init_params(seed=0):
    key = jax.random.PRNGKey(seed)
    key, k_emb, k_fc_w, k_fc_b = jax.random.split(key, 4)
    emb = jax.random.normal(k_emb, (ARGS.char_len, ARGS.embedding_dim), jnp.float32)
    key, enc = init_lstm_params(key, ARGS.embedding_dim, ARGS.hidden_size, ARGS.num_layers)
    key, dec = init_lstm_params(key, ARGS.hidden_size, ARGS.hidden_size, ARGS.num_layers)
    bound = 1.0 / np.sqrt(ARGS.hidden_size)
    fc_w = jax.random.uniform(k_fc_w, (ARGS.char_len, ARGS.hidden_size), jnp.float32, -bound, bound)
    fc_b = jax.random.uniform(k_fc_b, (ARGS.char_len,), jnp.float32, -bound, bound)
    raw = dict(embedding=emb, encoder=enc, decoder=dec,
               fc_w_t=fc_w.T, fc_b=fc_b[None, :])
    return dict(raw=raw, kernel=prepare_kernel_params(raw))


# ------------------------------ pure-JAX reference ------------------------------
def _ref_lstm(x, w_ih_t, w_hh_t, b):
    T, B, _ = x.shape
    H = w_hh_t.shape[0]
    h = jnp.zeros((B, H), jnp.float32)
    c = jnp.zeros((B, H), jnp.float32)
    outs = []
    for t in range(T):
        g = x[t] @ w_ih_t + h @ w_hh_t + b
        i_g = jax.nn.sigmoid(g[:, :H]); f_g = jax.nn.sigmoid(g[:, H:2 * H])
        g_g = jnp.tanh(g[:, 2 * H:3 * H]); o_g = jax.nn.sigmoid(g[:, 3 * H:])
        c = f_g * c + i_g * g_g
        h = o_g * jnp.tanh(c)
        outs.append(h)
    return jnp.stack(outs)


def reference_forward(params, inputs):
    raw = params["raw"]
    out = jnp.take(raw["embedding"], inputs, axis=0)
    for layer in raw["encoder"]:
        out = _ref_lstm(out, *layer)
    N = out.shape[1]
    rem = N % ARGS.max_len
    last_start = N - rem if rem != 0 else N - ARGS.max_len
    last = out[:, last_start:, :]
    dec_in = jnp.broadcast_to(last, (last.shape[0], ARGS.batch_size, ARGS.hidden_size))
    for layer in raw["decoder"]:
        dec_in = _ref_lstm(dec_in, *layer)
    T, B, H = dec_in.shape
    return (dec_in.reshape(T * B, H) @ raw["fc_w_t"]
            + raw["fc_b"]).reshape(T, B, ARGS.char_len)


# ------------------------------ main --------------------------------------------
if __name__ == "__main__":
    params = init_params(seed=0)
    key = jax.random.PRNGKey(0)
    inputs = jax.random.randint(key, (SEQ_LEN, N_IN), 0, ARGS.char_len, dtype=jnp.int32)

    out = jax.jit(forward)(params, inputs)
    out = jax.block_until_ready(out)

    ref = reference_forward(params, inputs)
    assert out.shape == (SEQ_LEN, ARGS.batch_size, ARGS.char_len), out.shape
    assert np.all(np.isfinite(np.asarray(out)))
    # Tolerance accounts for bf16 recurrent-path weights (review-sanctioned).
    assert np.allclose(np.asarray(out), np.asarray(ref), rtol=2e-2, atol=2e-2)

    print("KERNEL_OK")
</pallas_src>

<mosaic_0001>
module attributes {stable_mosaic.version = 11 : i64} {
  func.func @fused_forward_kernel(%arg0: memref<64x1xi32, #tpu.memory_space<vmem>>, %arg1: memref<128x128xf32, #tpu.memory_space<vmem>>, %arg2: memref<1x128xf32, #tpu.memory_space<vmem>>, %arg3: memref<128x128xbf16, #tpu.memory_space<vmem>>, %arg4: memref<256x128xbf16, #tpu.memory_space<vmem>>, %arg5: memref<1x128xf32, #tpu.memory_space<vmem>>, %arg6: memref<256x128xbf16, #tpu.memory_space<vmem>>, %arg7: memref<1x128xf32, #tpu.memory_space<vmem>>, %arg8: memref<256x128xbf16, #tpu.memory_space<vmem>>, %arg9: memref<1x128xf32, #tpu.memory_space<vmem>>, %arg10: memref<128x128xf32, #tpu.memory_space<vmem>>, %arg11: memref<1x128xf32, #tpu.memory_space<vmem>>, %arg12: memref<64x128xf32, #tpu.memory_space<vmem>>) attributes {dimension_semantics = [], scalar_prefetch = 0 : i64, scratch_operands = 0 : i64, tpu.core_type = #tpu.core_type<tc>} {
    %c0 = arith.constant 0 : index
    %c0_0 = arith.constant 0 : index
    %0 = vector.load %arg0[%c0, %c0_0] : memref<64x1xi32, #tpu.memory_space<vmem>>, vector<64x1xi32>
    %1 = tpu.iota {dimensions = array<i32: 1>} : vector<64x128xi32>
    %2 = vector.broadcast %0 : vector<64x1xi32> to vector<64x128xi32>
    %3 = arith.cmpi eq, %2, %1 : vector<64x128xi32>
    %4 = arith.extui %3 : vector<64x128xi1> to vector<64x128xi32>
    %5 = arith.sitofp %4 : vector<64x128xi32> to vector<64x128xf32>
    %c0_1 = arith.constant 0 : index
    %c0_2 = arith.constant 0 : index
    %6 = vector.load %arg1[%c0_1, %c0_2] : memref<128x128xf32, #tpu.memory_space<vmem>>, vector<128x128xf32>
    %cst = arith.constant dense<0.000000e+00> : vector<64x128xf32>
    %7 = tpu.matmul %5, %6, %cst {dimension_numbers = #tpu.dot_dimension_numbers<[1], [0], [0], [1], [0, 0, 1, 1], [], []>} : vector<64x128xf32>, vector<128x128xf32>, vector<64x128xf32> -> vector<64x128xf32>
    %c0_3 = arith.constant 0 : index
    %c0_4 = arith.constant 0 : index
    %8 = vector.load %arg2[%c0_3, %c0_4] : memref<1x128xf32, #tpu.memory_space<vmem>>, vector<1x128xf32>
    %9 = vector.broadcast %8 : vector<1x128xf32> to vector<64x128xf32>
    %10 = arith.addf %7, %9 : vector<64x128xf32>
    %11 = tpu.iota {dimensions = array<i32: 1>} : vector<8x128xi32>
    %c64_i32 = arith.constant 64 : i32
    %12 = vector.broadcast %c64_i32 : i32 to vector<8x128xi32>
    %13 = arith.cmpi sge, %11, %12 : vector<8x128xi32>
    %c96_i32 = arith.constant 96 : i32
    %14 = vector.broadcast %c96_i32 : i32 to vector<8x128xi32>
    %15 = arith.cmpi slt, %11, %14 : vector<8x128xi32>
    %16 = arith.andi %13, %15 : vector<8x128xi1>
    %17 = tpu.iota {dimensions = array<i32: 1>} : vector<8x128xi32>
    %c64_i32_5 = arith.constant 64 : i32
    %18 = vector.broadcast %c64_i32_5 : i32 to vector<8x128xi32>
    %19 = arith.cmpi sge, %17, %18 : vector<8x128xi32>
    %c96_i32_6 = arith.constant 96 : i32
    %20 = vector.broadcast %c96_i32_6 : i32 to vector<8x128xi32>
    %21 = arith.cmpi slt, %17, %20 : vector<8x128xi32>
    %22 = arith.andi %19, %21 : vector<8x128xi1>
    %cst_7 = arith.constant 0.000000e+00 : f32
    %23 = vector.broadcast %cst_7 : f32 to vector<8x128xf32>
    %cst_8 = arith.constant 0.000000e+00 : f32
    %24 = vector.broadcast %cst_8 : f32 to vector<8x128xf32>
    %25 = vector.extract_strided_slice %10 {offsets = [0, 0], sizes = [8, 128], strides = [1, 1]} : vector<64x128xf32> to vector<8x128xf32>
    %26 = arith.truncf %23 : vector<8x128xf32> to vector<8x128xbf16>
    %c0_9 = arith.constant 0 : index
    %c0_10 = arith.constant 0 : index
    %27 = vector.load %arg3[%c0_9, %c0_10] : memref<128x128xbf16, #tpu.memory_space<vmem>>, vector<128x128xbf16>
    %cst_11 = arith.constant dense<0.000000e+00> : vector<8x128xf32>
    %28 = tpu.matmul %26, %27, %cst_11 {dimension_numbers = #tpu.dot_dimension_numbers<[1], [0], [0], [1], [0, 0, 1, 1], [], []>} : vector<8x128xbf16>, vector<128x128xbf16>, vector<8x128xf32> -> vector<8x128xf32>
    %29 = arith.addf %25, %28 : vector<8x128xf32>
    %30 = arith.negf %29 : vector<8x128xf32>
    %31 = math.exp %30 : vector<8x128xf32>
    %cst_12 = arith.constant 1.000000e+00 : f32
    %32 = vector.broadcast %cst_12 : f32 to vector<8x128xf32>
    %33 = arith.addf %32, %31 : vector<8x128xf32>
    %34 = arith.divf %32, %33 : vector<8x128xf32>
    %cst_13 = arith.constant 2.000000e+00 : f32
    %35 = vector.broadcast %cst_13 : f32 to vector<8x128xf32>
    %36 = arith.mulf %35, %34 : vector<8x128xf32>
    %cst_14 = arith.constant 1.000000e+00 : f32
    %37 = vector.broadcast %cst_14 : f32 to vector<8x128xf32>
    %38 = arith.subf %36, %37 : vector<8x128xf32>
    %39 = arith.select %16, %38, %34 : vector<8x128xi1>, vector<8x128xf32>
    %c96_i32_15 = arith.constant 96 : i32
    %40 = tpu.dynamic_rotate %39 by %c96_i32_15 dim 1 : vector<8x128xf32>, i32 -> vector<8x128xf32>
    %c64_i32_16 = arith.constant 64 : i32
    %41 = tpu.dynamic_rotate %39 by %c64_i32_16 dim 1 : vector<8x128xf32>, i32 -> vector<8x128xf32>
    %c32_i32 = arith.constant 32 : i32
    %42 = tpu.dynamic_rotate %39 by %c32_i32 dim 1 : vector<8x128xf32>, i32 -> vector<8x128xf32>
    %43 = arith.mulf %40, %23 : vector<8x128xf32>
    %44 = arith.mulf %39, %41 : vector<8x128xf32>
    %45 = arith.addf %43, %44 : vector<8x128xf32>
    %46 = math.tanh %45 : vector<8x128xf32>
    %47 = arith.mulf %42, %46 : vector<8x128xf32>
    %48 = vector.extract_strided_slice %10 {offsets = [8, 0], sizes = [8, 128], strides = [1, 1]} : vector<64x128xf32> to vector<8x128xf32>
    %49 = arith.truncf %47 : vector<8x128xf32> to vector<8x128xbf16>
    %c0_17 = arith.constant 0 : index
    %c0_18 = arith.constant 0 : index
    %50 = vector.load %arg3[%c0_17, %c0_18] : memref<128x128xbf16, #tpu.memory_space<vmem>>, vector<128x128xbf16>
    %cst_19 = arith.constant dense<0.000000e+00> : vector<8x128xf32>
    %51 = tpu.matmul %49, %50, %cst_19 {dimension_numbers = #tpu.dot_dimension_numbers<[1], [0], [0], [1], [0, 0, 1, 1], [], []>} : vector<8x128xbf16>, vector<128x128xbf16>, vector<8x128xf32> -> vector<8x128xf32>
    %52 = arith.addf %48, %51 : vector<8x128xf32>
    %53 = arith.negf %52 : vector<8x128xf32>
    %54 = math.exp %53 : vector<8x128xf32>
    %cst_20 = arith.constant 1.000000e+00 : f32
    %55 = vector.broadcast %cst_20 : f32 to vector<8x128xf32>
    %56 = arith.addf %55, %54 : vector<8x128xf32>
    %57 = arith.divf %55, %56 : vector<8x128xf32>
    %cst_21 = arith.constant 2.000000e+00 : f32
    %58 = vector.broadcast %cst_21 : f32 to vector<8x128xf32>
    %59 = arith.mulf %58, %57 : vector<8x128xf32>
    %cst_22 = arith.constant 1.000000e+00 : f32
    %60 = vector.broadcast %cst_22 : f32 to vector<8x128xf32>
    %61 = arith.subf %59, %60 : vector<8x128xf32>
    %62 = arith.select %16, %61, %57 : vector<8x128xi1>, vector<8x128xf32>
    %c96_i32_23 = arith.constant 96 : i32
    %63 = tpu.dynamic_rotate %62 by %c96_i32_23 dim 1 : vector<8x128xf32>, i32 -> vector<8x128xf32>
    %c64_i32_24 = arith.constant 64 : i32
    %64 = tpu.dynamic_rotate %62 by %c64_i32_24 dim 1 : vector<8x128xf32>, i32 -> vector<8x128xf32>
    %c32_i32_25 = arith.constant 32 : i32
    %65 = tpu.dynamic_rotate %62 by %c32_i32_25 dim 1 : vector<8x128xf32>, i32 -> vector<8x128xf32>
    %66 = arith.mulf %63, %45 : vector<8x128xf32>
    %67 = arith.mulf %62, %64 : vector<8x128xf32>
    %68 = arith.addf %66, %67 : vector<8x128xf32>
    %69 = math.tanh %68 : vector<8x128xf32>
    %70 = arith.mulf %65, %69 : vector<8x128xf32>
    %71 = tpu.concatenate %47, %23 in 1 : vector<8x128xf32>, vector<8x128xf32> -> vector<8x256xf32>
    %72 = arith.truncf %71 : vector<8x256xf32> to vector<8x256xbf16>
    %c0_26 = arith.constant 0 : index
    %c0_27 = arith.constant 0 : index
    %73 = vector.load %arg4[%c0_26, %c0_27] : memref<256x128xbf16, #tpu.memory_space<vmem>>, vector<256x128xbf16>
    %cst_28 = arith.constant dense<0.000000e+00> : vector<8x128xf32>
    %74 = tpu.matmul %72, %73, %cst_28 {dimension_numbers = #tpu.dot_dimension_numbers<[1], [0], [0], [1], [0, 0, 1, 1], [], []>} : vector<8x256xbf16>, vector<256x128xbf16>, vector<8x128xf32> -> vector<8x128xf32>
    %c0_29 = arith.constant 0 : index
    %c0_30 = arith.constant 0 : index
    %75 = vector.load %arg5[%c0_29, %c0_30] : memref<1x128xf32, #tpu.memory_space<vmem>>, vector<1x128xf32>
    %76 = vector.broadcast %75 : vector<1x128xf32> to vector<8x128xf32>
    %77 = arith.addf %74, %76 : vector<8x128xf32>
    %78 = arith.negf %77 : vector<8x128xf32>
    %79 = math.exp %78 : vector<8x128xf32>
    %cst_31 = arith.constant 1.000000e+00 : f32
    %80 = vector.broadcast %cst_31 : f32 to vector<8x128xf32>
    %81 = arith.addf %80, %79 : vector<8x128xf32>
    %82 = arith.divf %80, %81 : vector<8x128xf32>
    %cst_32 = arith.constant 2.000000e+00 : f32
    %83 = vector.broadcast %cst_32 : f32 to vector<8x128xf32>
    %84 = arith.mulf %83, %82 : vector<8x128xf32>
    %cst_33 = arith.constant 1.000000e+00 : f32
    %85 = vector.broadcast %cst_33 : f32 to vector<8x128xf32>
    %86 = arith.subf %84, %85 : vector<8x128xf32>
    %87 = arith.select %16, %86, %82 : vector<8x128xi1>, vector<8x128xf32>
    %c96_i32_34 = arith.constant 96 : i32
    %88 = tpu.dynamic_rotate %87 by %c96_i32_34 dim 1 : vector<8x128xf32>, i32 -> vector<8x128xf32>
    %c64_i32_35 = arith.constant 64 : i32
    %89 = tpu.dynamic_rotate %87 by %c64_i32_35 dim 1 : vector<8x128xf32>, i32 -> vector<8x128xf32>
    %c32_i32_36 = arith.constant 32 : i32
    %90 = tpu.dynamic_rotate %87 by %c32_i32_36 dim 1 : vector<8x128xf32>, i32 -> vector<8x128xf32>
    %91 = arith.mulf %88, %23 : vector<8x128xf32>
    %92 = arith.mulf %87, %89 : vector<8x128xf32>
    %93 = arith.addf %91, %92 : vector<8x128xf32>
    %94 = math.tanh %93 : vector<8x128xf32>
    %95 = arith.mulf %90, %94 : vector<8x128xf32>
    %96 = vector.extract_strided_slice %10 {offsets = [16, 0], sizes = [8, 128], strides = [1, 1]} : vector<64x128xf32> to vector<8x128xf32>
    %97 = arith.truncf %70 : vector<8x128xf32> to vector<8x128xbf16>
    %c0_37 = arith.constant 0 : index
    %c0_38 = arith.constant 0 : index
    %98 = vector.load %arg3[%c0_37, %c0_38] : memref<128x128xbf16, #tpu.memory_space<vmem>>, vector<128x128xbf16>
    %cst_39 = arith.constant dense<0.000000e+00> : vector<8x128xf32>
    %99 = tpu.matmul %97, %98, %cst_39 {dimension_numbers = #tpu.dot_dimension_numbers<[1], [0], [0], [1], [0, 0, 1, 1], [], []>} : vector<8x128xbf16>, vector<128x128xbf16>, vector<8x128xf32> -> vector<8x128xf32>
    %100 = arith.addf %96, %99 : vector<8x128xf32>
    %101 = arith.negf %100 : vector<8x128xf32>
    %102 = math.exp %101 : vector<8x128xf32>
    %cst_40 = arith.constant 1.000000e+00 : f32
    %103 = vector.broadcast %cst_40 : f32 to vector<8x128xf32>
    %104 = arith.addf %103, %102 : vector<8x128xf32>
    %105 = arith.divf %103, %104 : vector<8x128xf32>
    %cst_41 = arith.constant 2.000000e+00 : f32
    %106 = vector.broadcast %cst_41 : f32 to vector<8x128xf32>
    %107 = arith.mulf %106, %105 : vector<8x128xf32>
    %cst_42 = arith.constant 1.000000e+00 : f32
    %108 = vector.broadcast %cst_42 : f32 to vector<8x128xf32>
    %109 = arith.subf %107, %108 : vector<8x128xf32>
    %110 = arith.select %16, %109, %105 : vector<8x128xi1>, vector<8x128xf32>
    %c96_i32_43 = arith.constant 96 : i32
    %111 = tpu.dynamic_rotate %110 by %c96_i32_43 dim 1 : vector<8x128xf32>, i32 -> vector<8x128xf32>
    %c64_i32_44 = arith.constant 64 : i32
    %112 = tpu.dynamic_rotate %110 by %c64_i32_44 dim 1 : vector<8x128xf32>, i32 -> vector<8x128xf32>
    %c32_i32_45 = arith.constant 32 : i32
    %113 = tpu.dynamic_rotate %110 by %c32_i32_45 dim 1 : vector<8x128xf32>, i32 -> vector<8x128xf32>
    %114 = arith.mulf %111, %68 : vector<8x128xf32>
    %115 = arith.mulf %110, %112 : vector<8x128xf32>
    %116 = arith.addf %114, %115 : vector<8x128xf32>
    %117 = math.tanh %116 : vector<8x128xf32>
    %118 = arith.mulf %113, %117 : vector<8x128xf32>
    %119 = tpu.concatenate %70, %95 in 1 : vector<8x128xf32>, vector<8x128xf32> -> vector<8x256xf32>
    %120 = arith.truncf %119 : vector<8x256xf32> to vector<8x256xbf16>
    %c0_46 = arith.constant 0 : index
    %c0_47 = arith.constant 0 : index
    %121 = vector.load %arg4[%c0_46, %c0_47] : memref<256x128xbf16, #tpu.memory_space<vmem>>, vector<256x128xbf16>
    %cst_48 = arith.constant dense<0.000000e+00> : vector<8x128xf32>
    %122 = tpu.matmul %120, %121, %cst_48 {dimension_numbers = #tpu.dot_dimension_numbers<[1], [0], [0], [1], [0, 0, 1, 1], [], []>} : vector<8x256xbf16>, vector<256x128xbf16>, vector<8x128xf32> -> vector<8x128xf32>
    %c0_49 = arith.constant 0 : index
    %c0_50 = arith.constant 0 : index
    %123 = vector.load %arg5[%c0_49, %c0_50] : memref<1x128xf32, #tpu.memory_space<vmem>>, vector<1x128xf32>
    %124 = vector.broadcast %123 : vector<1x128xf32> to vector<8x128xf32>
    %125 = arith.addf %122, %124 : vector<8x128xf32>
    %126 = arith.negf %125 : vector<8x128xf32>
    %127 = math.exp %126 : vector<8x128xf32>
    %cst_51 = arith.constant 1.000000e+00 : f32
    %128 = vector.broadcast %cst_51 : f32 to vector<8x128xf32>
    %129 = arith.addf %128, %127 : vector<8x128xf32>
    %130 = arith.divf %128, %129 : vector<8x128xf32>
    %cst_52 = arith.constant 2.000000e+00 : f32
    %131 = vector.broadcast %cst_52 : f32 to vector<8x128xf32>
    %132 = arith.mulf %131, %130 : vector<8x128xf32>
    %cst_53 = arith.constant 1.000000e+00 : f32
    %133 = vector.broadcast %cst_53 : f32 to vector<8x128xf32>
    %134 = arith.subf %132, %133 : vector<8x128xf32>
    %135 = arith.select %16, %134, %130 : vector<8x128xi1>, vector<8x128xf32>
    %c96_i32_54 = arith.constant 96 : i32
    %136 = tpu.dynamic_rotate %135 by %c96_i32_54 dim 1 : vector<8x128xf32>, i32 -> vector<8x128xf32>
    %c64_i32_55 = arith.constant 64 : i32
    %137 = tpu.dynamic_rotate %135 by %c64_i32_55 dim 1 : vector<8x128xf32>, i32 -> vector<8x128xf32>
    %c32_i32_56 = arith.constant 32 : i32
    %138 = tpu.dynamic_rotate %135 by %c32_i32_56 dim 1 : vector<8x128xf32>, i32 -> vector<8x128xf32>
    %139 = arith.mulf %136, %93 : vector<8x128xf32>
    %140 = arith.mulf %135, %137 : vector<8x128xf32>
    %141 = arith.addf %139, %140 : vector<8x128xf32>
    %142 = math.tanh %141 : vector<8x128xf32>
    %143 = arith.mulf %138, %142 : vector<8x128xf32>
    %144 = vector.extract_strided_slice %95 {offsets = [4, 0], sizes = [1, 128], strides = [1, 1]} : vector<8x128xf32> to vector<1x128xf32>
    %145 = vector.shape_cast %144 : vector<1x128xf32> to vector<1x128xf32>
    %146 = vector.broadcast %145 : vector<1x128xf32> to vector<8x128xf32>
    %147 = tpu.concatenate %146, %24 in 1 : vector<8x128xf32>, vector<8x128xf32> -> vector<8x256xf32>
    %148 = arith.truncf %147 : vector<8x256xf32> to vector<8x256xbf16>
    %c0_57 = arith.constant 0 : index
    %c0_58 = arith.constant 0 : index
    %149 = vector.load %arg6[%c0_57, %c0_58] : memref<256x128xbf16, #tpu.memory_space<vmem>>, vector<256x128xbf16>
    %cst_59 = arith.constant dense<0.000000e+00> : vector<8x128xf32>
    %150 = tpu.matmul %148, %149, %cst_59 {dimension_numbers = #tpu.dot_dimension_numbers<[1], [0], [0], [1], [0, 0, 1, 1], [], []>} : vector<8x256xbf16>, vector<256x128xbf16>, vector<8x128xf32> -> vector<8x128xf32>
    %c0_60 = arith.constant 0 : index
    %c0_61 = arith.constant 0 : index
    %151 = vector.load %arg7[%c0_60, %c0_61] : memref<1x128xf32, #tpu.memory_space<vmem>>, vector<1x128xf32>
    %152 = vector.broadcast %151 : vector<1x128xf32> to vector<8x128xf32>
    %153 = arith.addf %150, %152 : vector<8x128xf32>
    %154 = arith.negf %153 : vector<8x128xf32>
    %155 = math.exp %154 : vector<8x128xf32>
    %cst_62 = arith.constant 1.000000e+00 : f32
    %156 = vector.broadcast %cst_62 : f32 to vector<8x128xf32>
    %157 = arith.addf %156, %155 : vector<8x128xf32>
    %158 = arith.divf %156, %157 : vector<8x128xf32>
    %cst_63 = arith.constant 2.000000e+00 : f32
    %159 = vector.broadcast %cst_63 : f32 to vector<8x128xf32>
    %160 = arith.mulf %159, %158 : vector<8x128xf32>
    %cst_64 = arith.constant 1.000000e+00 : f32
    %161 = vector.broadcast %cst_64 : f32 to vector<8x128xf32>
    %162 = arith.subf %160, %161 : vector<8x128xf32>
    %163 = arith.select %22, %162, %158 : vector<8x128xi1>, vector<8x128xf32>
    %c96_i32_65 = arith.constant 96 : i32
    %164 = tpu.dynamic_rotate %163 by %c96_i32_65 dim 1 : vector<8x128xf32>, i32 -> vector<8x128xf32>
    %c64_i32_66 = arith.constant 64 : i32
    %165 = tpu.dynamic_rotate %163 by %c64_i32_66 dim 1 : vector<8x128xf32>, i32 -> vector<8x128xf32>
    %c32_i32_67 = arith.constant 32 : i32
    %166 = tpu.dynamic_rotate %163 by %c32_i32_67 dim 1 : vector<8x128xf32>, i32 -> vector<8x128xf32>
    %167 = arith.mulf %164, %24 : vector<8x128xf32>
    %168 = arith.mulf %163, %165 : vector<8x128xf32>
    %169 = arith.addf %167, %168 : vector<8x128xf32>
    %170 = math.tanh %169 : vector<8x128xf32>
    %171 = arith.mulf %166, %170 : vector<8x128xf32>
    %172 = vector.extract_strided_slice %10 {offsets = [24, 0], sizes = [8, 128], strides = [1, 1]} : vector<64x128xf32> to vector<8x128xf32>
    %173 = arith.truncf %118 : vector<8x128xf32> to vector<8x128xbf16>
    %c0_68 = arith.constant 0 : index
    %c0_69 = arith.constant 0 : index
    %174 = vector.load %arg3[%c0_68, %c0_69] : memref<128x128xbf16, #tpu.memory_space<vmem>>, vector<128x128xbf16>
    %cst_70 = arith.constant dense<0.000000e+00> : vector<8x128xf32>
    %175 = tpu.matmul %173, %174, %cst_70 {dimension_numbers = #tpu.dot_dimension_numbers<[1], [0], [0], [1], [0, 0, 1, 1], [], []>} : vector<8x128xbf16>, vector<128x128xbf16>, vector<8x128xf32> -> vector<8x128xf32>
    %176 = arith.addf %172, %175 : vector<8x128xf32>
    %177 = arith.negf %176 : vector<8x128xf32>
    %178 = math.exp %177 : vector<8x128xf32>
    %cst_71 = arith.constant 1.000000e+00 : f32
    %179 = vector.broadcast %cst_71 : f32 to vector<8x128xf32>
    %180 = arith.addf %179, %178 : vector<8x128xf32>
    %181 = arith.divf %179, %180 : vector<8x128xf32>
    %cst_72 = arith.constant 2.000000e+00 : f32
    %182 = vector.broadcast %cst_72 : f32 to vector<8x128xf32>
    %183 = arith.mulf %182, %181 : vector<8x128xf32>
    %cst_73 = arith.constant 1.000000e+00 : f32
    %184 = vector.broadcast %cst_73 : f32 to vector<8x128xf32>
    %185 = arith.subf %183, %184 : vector<8x128xf32>
    %186 = arith.select %16, %185, %181 : vector<8x128xi1>, vector<8x128xf32>
    %c96_i32_74 = arith.constant 96 : i32
    %187 = tpu.dynamic_rotate %186 by %c96_i32_74 dim 1 : vector<8x128xf32>, i32 -> vector<8x128xf32>
    %c64_i32_75 = arith.constant 64 : i32
    %188 = tpu.dynamic_rotate %186 by %c64_i32_75 dim 1 : vector<8x128xf32>, i32 -> vector<8x128xf32>
    %c32_i32_76 = arith.constant 32 : i32
    %189 = tpu.dynamic_rotate %186 by %c32_i32_76 dim 1 : vector<8x128xf32>, i32 -> vector<8x128xf32>
    %190 = arith.mulf %187, %116 : vector<8x128xf32>
    %191 = arith.mulf %186, %188 : vector<8x128xf32>
    %192 = arith.addf %190, %191 : vector<8x128xf32>
    %193 = math.tanh %192 : vector<8x128xf32>
    %194 = arith.mulf %189, %193 : vector<8x128xf32>
    %195 = tpu.concatenate %118, %143 in 1 : vector<8x128xf32>, vector<8x128xf32> -> vector<8x256xf32>
    %196 = arith.truncf %195 : vector<8x256xf32> to vector<8x256xbf16>
    %c0_77 = arith.constant 0 : index
    %c0_78 = arith.constant 0 : index
    %197 = vector.load %arg4[%c0_77, %c0_78] : memref<256x128xbf16, #tpu.memory_space<vmem>>, vector<256x128xbf16>
    %cst_79 = arith.constant dense<0.000000e+00> : vector<8x128xf32>
    %198 = tpu.matmul %196, %197, %cst_79 {dimension_numbers = #tpu.dot_dimension_numbers<[1], [0], [0], [1], [0, 0, 1, 1], [], []>} : vector<8x256xbf16>, vector<256x128xbf16>, vector<8x128xf32> -> vector<8x128xf32>
    %c0_80 = arith.constant 0 : index
    %c0_81 = arith.constant 0 : index
    %199 = vector.load %arg5[%c0_80, %c0_81] : memref<1x128xf32, #tpu.memory_space<vmem>>, vector<1x128xf32>
    %200 = vector.broadcast %199 : vector<1x128xf32> to vector<8x128xf32>
    %201 = arith.addf %198, %200 : vector<8x128xf32>
    %202 = arith.negf %201 : vector<8x128xf32>
    %203 = math.exp %202 : vector<8x128xf32>
    %cst_82 = arith.constant 1.000000e+00 : f32
    %204 = vector.broadcast %cst_82 : f32 to vector<8x128xf32>
    %205 = arith.addf %204, %203 : vector<8x128xf32>
    %206 = arith.divf %204, %205 : vector<8x128xf32>
    %cst_83 = arith.constant 2.000000e+00 : f32
    %207 = vector.broadcast %cst_83 : f32 to vector<8x128xf32>
    %208 = arith.mulf %207, %206 : vector<8x128xf32>
    %cst_84 = arith.constant 1.000000e+00 : f32
    %209 = vector.broadcast %cst_84 : f32 to vector<8x128xf32>
    %210 = arith.subf %208, %209 : vector<8x128xf32>
    %211 = arith.select %16, %210, %206 : vector<8x128xi1>, vector<8x128xf32>
    %c96_i32_85 = arith.constant 96 : i32
    %212 = tpu.dynamic_rotate %211 by %c96_i32_85 dim 1 : vector<8x128xf32>, i32 -> vector<8x128xf32>
    %c64_i32_86 = arith.constant 64 : i32
    %213 = tpu.dynamic_rotate %211 by %c64_i32_86 dim 1 : vector<8x128xf32>, i32 -> vector<8x128xf32>
    %c32_i32_87 = arith.constant 32 : i32
    %214 = tpu.dynamic_rotate %211 by %c32_i32_87 dim 1 : vector<8x128xf32>, i32 -> vector<8x128xf32>
    %215 = arith.mulf %212, %141 : vector<8x128xf32>
    %216 = arith.mulf %211, %213 : vector<8x128xf32>
    %217 = arith.addf %215, %216 : vector<8x128xf32>
    %218 = math.tanh %217 : vector<8x128xf32>
    %219 = arith.mulf %214, %218 : vector<8x128xf32>
    %220 = vector.extract_strided_slice %143 {offsets = [4, 0], sizes = [1, 128], strides = [1, 1]} : vector<8x128xf32> to vector<1x128xf32>
    %221 = vector.shape_cast %220 : vector<1x128xf32> to vector<1x128xf32>
    %222 = vector.broadcast %221 : vector<1x128xf32> to vector<8x128xf32>
    %223 = tpu.concatenate %222, %171 in 1 : vector<8x128xf32>, vector<8x128xf32> -> vector<8x256xf32>
    %224 = arith.truncf %223 : vector<8x256xf32> to vector<8x256xbf16>
    %c0_88 = arith.constant 0 : index
    %c0_89 = arith.constant 0 : index
    %225 = vector.load %arg6[%c0_88, %c0_89] : memref<256x128xbf16, #tpu.memory_space<vmem>>, vector<256x128xbf16>
    %cst_90 = arith.constant dense<0.000000e+00> : vector<8x128xf32>
    %226 = tpu.matmul %224, %225, %cst_90 {dimension_numbers = #tpu.dot_dimension_numbers<[1], [0], [0], [1], [0, 0, 1, 1], [], []>} : vector<8x256xbf16>, vector<256x128xbf16>, vector<8x128xf32> -> vector<8x128xf32>
    %c0_91 = arith.constant 0 : index
    %c0_92 = arith.constant 0 : index
    %227 = vector.load %arg7[%c0_91, %c0_92] : memref<1x128xf32, #tpu.memory_space<vmem>>, vector<1x128xf32>
    %228 = vector.broadcast %227 : vector<1x128xf32> to vector<8x128xf32>
    %229 = arith.addf %226, %228 : vector<8x128xf32>
    %230 = arith.negf %229 : vector<8x128xf32>
    %231 = math.exp %230 : vector<8x128xf32>
    %cst_93 = arith.constant 1.000000e+00 : f32
    %232 = vector.broadcast %cst_93 : f32 to vector<8x128xf32>
    %233 = arith.addf %232, %231 : vector<8x128xf32>
    %234 = arith.divf %232, %233 : vector<8x128xf32>
    %cst_94 = arith.constant 2.000000e+00 : f32
    %235 = vector.broadcast %cst_94 : f32 to vector<8x128xf32>
    %236 = arith.mulf %235, %234 : vector<8x128xf32>
    %cst_95 = arith.constant 1.000000e+00 : f32
    %237 = vector.broadcast %cst_95 : f32 to vector<8x128xf32>
    %238 = arith.subf %236, %237 : vector<8x128xf32>
    %239 = arith.select %22, %238, %234 : vector<8x128xi1>, vector<8x128xf32>
    %c96_i32_96 = arith.constant 96 : i32
    %240 = tpu.dynamic_rotate %239 by %c96_i32_96 dim 1 : vector<8x128xf32>, i32 -> vector<8x128xf32>
    %c64_i32_97 = arith.constant 64 : i32
    %241 = tpu.dynamic_rotate %239 by %c64_i32_97 dim 1 : vector<8x128xf32>, i32 -> vector<8x128xf32>
    %c32_i32_98 = arith.constant 32 : i32
    %242 = tpu.dynamic_rotate %239 by %c32_i32_98 dim 1 : vector<8x128xf32>, i32 -> vector<8x128xf32>
    %243 = arith.mulf %240, %169 : vector<8x128xf32>
    %244 = arith.mulf %239, %241 : vector<8x128xf32>
    %245 = arith.addf %243, %244 : vector<8x128xf32>
    %246 = math.tanh %245 : vector<8x128xf32>
    %247 = arith.mulf %242, %246 : vector<8x128xf32>
    %248 = tpu.concatenate %171, %24 in 1 : vector<8x128xf32>, vector<8x128xf32> -> vector<8x256xf32>
    %249 = arith.truncf %248 : vector<8x256xf32> to vector<8x256xbf16>
    %c0_99 = arith.constant 0 : index
    %c0_100 = arith.constant 0 : index
    %250 = vector.load %arg8[%c0_99, %c0_100] : memref<256x128xbf16, #tpu.memory_space<vmem>>, vector<256x128xbf16>
    %cst_101 = arith.constant dense<0.000000e+00> : vector<8x128xf32>
    %251 = tpu.matmul %249, %250, %cst_101 {dimension_numbers = #tpu.dot_dimension_numbers<[1], [0], [0], [1], [0, 0, 1, 1], [], []>} : vector<8x256xbf16>, vector<256x128xbf16>, vector<8x128xf32> -> vector<8x128xf32>
    %c0_102 = arith.constant 0 : index
    %c0_103 = arith.constant 0 : index
    %252 = vector.load %arg9[%c0_102, %c0_103] : memref<1x128xf32, #tpu.memory_space<vmem>>, vector<1x128xf32>
    %253 = vector.broadcast %252 : vector<1x128xf32> to vector<8x128xf32>
    %254 = arith.addf %251, %253 : vector<8x128xf32>
    %255 = arith.negf %254 : vector<8x128xf32>
    %256 = math.exp %255 : vector<8x128xf32>
    %cst_104 = arith.constant 1.000000e+00 : f32
    %257 = vector.broadcast %cst_104 : f32 to vector<8x128xf32>
    %258 = arith.addf %257, %256 : vector<8x128xf32>
    %259 = arith.divf %257, %258 : vector<8x128xf32>
    %cst_105 = arith.constant 2.000000e+00 : f32
    %260 = vector.broadcast %cst_105 : f32 to vector<8x128xf32>
    %261 = arith.mulf %260, %259 : vector<8x128xf32>
    %cst_106 = arith.constant 1.000000e+00 : f32
    %262 = vector.broadcast %cst_106 : f32 to vector<8x128xf32>
    %263 = arith.subf %261, %262 : vector<8x128xf32>
    %264 = arith.select %22, %263, %259 : vector<8x128xi1>, vector<8x128xf32>
    %c96_i32_107 = arith.constant 96 : i32
    %265 = tpu.dynamic_rotate %264 by %c96_i32_107 dim 1 : vector<8x128xf32>, i32 -> vector<8x128xf32>
    %c64_i32_108 = arith.constant 64 : i32
    %266 = tpu.dynamic_rotate %264 by %c64_i32_108 dim 1 : vector<8x128xf32>, i32 -> vector<8x128xf32>
    %c32_i32_109 = arith.constant 32 : i32
    %267 = tpu.dynamic_rotate %264 by %c32_i32_109 dim 1 : vector<8x128xf32>, i32 -> vector<8x128xf32>
    %268 = arith.mulf %265, %24 : vector<8x128xf32>
    %269 = arith.mulf %264, %266 : vector<8x128xf32>
    %270 = arith.addf %268, %269 : vector<8x128xf32>
    %271 = math.tanh %270 : vector<8x128xf32>
    %272 = arith.mulf %267, %271 : vector<8x128xf32>
    %273 = vector.extract_strided_slice %10 {offsets = [32, 0], sizes = [8, 128], strides = [1, 1]} : vector<64x128xf32> to vector<8x128xf32>
    %274 = arith.truncf %194 : vector<8x128xf32> to vector<8x128xbf16>
    %c0_110 = arith.constant 0 : index
    %c0_111 = arith.constant 0 : index
    %275 = vector.load %arg3[%c0_110, %c0_111] : memref<128x128xbf16, #tpu.memory_space<vmem>>, vector<128x128xbf16>
    %cst_112 = arith.constant dense<0.000000e+00> : vector<8x128xf32>
    %276 = tpu.matmul %274, %275, %cst_112 {dimension_numbers = #tpu.dot_dimension_numbers<[1], [0], [0], [1], [0, 0, 1, 1], [], []>} : vector<8x128xbf16>, vector<128x128xbf16>, vector<8x128xf32> -> vector<8x128xf32>
    %277 = arith.addf %273, %276 : vector<8x128xf32>
    %278 = arith.negf %277 : vector<8x128xf32>
    %279 = math.exp %278 : vector<8x128xf32>
    %cst_113 = arith.constant 1.000000e+00 : f32
    %280 = vector.broadcast %cst_113 : f32 to vector<8x128xf32>
    %281 = arith.addf %280, %279 : vector<8x128xf32>
    %282 = arith.divf %280, %281 : vector<8x128xf32>
    %cst_114 = arith.constant 2.000000e+00 : f32
    %283 = vector.broadcast %cst_114 : f32 to vector<8x128xf32>
    %284 = arith.mulf %283, %282 : vector<8x128xf32>
    %cst_115 = arith.constant 1.000000e+00 : f32
    %285 = vector.broadcast %cst_115 : f32 to vector<8x128xf32>
    %286 = arith.subf %284, %285 : vector<8x128xf32>
    %287 = arith.select %16, %286, %282 : vector<8x128xi1>, vector<8x128xf32>
    %c96_i32_116 = arith.constant 96 : i32
    %288 = tpu.dynamic_rotate %287 by %c96_i32_116 dim 1 : vector<8x128xf32>, i32 -> vector<8x128xf32>
    %c64_i32_117 = arith.constant 64 : i32
    %289 = tpu.dynamic_rotate %287 by %c64_i32_117 dim 1 : vector<8x128xf32>, i32 -> vector<8x128xf32>
    %c32_i32_118 = arith.constant 32 : i32
    %290 = tpu.dynamic_rotate %287 by %c32_i32_118 dim 1 : vector<8x128xf32>, i32 -> vector<8x128xf32>
    %291 = arith.mulf %288, %192 : vector<8x128xf32>
    %292 = arith.mulf %287, %289 : vector<8x128xf32>
    %293 = arith.addf %291, %292 : vector<8x128xf32>
    %294 = math.tanh %293 : vector<8x128xf32>
    %295 = arith.mulf %290, %294 : vector<8x128xf32>
    %296 = tpu.concatenate %194, %219 in 1 : vector<8x128xf32>, vector<8x128xf32> -> vector<8x256xf32>
    %297 = arith.truncf %296 : vector<8x256xf32> to vector<8x256xbf16>
    %c0_119 = arith.constant 0 : index
    %c0_120 = arith.constant 0 : index
    %298 = vector.load %arg4[%c0_119, %c0_120] : memref<256x128xbf16, #tpu.memory_space<vmem>>, vector<256x128xbf16>
    %cst_121 = arith.constant dense<0.000000e+00> : vector<8x128xf32>
    %299 = tpu.matmul %297, %298, %cst_121 {dimension_numbers = #tpu.dot_dimension_numbers<[1], [0], [0], [1], [0, 0, 1, 1], [], []>} : vector<8x256xbf16>, vector<256x128xbf16>, vector<8x128xf32> -> vector<8x128xf32>
    %c0_122 = arith.constant 0 : index
    %c0_123 = arith.constant 0 : index
    %300 = vector.load %arg5[%c0_122, %c0_123] : memref<1x128xf32, #tpu.memory_space<vmem>>, vector<1x128xf32>
    %301 = vector.broadcast %300 : vector<1x128xf32> to vector<8x128xf32>
    %302 = arith.addf %299, %301 : vector<8x128xf32>
    %303 = arith.negf %302 : vector<8x128xf32>
    %304 = math.exp %303 : vector<8x128xf32>
    %cst_124 = arith.constant 1.000000e+00 : f32
    %305 = vector.broadcast %cst_124 : f32 to vector<8x128xf32>
    %306 = arith.addf %305, %304 : vector<8x128xf32>
    %307 = arith.divf %305, %306 : vector<8x128xf32>
    %cst_125 = arith.constant 2.000000e+00 : f32
    %308 = vector.broadcast %cst_125 : f32 to vector<8x128xf32>
    %309 = arith.mulf %308, %307 : vector<8x128xf32>
    %cst_126 = arith.constant 1.000000e+00 : f32
    %310 = vector.broadcast %cst_126 : f32 to vector<8x128xf32>
    %311 = arith.subf %309, %310 : vector<8x128xf32>
    %312 = arith.select %16, %311, %307 : vector<8x128xi1>, vector<8x128xf32>
    %c96_i32_127 = arith.constant 96 : i32
    %313 = tpu.dynamic_rotate %312 by %c96_i32_127 dim 1 : vector<8x128xf32>, i32 -> vector<8x128xf32>
    %c64_i32_128 = arith.constant 64 : i32
    %314 = tpu.dynamic_rotate %312 by %c64_i32_128 dim 1 : vector<8x128xf32>, i32 -> vector<8x128xf32>
    %c32_i32_129 = arith.constant 32 : i32
    %315 = tpu.dynamic_rotate %312 by %c32_i32_129 dim 1 : vector<8x128xf32>, i32 -> vector<8x128xf32>
    %316 = arith.mulf %313, %217 : vector<8x128xf32>
    %317 = arith.mulf %312, %314 : vector<8x128xf32>
    %318 = arith.addf %316, %317 : vector<8x128xf32>
    %319 = math.tanh %318 : vector<8x128xf32>
    %320 = arith.mulf %315, %319 : vector<8x128xf32>
    %321 = vector.extract_strided_slice %219 {offsets = [4, 0], sizes = [1, 128], strides = [1, 1]} : vector<8x128xf32> to vector<1x128xf32>
    %322 = vector.shape_cast %321 : vector<1x128xf32> to vector<1x128xf32>
    %323 = vector.broadcast %322 : vector<1x128xf32> to vector<8x128xf32>
    %324 = tpu.concatenate %323, %247 in 1 : vector<8x128xf32>, vector<8x128xf32> -> vector<8x256xf32>
    %325 = arith.truncf %324 : vector<8x256xf32> to vector<8x256xbf16>
    %c0_130 = arith.constant 0 : index
    %c0_131 = arith.constant 0 : index
    %326 = vector.load %arg6[%c0_130, %c0_131] : memref<256x128xbf16, #tpu.memory_space<vmem>>, vector<256x128xbf16>
    %cst_132 = arith.constant dense<0.000000e+00> : vector<8x128xf32>
    %327 = tpu.matmul %325, %326, %cst_132 {dimension_numbers = #tpu.dot_dimension_numbers<[1], [0], [0], [1], [0, 0, 1, 1], [], []>} : vector<8x256xbf16>, vector<256x128xbf16>, vector<8x128xf32> -> vector<8x128xf32>
    %c0_133 = arith.constant 0 : index
    %c0_134 = arith.constant 0 : index
    %328 = vector.load %arg7[%c0_133, %c0_134] : memref<1x128xf32, #tpu.memory_space<vmem>>, vector<1x128xf32>
    %329 = vector.broadcast %328 : vector<1x128xf32> to vector<8x128xf32>
    %330 = arith.addf %327, %329 : vector<8x128xf32>
    %331 = arith.negf %330 : vector<8x128xf32>
    %332 = math.exp %331 : vector<8x128xf32>
    %cst_135 = arith.constant 1.000000e+00 : f32
    %333 = vector.broadcast %cst_135 : f32 to vector<8x128xf32>
    %334 = arith.addf %333, %332 : vector<8x128xf32>
    %335 = arith.divf %333, %334 : vector<8x128xf32>
    %cst_136 = arith.constant 2.000000e+00 : f32
    %336 = vector.broadcast %cst_136 : f32 to vector<8x128xf32>
    %337 = arith.mulf %336, %335 : vector<8x128xf32>
    %cst_137 = arith.constant 1.000000e+00 : f32
    %338 = vector.broadcast %cst_137 : f32 to vector<8x128xf32>
    %339 = arith.subf %337, %338 : vector<8x128xf32>
    %340 = arith.select %22, %339, %335 : vector<8x128xi1>, vector<8x128xf32>
    %c96_i32_138 = arith.constant 96 : i32
    %341 = tpu.dynamic_rotate %340 by %c96_i32_138 dim 1 : vector<8x128xf32>, i32 -> vector<8x128xf32>
    %c64_i32_139 = arith.constant 64 : i32
    %342 = tpu.dynamic_rotate %340 by %c64_i32_139 dim 1 : vector<8x128xf32>, i32 -> vector<8x128xf32>
    %c32_i32_140 = arith.constant 32 : i32
    %343 = tpu.dynamic_rotate %340 by %c32_i32_140 dim 1 : vector<8x128xf32>, i32 -> vector<8x128xf32>
    %344 = arith.mulf %341, %245 : vector<8x128xf32>
    %345 = arith.mulf %340, %342 : vector<8x128xf32>
    %346 = arith.addf %344, %345 : vector<8x128xf32>
    %347 = math.tanh %346 : vector<8x128xf32>
    %348 = arith.mulf %343, %347 : vector<8x128xf32>
    %349 = tpu.concatenate %247, %272 in 1 : vector<8x128xf32>, vector<8x128xf32> -> vector<8x256xf32>
    %350 = arith.truncf %349 : vector<8x256xf32> to vector<8x256xbf16>
    %c0_141 = arith.constant 0 : index
    %c0_142 = arith.constant 0 : index
    %351 = vector.load %arg8[%c0_141, %c0_142] : memref<256x128xbf16, #tpu.memory_space<vmem>>, vector<256x128xbf16>
    %cst_143 = arith.constant dense<0.000000e+00> : vector<8x128xf32>
    %352 = tpu.matmul %350, %351, %cst_143 {dimension_numbers = #tpu.dot_dimension_numbers<[1], [0], [0], [1], [0, 0, 1, 1], [], []>} : vector<8x256xbf16>, vector<256x128xbf16>, vector<8x128xf32> -> vector<8x128xf32>
    %c0_144 = arith.constant 0 : index
    %c0_145 = arith.constant 0 : index
    %353 = vector.load %arg9[%c0_144, %c0_145] : memref<1x128xf32, #tpu.memory_space<vmem>>, vector<1x128xf32>
    %354 = vector.broadcast %353 : vector<1x128xf32> to vector<8x128xf32>
    %355 = arith.addf %352, %354 : vector<8x128xf32>
    %356 = arith.negf %355 : vector<8x128xf32>
    %357 = math.exp %356 : vector<8x128xf32>
    %cst_146 = arith.constant 1.000000e+00 : f32
    %358 = vector.broadcast %cst_146 : f32 to vector<8x128xf32>
    %359 = arith.addf %358, %357 : vector<8x128xf32>
    %360 = arith.divf %358, %359 : vector<8x128xf32>
    %cst_147 = arith.constant 2.000000e+00 : f32
    %361 = vector.broadcast %cst_147 : f32 to vector<8x128xf32>
    %362 = arith.mulf %361, %360 : vector<8x128xf32>
    %cst_148 = arith.constant 1.000000e+00 : f32
    %363 = vector.broadcast %cst_148 : f32 to vector<8x128xf32>
    %364 = arith.subf %362, %363 : vector<8x128xf32>
    %365 = arith.select %22, %364, %360 : vector<8x128xi1>, vector<8x128xf32>
    %c96_i32_149 = arith.constant 96 : i32
    %366 = tpu.dynamic_rotate %365 by %c96_i32_149 dim 1 : vector<8x128xf32>, i32 -> vector<8x128xf32>
    %c64_i32_150 = arith.constant 64 : i32
    %367 = tpu.dynamic_rotate %365 by %c64_i32_150 dim 1 : vector<8x128xf32>, i32 -> vector<8x128xf32>
    %c32_i32_151 = arith.constant 32 : i32
    %368 = tpu.dynamic_rotate %365 by %c32_i32_151 dim 1 : vector<8x128xf32>, i32 -> vector<8x128xf32>
    %369 = arith.mulf %366, %270 : vector<8x128xf32>
    %370 = arith.mulf %365, %367 : vector<8x128xf32>
    %371 = arith.addf %369, %370 : vector<8x128xf32>
    %372 = math.tanh %371 : vector<8x128xf32>
    %373 = arith.mulf %368, %372 : vector<8x128xf32>
    %374 = vector.extract_strided_slice %10 {offsets = [40, 0], sizes = [8, 128], strides = [1, 1]} : vector<64x128xf32> to vector<8x128xf32>
    %375 = arith.truncf %295 : vector<8x128xf32> to vector<8x128xbf16>
    %c0_152 = arith.constant 0 : index
    %c0_153 = arith.constant 0 : index
    %376 = vector.load %arg3[%c0_152, %c0_153] : memref<128x128xbf16, #tpu.memory_space<vmem>>, vector<128x128xbf16>
    %cst_154 = arith.constant dense<0.000000e+00> : vector<8x128xf32>
    %377 = tpu.matmul %375, %376, %cst_154 {dimension_numbers = #tpu.dot_dimension_numbers<[1], [0], [0], [1], [0, 0, 1, 1], [], []>} : vector<8x128xbf16>, vector<128x128xbf16>, vector<8x128xf32> -> vector<8x128xf32>
    %378 = arith.addf %374, %377 : vector<8x128xf32>
    %379 = arith.negf %378 : vector<8x128xf32>
    %380 = math.exp %379 : vector<8x128xf32>
    %cst_155 = arith.constant 1.000000e+00 : f32
    %381 = vector.broadcast %cst_155 : f32 to vector<8x128xf32>
    %382 = arith.addf %381, %380 : vector<8x128xf32>
    %383 = arith.divf %381, %382 : vector<8x128xf32>
    %cst_156 = arith.constant 2.000000e+00 : f32
    %384 = vector.broadcast %cst_156 : f32 to vector<8x128xf32>
    %385 = arith.mulf %384, %383 : vector<8x128xf32>
    %cst_157 = arith.constant 1.000000e+00 : f32
    %386 = vector.broadcast %cst_157 : f32 to vector<8x128xf32>
    %387 = arith.subf %385, %386 : vector<8x128xf32>
    %388 = arith.select %16, %387, %383 : vector<8x128xi1>, vector<8x128xf32>
    %c96_i32_158 = arith.constant 96 : i32
    %389 = tpu.dynamic_rotate %388 by %c96_i32_158 dim 1 : vector<8x128xf32>, i32 -> vector<8x128xf32>
    %c64_i32_159 = arith.constant 64 : i32
    %390 = tpu.dynamic_rotate %388 by %c64_i32_159 dim 1 : vector<8x128xf32>, i32 -> vector<8x128xf32>
    %c32_i32_160 = arith.constant 32 : i32
    %391 = tpu.dynamic_rotate %388 by %c32_i32_160 dim 1 : vector<8x128xf32>, i32 -> vector<8x128xf32>
    %392 = arith.mulf %389, %293 : vector<8x128xf32>
    %393 = arith.mulf %388, %390 : vector<8x128xf32>
    %394 = arith.addf %392, %393 : vector<8x128xf32>
    %395 = math.tanh %394 : vector<8x128xf32>
    %396 = arith.mulf %391, %395 : vector<8x128xf32>
    %397 = tpu.concatenate %295, %320 in 1 : vector<8x128xf32>, vector<8x128xf32> -> vector<8x256xf32>
    %398 = arith.truncf %397 : vector<8x256xf32> to vector<8x256xbf16>
    %c0_161 = arith.constant 0 : index
    %c0_162 = arith.constant 0 : index
    %399 = vector.load %arg4[%c0_161, %c0_162] : memref<256x128xbf16, #tpu.memory_space<vmem>>, vector<256x128xbf16>
    %cst_163 = arith.constant dense<0.000000e+00> : vector<8x128xf32>
    %400 = tpu.matmul %398, %399, %cst_163 {dimension_numbers = #tpu.dot_dimension_numbers<[1], [0], [0], [1], [0, 0, 1, 1], [], []>} : vector<8x256xbf16>, vector<256x128xbf16>, vector<8x128xf32> -> vector<8x128xf32>
    %c0_164 = arith.constant 0 : index
    %c0_165 = arith.constant 0 : index
    %401 = vector.load %arg5[%c0_164, %c0_165] : memref<1x128xf32, #tpu.memory_space<vmem>>, vector<1x128xf32>
    %402 = vector.broadcast %401 : vector<1x128xf32> to vector<8x128xf32>
    %403 = arith.addf %400, %402 : vector<8x128xf32>
    %404 = arith.negf %403 : vector<8x128xf32>
    %405 = math.exp %404 : vector<8x128xf32>
    %cst_166 = arith.constant 1.000000e+00 : f32
    %406 = vector.broadcast %cst_166 : f32 to vector<8x128xf32>
    %407 = arith.addf %406, %405 : vector<8x128xf32>
    %408 = arith.divf %406, %407 : vector<8x128xf32>
    %cst_167 = arith.constant 2.000000e+00 : f32
    %409 = vector.broadcast %cst_167 : f32 to vector<8x128xf32>
    %410 = arith.mulf %409, %408 : vector<8x128xf32>
    %cst_168 = arith.constant 1.000000e+00 : f32
    %411 = vector.broadcast %cst_168 : f32 to vector<8x128xf32>
    %412 = arith.subf %410, %411 : vector<8x128xf32>
    %413 = arith.select %16, %412, %408 : vector<8x128xi1>, vector<8x128xf32>
    %c96_i32_169 = arith.constant 96 : i32
    %414 = tpu.dynamic_rotate %413 by %c96_i32_169 dim 1 : vector<8x128xf32>, i32 -> vector<8x128xf32>
    %c64_i32_170 = arith.constant 64 : i32
    %415 = tpu.dynamic_rotate %413 by %c64_i32_170 dim 1 : vector<8x128xf32>, i32 -> vector<8x128xf32>
    %c32_i32_171 = arith.constant 32 : i32
    %416 = tpu.dynamic_rotate %413 by %c32_i32_171 dim 1 : vector<8x128xf32>, i32 -> vector<8x128xf32>
    %417 = arith.mulf %414, %318 : vector<8x128xf32>
    %418 = arith.mulf %413, %415 : vector<8x128xf32>
    %419 = arith.addf %417, %418 : vector<8x128xf32>
    %420 = math.tanh %419 : vector<8x128xf32>
    %421 = arith.mulf %416, %420 : vector<8x128xf32>
    %422 = vector.extract_strided_slice %320 {offsets = [4, 0], sizes = [1, 128], strides = [1, 1]} : vector<8x128xf32> to vector<1x128xf32>
    %423 = vector.shape_cast %422 : vector<1x128xf32> to vector<1x128xf32>
    %424 = vector.broadcast %423 : vector<1x128xf32> to vector<8x128xf32>
    %425 = tpu.concatenate %424, %348 in 1 : vector<8x128xf32>, vector<8x128xf32> -> vector<8x256xf32>
    %426 = arith.truncf %425 : vector<8x256xf32> to vector<8x256xbf16>
    %c0_172 = arith.constant 0 : index
    %c0_173 = arith.constant 0 : index
    %427 = vector.load %arg6[%c0_172, %c0_173] : memref<256x128xbf16, #tpu.memory_space<vmem>>, vector<256x128xbf16>
    %cst_174 = arith.constant dense<0.000000e+00> : vector<8x128xf32>
    %428 = tpu.matmul %426, %427, %cst_174 {dimension_numbers = #tpu.dot_dimension_numbers<[1], [0], [0], [1], [0, 0, 1, 1], [], []>} : vector<8x256xbf16>, vector<256x128xbf16>, vector<8x128xf32> -> vector<8x128xf32>
    %c0_175 = arith.constant 0 : index
    %c0_176 = arith.constant 0 : index
    %429 = vector.load %arg7[%c0_175, %c0_176] : memref<1x128xf32, #tpu.memory_space<vmem>>, vector<1x128xf32>
    %430 = vector.broadcast %429 : vector<1x128xf32> to vector<8x128xf32>
    %431 = arith.addf %428, %430 : vector<8x128xf32>
    %432 = arith.negf %431 : vector<8x128xf32>
    %433 = math.exp %432 : vector<8x128xf32>
    %cst_177 = arith.constant 1.000000e+00 : f32
    %434 = vector.broadcast %cst_177 : f32 to vector<8x128xf32>
    %435 = arith.addf %434, %433 : vector<8x128xf32>
    %436 = arith.divf %434, %435 : vector<8x128xf32>
    %cst_178 = arith.constant 2.000000e+00 : f32
    %437 = vector.broadcast %cst_178 : f32 to vector<8x128xf32>
    %438 = arith.mulf %437, %436 : vector<8x128xf32>
    %cst_179 = arith.constant 1.000000e+00 : f32
    %439 = vector.broadcast %cst_179 : f32 to vector<8x128xf32>
    %440 = arith.subf %438, %439 : vector<8x128xf32>
    %441 = arith.select %22, %440, %436 : vector<8x128xi1>, vector<8x128xf32>
    %c96_i32_180 = arith.constant 96 : i32
    %442 = tpu.dynamic_rotate %441 by %c96_i32_180 dim 1 : vector<8x128xf32>, i32 -> vector<8x128xf32>
    %c64_i32_181 = arith.constant 64 : i32
    %443 = tpu.dynamic_rotate %441 by %c64_i32_181 dim 1 : vector<8x128xf32>, i32 -> vector<8x128xf32>
    %c32_i32_182 = arith.constant 32 : i32
    %444 = tpu.dynamic_rotate %441 by %c32_i32_182 dim 1 : vector<8x128xf32>, i32 -> vector<8x128xf32>
    %445 = arith.mulf %442, %346 : vector<8x128xf32>
    %446 = arith.mulf %441, %443 : vector<8x128xf32>
    %447 = arith.addf %445, %446 : vector<8x128xf32>
    %448 = math.tanh %447 : vector<8x128xf32>
    %449 = arith.mulf %444, %448 : vector<8x128xf32>
    %450 = tpu.concatenate %348, %373 in 1 : vector<8x128xf32>, vector<8x128xf32> -> vector<8x256xf32>
    %451 = arith.truncf %450 : vector<8x256xf32> to vector<8x256xbf16>
    %c0_183 = arith.constant 0 : index
    %c0_184 = arith.constant 0 : index
    %452 = vector.load %arg8[%c0_183, %c0_184] : memref<256x128xbf16, #tpu.memory_space<vmem>>, vector<256x128xbf16>
    %cst_185 = arith.constant dense<0.000000e+00> : vector<8x128xf32>
    %453 = tpu.matmul %451, %452, %cst_185 {dimension_numbers = #tpu.dot_dimension_numbers<[1], [0], [0], [1], [0, 0, 1, 1], [], []>} : vector<8x256xbf16>, vector<256x128xbf16>, vector<8x128xf32> -> vector<8x128xf32>
    %c0_186 = arith.constant 0 : index
    %c0_187 = arith.constant 0 : index
    %454 = vector.load %arg9[%c0_186, %c0_187] : memref<1x128xf32, #tpu.memory_space<vmem>>, vector<1x128xf32>
    %455 = vector.broadcast %454 : vector<1x128xf32> to vector<8x128xf32>
    %456 = arith.addf %453, %455 : vector<8x128xf32>
    %457 = arith.negf %456 : vector<8x128xf32>
    %458 = math.exp %457 : vector<8x128xf32>
    %cst_188 = arith.constant 1.000000e+00 : f32
    %459 = vector.broadcast %cst_188 : f32 to vector<8x128xf32>
    %460 = arith.addf %459, %458 : vector<8x128xf32>
    %461 = arith.divf %459, %460 : vector<8x128xf32>
    %cst_189 = arith.constant 2.000000e+00 : f32
    %462 = vector.broadcast %cst_189 : f32 to vector<8x128xf32>
    %463 = arith.mulf %462, %461 : vector<8x128xf32>
    %cst_190 = arith.constant 1.000000e+00 : f32
    %464 = vector.broadcast %cst_190 : f32 to vector<8x128xf32>
    %465 = arith.subf %463, %464 : vector<8x128xf32>
    %466 = arith.select %22, %465, %461 : vector<8x128xi1>, vector<8x128xf32>
    %c96_i32_191 = arith.constant 96 : i32
    %467 = tpu.dynamic_rotate %466 by %c96_i32_191 dim 1 : vector<8x128xf32>, i32 -> vector<8x128xf32>
    %c64_i32_192 = arith.constant 64 : i32
    %468 = tpu.dynamic_rotate %466 by %c64_i32_192 dim 1 : vector<8x128xf32>, i32 -> vector<8x128xf32>
    %c32_i32_193 = arith.constant 32 : i32
    %469 = tpu.dynamic_rotate %466 by %c32_i32_193 dim 1 : vector<8x128xf32>, i32 -> vector<8x128xf32>
    %470 = arith.mulf %467, %371 : vector<8x128xf32>
    %471 = arith.mulf %466, %468 : vector<8x128xf32>
    %472 = arith.addf %470, %471 : vector<8x128xf32>
    %473 = math.tanh %472 : vector<8x128xf32>
    %474 = arith.mulf %469, %473 : vector<8x128xf32>
    %475 = vector.extract_strided_slice %10 {offsets = [48, 0], sizes = [8, 128], strides = [1, 1]} : vector<64x128xf32> to vector<8x128xf32>
    %476 = arith.truncf %396 : vector<8x128xf32> to vector<8x128xbf16>
    %c0_194 = arith.constant 0 : index
    %c0_195 = arith.constant 0 : index
    %477 = vector.load %arg3[%c0_194, %c0_195] : memref<128x128xbf16, #tpu.memory_space<vmem>>, vector<128x128xbf16>
    %cst_196 = arith.constant dense<0.000000e+00> : vector<8x128xf32>
    %478 = tpu.matmul %476, %477, %cst_196 {dimension_numbers = #tpu.dot_dimension_numbers<[1], [0], [0], [1], [0, 0, 1, 1], [], []>} : vector<8x128xbf16>, vector<128x128xbf16>, vector<8x128xf32> -> vector<8x128xf32>
    %479 = arith.addf %475, %478 : vector<8x128xf32>
    %480 = arith.negf %479 : vector<8x128xf32>
    %481 = math.exp %480 : vector<8x128xf32>
    %cst_197 = arith.constant 1.000000e+00 : f32
    %482 = vector.broadcast %cst_197 : f32 to vector<8x128xf32>
    %483 = arith.addf %482, %481 : vector<8x128xf32>
    %484 = arith.divf %482, %483 : vector<8x128xf32>
    %cst_198 = arith.constant 2.000000e+00 : f32
    %485 = vector.broadcast %cst_198 : f32 to vector<8x128xf32>
    %486 = arith.mulf %485, %484 : vector<8x128xf32>
    %cst_199 = arith.constant 1.000000e+00 : f32
    %487 = vector.broadcast %cst_199 : f32 to vector<8x128xf32>
    %488 = arith.subf %486, %487 : vector<8x128xf32>
    %489 = arith.select %16, %488, %484 : vector<8x128xi1>, vector<8x128xf32>
    %c96_i32_200 = arith.constant 96 : i32
    %490 = tpu.dynamic_rotate %489 by %c96_i32_200 dim 1 : vector<8x128xf32>, i32 -> vector<8x128xf32>
    %c64_i32_201 = arith.constant 64 : i32
    %491 = tpu.dynamic_rotate %489 by %c64_i32_201 dim 1 : vector<8x128xf32>, i32 -> vector<8x128xf32>
    %c32_i32_202 = arith.constant 32 : i32
    %492 = tpu.dynamic_rotate %489 by %c32_i32_202 dim 1 : vector<8x128xf32>, i32 -> vector<8x128xf32>
    %493 = arith.mulf %490, %394 : vector<8x128xf32>
    %494 = arith.mulf %489, %491 : vector<8x128xf32>
    %495 = arith.addf %493, %494 : vector<8x128xf32>
    %496 = math.tanh %495 : vector<8x128xf32>
    %497 = arith.mulf %492, %496 : vector<8x128xf32>
    %498 = tpu.concatenate %396, %421 in 1 : vector<8x128xf32>, vector<8x128xf32> -> vector<8x256xf32>
    %499 = arith.truncf %498 : vector<8x256xf32> to vector<8x256xbf16>
    %c0_203 = arith.constant 0 : index
    %c0_204 = arith.constant 0 : index
    %500 = vector.load %arg4[%c0_203, %c0_204] : memref<256x128xbf16, #tpu.memory_space<vmem>>, vector<256x128xbf16>
    %cst_205 = arith.constant dense<0.000000e+00> : vector<8x128xf32>
    %501 = tpu.matmul %499, %500, %cst_205 {dimension_numbers = #tpu.dot_dimension_numbers<[1], [0], [0], [1], [0, 0, 1, 1], [], []>} : vector<8x256xbf16>, vector<256x128xbf16>, vector<8x128xf32> -> vector<8x128xf32>
    %c0_206 = arith.constant 0 : index
    %c0_207 = arith.constant 0 : index
    %502 = vector.load %arg5[%c0_206, %c0_207] : memref<1x128xf32, #tpu.memory_space<vmem>>, vector<1x128xf32>
    %503 = vector.broadcast %502 : vector<1x128xf32> to vector<8x128xf32>
    %504 = arith.addf %501, %503 : vector<8x128xf32>
    %505 = arith.negf %504 : vector<8x128xf32>
    %506 = math.exp %505 : vector<8x128xf32>
    %cst_208 = arith.constant 1.000000e+00 : f32
    %507 = vector.broadcast %cst_208 : f32 to vector<8x128xf32>
    %508 = arith.addf %507, %506 : vector<8x128xf32>
    %509 = arith.divf %507, %508 : vector<8x128xf32>
    %cst_209 = arith.constant 2.000000e+00 : f32
    %510 = vector.broadcast %cst_209 : f32 to vector<8x128xf32>
    %511 = arith.mulf %510, %509 : vector<8x128xf32>
    %cst_210 = arith.constant 1.000000e+00 : f32
    %512 = vector.broadcast %cst_210 : f32 to vector<8x128xf32>
    %513 = arith.subf %511, %512 : vector<8x128xf32>
    %514 = arith.select %16, %513, %509 : vector<8x128xi1>, vector<8x128xf32>
    %c96_i32_211 = arith.constant 96 : i32
    %515 = tpu.dynamic_rotate %514 by %c96_i32_211 dim 1 : vector<8x128xf32>, i32 -> vector<8x128xf32>
    %c64_i32_212 = arith.constant 64 : i32
    %516 = tpu.dynamic_rotate %514 by %c64_i32_212 dim 1 : vector<8x128xf32>, i32 -> vector<8x128xf32>
    %c32_i32_213 = arith.constant 32 : i32
    %517 = tpu.dynamic_rotate %514 by %c32_i32_213 dim 1 : vector<8x128xf32>, i32 -> vector<8x128xf32>
    %518 = arith.mulf %515, %419 : vector<8x128xf32>
    %519 = arith.mulf %514, %516 : vector<8x128xf32>
    %520 = arith.addf %518, %519 : vector<8x128xf32>
    %521 = math.tanh %520 : vector<8x128xf32>
    %522 = arith.mulf %517, %521 : vector<8x128xf32>
    %523 = vector.extract_strided_slice %421 {offsets = [4, 0], sizes = [1, 128], strides = [1, 1]} : vector<8x128xf32> to vector<1x128xf32>
    %524 = vector.shape_cast %523 : vector<1x128xf32> to vector<1x128xf32>
    %525 = vector.broadcast %524 : vector<1x128xf32> to vector<8x128xf32>
    %526 = tpu.concatenate %525, %449 in 1 : vector<8x128xf32>, vector<8x128xf32> -> vector<8x256xf32>
    %527 = arith.truncf %526 : vector<8x256xf32> to vector<8x256xbf16>
    %c0_214 = arith.constant 0 : index
    %c0_215 = arith.constant 0 : index
    %528 = vector.load %arg6[%c0_214, %c0_215] : memref<256x128xbf16, #tpu.memory_space<vmem>>, vector<256x128xbf16>
    %cst_216 = arith.constant dense<0.000000e+00> : vector<8x128xf32>
    %529 = tpu.matmul %527, %528, %cst_216 {dimension_numbers = #tpu.dot_dimension_numbers<[1], [0], [0], [1], [0, 0, 1, 1], [], []>} : vector<8x256xbf16>, vector<256x128xbf16>, vector<8x128xf32> -> vector<8x128xf32>
    %c0_217 = arith.constant 0 : index
    %c0_218 = arith.constant 0 : index
    %530 = vector.load %arg7[%c0_217, %c0_218] : memref<1x128xf32, #tpu.memory_space<vmem>>, vector<1x128xf32>
    %531 = vector.broadcast %530 : vector<1x128xf32> to vector<8x128xf32>
    %532 = arith.addf %529, %531 : vector<8x128xf32>
    %533 = arith.negf %532 : vector<8x128xf32>
    %534 = math.exp %533 : vector<8x128xf32>
    %cst_219 = arith.constant 1.000000e+00 : f32
    %535 = vector.broadcast %cst_219 : f32 to vector<8x128xf32>
    %536 = arith.addf %535, %534 : vector<8x128xf32>
    %537 = arith.divf %535, %536 : vector<8x128xf32>
    %cst_220 = arith.constant 2.000000e+00 : f32
    %538 = vector.broadcast %cst_220 : f32 to vector<8x128xf32>
    %539 = arith.mulf %538, %537 : vector<8x128xf32>
    %cst_221 = arith.constant 1.000000e+00 : f32
    %540 = vector.broadcast %cst_221 : f32 to vector<8x128xf32>
    %541 = arith.subf %539, %540 : vector<8x128xf32>
    %542 = arith.select %22, %541, %537 : vector<8x128xi1>, vector<8x128xf32>
    %c96_i32_222 = arith.constant 96 : i32
    %543 = tpu.dynamic_rotate %542 by %c96_i32_222 dim 1 : vector<8x128xf32>, i32 -> vector<8x128xf32>
    %c64_i32_223 = arith.constant 64 : i32
    %544 = tpu.dynamic_rotate %542 by %c64_i32_223 dim 1 : vector<8x128xf32>, i32 -> vector<8x128xf32>
    %c32_i32_224 = arith.constant 32 : i32
    %545 = tpu.dynamic_rotate %542 by %c32_i32_224 dim 1 : vector<8x128xf32>, i32 -> vector<8x128xf32>
    %546 = arith.mulf %543, %447 : vector<8x128xf32>
    %547 = arith.mulf %542, %544 : vector<8x128xf32>
    %548 = arith.addf %546, %547 : vector<8x128xf32>
    %549 = math.tanh %548 : vector<8x128xf32>
    %550 = arith.mulf %545, %549 : vector<8x128xf32>
    %551 = tpu.concatenate %449, %474 in 1 : vector<8x128xf32>, vector<8x128xf32> -> vector<8x256xf32>
    %552 = arith.truncf %551 : vector<8x256xf32> to vector<8x256xbf16>
    %c0_225 = arith.constant 0 : index
    %c0_226 = arith.constant 0 : index
    %553 = vector.load %arg8[%c0_225, %c0_226] : memref<256x128xbf16, #tpu.memory_space<vmem>>, vector<256x128xbf16>
    %cst_227 = arith.constant dense<0.000000e+00> : vector<8x128xf32>
    %554 = tpu.matmul %552, %553, %cst_227 {dimension_numbers = #tpu.dot_dimension_numbers<[1], [0], [0], [1], [0, 0, 1, 1], [], []>} : vector<8x256xbf16>, vector<256x128xbf16>, vector<8x128xf32> -> vector<8x128xf32>
    %c0_228 = arith.constant 0 : index
    %c0_229 = arith.constant 0 : index
    %555 = vector.load %arg9[%c0_228, %c0_229] : memref<1x128xf32, #tpu.memory_space<vmem>>, vector<1x128xf32>
    %556 = vector.broadcast %555 : vector<1x128xf32> to vector<8x128xf32>
    %557 = arith.addf %554, %556 : vector<8x128xf32>
    %558 = arith.negf %557 : vector<8x128xf32>
    %559 = math.exp %558 : vector<8x128xf32>
    %cst_230 = arith.constant 1.000000e+00 : f32
    %560 = vector.broadcast %cst_230 : f32 to vector<8x128xf32>
    %561 = arith.addf %560, %559 : vector<8x128xf32>
    %562 = arith.divf %560, %561 : vector<8x128xf32>
    %cst_231 = arith.constant 2.000000e+00 : f32
    %563 = vector.broadcast %cst_231 : f32 to vector<8x128xf32>
    %564 = arith.mulf %563, %562 : vector<8x128xf32>
    %cst_232 = arith.constant 1.000000e+00 : f32
    %565 = vector.broadcast %cst_232 : f32 to vector<8x128xf32>
    %566 = arith.subf %564, %565 : vector<8x128xf32>
    %567 = arith.select %22, %566, %562 : vector<8x128xi1>, vector<8x128xf32>
    %c96_i32_233 = arith.constant 96 : i32
    %568 = tpu.dynamic_rotate %567 by %c96_i32_233 dim 1 : vector<8x128xf32>, i32 -> vector<8x128xf32>
    %c64_i32_234 = arith.constant 64 : i32
    %569 = tpu.dynamic_rotate %567 by %c64_i32_234 dim 1 : vector<8x128xf32>, i32 -> vector<8x128xf32>
    %c32_i32_235 = arith.constant 32 : i32
    %570 = tpu.dynamic_rotate %567 by %c32_i32_235 dim 1 : vector<8x128xf32>, i32 -> vector<8x128xf32>
    %571 = arith.mulf %568, %472 : vector<8x128xf32>
    %572 = arith.mulf %567, %569 : vector<8x128xf32>
    %573 = arith.addf %571, %572 : vector<8x128xf32>
    %574 = math.tanh %573 : vector<8x128xf32>
    %575 = arith.mulf %570, %574 : vector<8x128xf32>
    %576 = vector.extract_strided_slice %10 {offsets = [56, 0], sizes = [8, 128], strides = [1, 1]} : vector<64x128xf32> to vector<8x128xf32>
    %577 = arith.truncf %497 : vector<8x128xf32> to vector<8x128xbf16>
    %c0_236 = arith.constant 0 : index
    %c0_237 = arith.constant 0 : index
    %578 = vector.load %arg3[%c0_236, %c0_237] : memref<128x128xbf16, #tpu.memory_space<vmem>>, vector<128x128xbf16>
    %cst_238 = arith.constant dense<0.000000e+00> : vector<8x128xf32>
    %579 = tpu.matmul %577, %578, %cst_238 {dimension_numbers = #tpu.dot_dimension_numbers<[1], [0], [0], [1], [0, 0, 1, 1], [], []>} : vector<8x128xbf16>, vector<128x128xbf16>, vector<8x128xf32> -> vector<8x128xf32>
    %580 = arith.addf %576, %579 : vector<8x128xf32>
    %581 = arith.negf %580 : vector<8x128xf32>
    %582 = math.exp %581 : vector<8x128xf32>
    %cst_239 = arith.constant 1.000000e+00 : f32
    %583 = vector.broadcast %cst_239 : f32 to vector<8x128xf32>
    %584 = arith.addf %583, %582 : vector<8x128xf32>
    %585 = arith.divf %583, %584 : vector<8x128xf32>
    %cst_240 = arith.constant 2.000000e+00 : f32
    %586 = vector.broadcast %cst_240 : f32 to vector<8x128xf32>
    %587 = arith.mulf %586, %585 : vector<8x128xf32>
    %cst_241 = arith.constant 1.000000e+00 : f32
    %588 = vector.broadcast %cst_241 : f32 to vector<8x128xf32>
    %589 = arith.subf %587, %588 : vector<8x128xf32>
    %590 = arith.select %16, %589, %585 : vector<8x128xi1>, vector<8x128xf32>
    %c96_i32_242 = arith.constant 96 : i32
    %591 = tpu.dynamic_rotate %590 by %c96_i32_242 dim 1 : vector<8x128xf32>, i32 -> vector<8x128xf32>
    %c64_i32_243 = arith.constant 64 : i32
    %592 = tpu.dynamic_rotate %590 by %c64_i32_243 dim 1 : vector<8x128xf32>, i32 -> vector<8x128xf32>
    %c32_i32_244 = arith.constant 32 : i32
    %593 = tpu.dynamic_rotate %590 by %c32_i32_244 dim 1 : vector<8x128xf32>, i32 -> vector<8x128xf32>
    %594 = arith.mulf %591, %495 : vector<8x128xf32>
    %595 = arith.mulf %590, %592 : vector<8x128xf32>
    %596 = arith.addf %594, %595 : vector<8x128xf32>
    %597 = math.tanh %596 : vector<8x128xf32>
    %598 = arith.mulf %593, %597 : vector<8x128xf32>
    %599 = tpu.concatenate %497, %522 in 1 : vector<8x128xf32>, vector<8x128xf32> -> vector<8x256xf32>
    %600 = arith.truncf %599 : vector<8x256xf32> to vector<8x256xbf16>
    %c0_245 = arith.constant 0 : index
    %c0_246 = arith.constant 0 : index
    %601 = vector.load %arg4[%c0_245, %c0_246] : memref<256x128xbf16, #tpu.memory_space<vmem>>, vector<256x128xbf16>
    %cst_247 = arith.constant dense<0.000000e+00> : vector<8x128xf32>
    %602 = tpu.matmul %600, %601, %cst_247 {dimension_numbers = #tpu.dot_dimension_numbers<[1], [0], [0], [1], [0, 0, 1, 1], [], []>} : vector<8x256xbf16>, vector<256x128xbf16>, vector<8x128xf32> -> vector<8x128xf32>
    %c0_248 = arith.constant 0 : index
    %c0_249 = arith.constant 0 : index
    %603 = vector.load %arg5[%c0_248, %c0_249] : memref<1x128xf32, #tpu.memory_space<vmem>>, vector<1x128xf32>
    %604 = vector.broadcast %603 : vector<1x128xf32> to vector<8x128xf32>
    %605 = arith.addf %602, %604 : vector<8x128xf32>
    %606 = arith.negf %605 : vector<8x128xf32>
    %607 = math.exp %606 : vector<8x128xf32>
    %cst_250 = arith.constant 1.000000e+00 : f32
    %608 = vector.broadcast %cst_250 : f32 to vector<8x128xf32>
    %609 = arith.addf %608, %607 : vector<8x128xf32>
    %610 = arith.divf %608, %609 : vector<8x128xf32>
    %cst_251 = arith.constant 2.000000e+00 : f32
    %611 = vector.broadcast %cst_251 : f32 to vector<8x128xf32>
    %612 = arith.mulf %611, %610 : vector<8x128xf32>
    %cst_252 = arith.constant 1.000000e+00 : f32
    %613 = vector.broadcast %cst_252 : f32 to vector<8x128xf32>
    %614 = arith.subf %612, %613 : vector<8x128xf32>
    %615 = arith.select %16, %614, %610 : vector<8x128xi1>, vector<8x128xf32>
    %c96_i32_253 = arith.constant 96 : i32
    %616 = tpu.dynamic_rotate %615 by %c96_i32_253 dim 1 : vector<8x128xf32>, i32 -> vector<8x128xf32>
    %c64_i32_254 = arith.constant 64 : i32
    %617 = tpu.dynamic_rotate %615 by %c64_i32_254 dim 1 : vector<8x128xf32>, i32 -> vector<8x128xf32>
    %c32_i32_255 = arith.constant 32 : i32
    %618 = tpu.dynamic_rotate %615 by %c32_i32_255 dim 1 : vector<8x128xf32>, i32 -> vector<8x128xf32>
    %619 = arith.mulf %616, %520 : vector<8x128xf32>
    %620 = arith.mulf %615, %617 : vector<8x128xf32>
    %621 = arith.addf %619, %620 : vector<8x128xf32>
    %622 = math.tanh %621 : vector<8x128xf32>
    %623 = arith.mulf %618, %622 : vector<8x128xf32>
    %624 = vector.extract_strided_slice %522 {offsets = [4, 0], sizes = [1, 128], strides = [1, 1]} : vector<8x128xf32> to vector<1x128xf32>
    %625 = vector.shape_cast %624 : vector<1x128xf32> to vector<1x128xf32>
    %626 = vector.broadcast %625 : vector<1x128xf32> to vector<8x128xf32>
    %627 = tpu.concatenate %626, %550 in 1 : vector<8x128xf32>, vector<8x128xf32> -> vector<8x256xf32>
    %628 = arith.truncf %627 : vector<8x256xf32> to vector<8x256xbf16>
    %c0_256 = arith.constant 0 : index
    %c0_257 = arith.constant 0 : index
    %629 = vector.load %arg6[%c0_256, %c0_257] : memref<256x128xbf16, #tpu.memory_space<vmem>>, vector<256x128xbf16>
    %cst_258 = arith.constant dense<0.000000e+00> : vector<8x128xf32>
    %630 = tpu.matmul %628, %629, %cst_258 {dimension_numbers = #tpu.dot_dimension_numbers<[1], [0], [0], [1], [0, 0, 1, 1], [], []>} : vector<8x256xbf16>, vector<256x128xbf16>, vector<8x128xf32> -> vector<8x128xf32>
    %c0_259 = arith.constant 0 : index
    %c0_260 = arith.constant 0 : index
    %631 = vector.load %arg7[%c0_259, %c0_260] : memref<1x128xf32, #tpu.memory_space<vmem>>, vector<1x128xf32>
    %632 = vector.broadcast %631 : vector<1x128xf32> to vector<8x128xf32>
    %633 = arith.addf %630, %632 : vector<8x128xf32>
    %634 = arith.negf %633 : vector<8x128xf32>
    %635 = math.exp %634 : vector<8x128xf32>
    %cst_261 = arith.constant 1.000000e+00 : f32
    %636 = vector.broadcast %cst_261 : f32 to vector<8x128xf32>
    %637 = arith.addf %636, %635 : vector<8x128xf32>
    %638 = arith.divf %636, %637 : vector<8x128xf32>
    %cst_262 = arith.constant 2.000000e+00 : f32
    %639 = vector.broadcast %cst_262 : f32 to vector<8x128xf32>
    %640 = arith.mulf %639, %638 : vector<8x128xf32>
    %cst_263 = arith.constant 1.000000e+00 : f32
    %641 = vector.broadcast %cst_263 : f32 to vector<8x128xf32>
    %642 = arith.subf %640, %641 : vector<8x128xf32>
    %643 = arith.select %22, %642, %638 : vector<8x128xi1>, vector<8x128xf32>
    %c96_i32_264 = arith.constant 96 : i32
    %644 = tpu.dynamic_rotate %643 by %c96_i32_264 dim 1 : vector<8x128xf32>, i32 -> vector<8x128xf32>
    %c64_i32_265 = arith.constant 64 : i32
    %645 = tpu.dynamic_rotate %643 by %c64_i32_265 dim 1 : vector<8x128xf32>, i32 -> vector<8x128xf32>
    %c32_i32_266 = arith.constant 32 : i32
    %646 = tpu.dynamic_rotate %643 by %c32_i32_266 dim 1 : vector<8x128xf32>, i32 -> vector<8x128xf32>
    %647 = arith.mulf %644, %548 : vector<8x128xf32>
    %648 = arith.mulf %643, %645 : vector<8x128xf32>
    %649 = arith.addf %647, %648 : vector<8x128xf32>
    %650 = math.tanh %649 : vector<8x128xf32>
    %651 = arith.mulf %646, %650 : vector<8x128xf32>
    %652 = tpu.concatenate %550, %575 in 1 : vector<8x128xf32>, vector<8x128xf32> -> vector<8x256xf32>
    %653 = arith.truncf %652 : vector<8x256xf32> to vector<8x256xbf16>
    %c0_267 = arith.constant 0 : index
    %c0_268 = arith.constant 0 : index
    %654 = vector.load %arg8[%c0_267, %c0_268] : memref<256x128xbf16, #tpu.memory_space<vmem>>, vector<256x128xbf16>
    %cst_269 = arith.constant dense<0.000000e+00> : vector<8x128xf32>
    %655 = tpu.matmul %653, %654, %cst_269 {dimension_numbers = #tpu.dot_dimension_numbers<[1], [0], [0], [1], [0, 0, 1, 1], [], []>} : vector<8x256xbf16>, vector<256x128xbf16>, vector<8x128xf32> -> vector<8x128xf32>
    %c0_270 = arith.constant 0 : index
    %c0_271 = arith.constant 0 : index
    %656 = vector.load %arg9[%c0_270, %c0_271] : memref<1x128xf32, #tpu.memory_space<vmem>>, vector<1x128xf32>
    %657 = vector.broadcast %656 : vector<1x128xf32> to vector<8x128xf32>
    %658 = arith.addf %655, %657 : vector<8x128xf32>
    %659 = arith.negf %658 : vector<8x128xf32>
    %660 = math.exp %659 : vector<8x128xf32>
    %cst_272 = arith.constant 1.000000e+00 : f32
    %661 = vector.broadcast %cst_272 : f32 to vector<8x128xf32>
    %662 = arith.addf %661, %660 : vector<8x128xf32>
    %663 = arith.divf %661, %662 : vector<8x128xf32>
    %cst_273 = arith.constant 2.000000e+00 : f32
    %664 = vector.broadcast %cst_273 : f32 to vector<8x128xf32>
    %665 = arith.mulf %664, %663 : vector<8x128xf32>
    %cst_274 = arith.constant 1.000000e+00 : f32
    %666 = vector.broadcast %cst_274 : f32 to vector<8x128xf32>
    %667 = arith.subf %665, %666 : vector<8x128xf32>
    %668 = arith.select %22, %667, %663 : vector<8x128xi1>, vector<8x128xf32>
    %c96_i32_275 = arith.constant 96 : i32
    %669 = tpu.dynamic_rotate %668 by %c96_i32_275 dim 1 : vector<8x128xf32>, i32 -> vector<8x128xf32>
    %c64_i32_276 = arith.constant 64 : i32
    %670 = tpu.dynamic_rotate %668 by %c64_i32_276 dim 1 : vector<8x128xf32>, i32 -> vector<8x128xf32>
    %c32_i32_277 = arith.constant 32 : i32
    %671 = tpu.dynamic_rotate %668 by %c32_i32_277 dim 1 : vector<8x128xf32>, i32 -> vector<8x128xf32>
    %672 = arith.mulf %669, %573 : vector<8x128xf32>
    %673 = arith.mulf %668, %670 : vector<8x128xf32>
    %674 = arith.addf %672, %673 : vector<8x128xf32>
    %675 = math.tanh %674 : vector<8x128xf32>
    %676 = arith.mulf %671, %675 : vector<8x128xf32>
    %677 = tpu.concatenate %598, %623 in 1 : vector<8x128xf32>, vector<8x128xf32> -> vector<8x256xf32>
    %678 = arith.truncf %677 : vector<8x256xf32> to vector<8x256xbf16>
    %c0_278 = arith.constant 0 : index
    %c0_279 = arith.constant 0 : index
    %679 = vector.load %arg4[%c0_278, %c0_279] : memref<256x128xbf16, #tpu.memory_space<vmem>>, vector<256x128xbf16>
    %cst_280 = arith.constant dense<0.000000e+00> : vector<8x128xf32>
    %680 = tpu.matmul %678, %679, %cst_280 {dimension_numbers = #tpu.dot_dimension_numbers<[1], [0], [0], [1], [0, 0, 1, 1], [], []>} : vector<8x256xbf16>, vector<256x128xbf16>, vector<8x128xf32> -> vector<8x128xf32>
    %c0_281 = arith.constant 0 : index
    %c0_282 = arith.constant 0 : index
    %681 = vector.load %arg5[%c0_281, %c0_282] : memref<1x128xf32, #tpu.memory_space<vmem>>, vector<1x128xf32>
    %682 = vector.broadcast %681 : vector<1x128xf32> to vector<8x128xf32>
    %683 = arith.addf %680, %682 : vector<8x128xf32>
    %684 = arith.negf %683 : vector<8x128xf32>
    %685 = math.exp %684 : vector<8x128xf32>
    %cst_283 = arith.constant 1.000000e+00 : f32
    %686 = vector.broadcast %cst_283 : f32 to vector<8x128xf32>
    %687 = arith.addf %686, %685 : vector<8x128xf32>
    %688 = arith.divf %686, %687 : vector<8x128xf32>
    %cst_284 = arith.constant 2.000000e+00 : f32
    %689 = vector.broadcast %cst_284 : f32 to vector<8x128xf32>
    %690 = arith.mulf %689, %688 : vector<8x128xf32>
    %cst_285 = arith.constant 1.000000e+00 : f32
    %691 = vector.broadcast %cst_285 : f32 to vector<8x128xf32>
    %692 = arith.subf %690, %691 : vector<8x128xf32>
    %693 = arith.select %16, %692, %688 : vector<8x128xi1>, vector<8x128xf32>
    %c96_i32_286 = arith.constant 96 : i32
    %694 = tpu.dynamic_rotate %693 by %c96_i32_286 dim 1 : vector<8x128xf32>, i32 -> vector<8x128xf32>
    %c64_i32_287 = arith.constant 64 : i32
    %695 = tpu.dynamic_rotate %693 by %c64_i32_287 dim 1 : vector<8x128xf32>, i32 -> vector<8x128xf32>
    %c32_i32_288 = arith.constant 32 : i32
    %696 = tpu.dynamic_rotate %693 by %c32_i32_288 dim 1 : vector<8x128xf32>, i32 -> vector<8x128xf32>
    %697 = arith.mulf %694, %621 : vector<8x128xf32>
    %698 = arith.mulf %693, %695 : vector<8x128xf32>
    %699 = arith.addf %697, %698 : vector<8x128xf32>
    %700 = math.tanh %699 : vector<8x128xf32>
    %701 = arith.mulf %696, %700 : vector<8x128xf32>
    %702 = vector.extract_strided_slice %623 {offsets = [4, 0], sizes = [1, 128], strides = [1, 1]} : vector<8x128xf32> to vector<1x128xf32>
    %703 = vector.shape_cast %702 : vector<1x128xf32> to vector<1x128xf32>
    %704 = vector.broadcast %703 : vector<1x128xf32> to vector<8x128xf32>
    %705 = tpu.concatenate %704, %651 in 1 : vector<8x128xf32>, vector<8x128xf32> -> vector<8x256xf32>
    %706 = arith.truncf %705 : vector<8x256xf32> to vector<8x256xbf16>
    %c0_289 = arith.constant 0 : index
    %c0_290 = arith.constant 0 : index
    %707 = vector.load %arg6[%c0_289, %c0_290] : memref<256x128xbf16, #tpu.memory_space<vmem>>, vector<256x128xbf16>
    %cst_291 = arith.constant dense<0.000000e+00> : vector<8x128xf32>
    %708 = tpu.matmul %706, %707, %cst_291 {dimension_numbers = #tpu.dot_dimension_numbers<[1], [0], [0], [1], [0, 0, 1, 1], [], []>} : vector<8x256xbf16>, vector<256x128xbf16>, vector<8x128xf32> -> vector<8x128xf32>
    %c0_292 = arith.constant 0 : index
    %c0_293 = arith.constant 0 : index
    %709 = vector.load %arg7[%c0_292, %c0_293] : memref<1x128xf32, #tpu.memory_space<vmem>>, vector<1x128xf32>
    %710 = vector.broadcast %709 : vector<1x128xf32> to vector<8x128xf32>
    %711 = arith.addf %708, %710 : vector<8x128xf32>
    %712 = arith.negf %711 : vector<8x128xf32>
    %713 = math.exp %712 : vector<8x128xf32>
    %cst_294 = arith.constant 1.000000e+00 : f32
    %714 = vector.broadcast %cst_294 : f32 to vector<8x128xf32>
    %715 = arith.addf %714, %713 : vector<8x128xf32>
    %716 = arith.divf %714, %715 : vector<8x128xf32>
    %cst_295 = arith.constant 2.000000e+00 : f32
    %717 = vector.broadcast %cst_295 : f32 to vector<8x128xf32>
    %718 = arith.mulf %717, %716 : vector<8x128xf32>
    %cst_296 = arith.constant 1.000000e+00 : f32
    %719 = vector.broadcast %cst_296 : f32 to vector<8x128xf32>
    %720 = arith.subf %718, %719 : vector<8x128xf32>
    %721 = arith.select %22, %720, %716 : vector<8x128xi1>, vector<8x128xf32>
    %c96_i32_297 = arith.constant 96 : i32
    %722 = tpu.dynamic_rotate %721 by %c96_i32_297 dim 1 : vector<8x128xf32>, i32 -> vector<8x128xf32>
    %c64_i32_298 = arith.constant 64 : i32
    %723 = tpu.dynamic_rotate %721 by %c64_i32_298 dim 1 : vector<8x128xf32>, i32 -> vector<8x128xf32>
    %c32_i32_299 = arith.constant 32 : i32
    %724 = tpu.dynamic_rotate %721 by %c32_i32_299 dim 1 : vector<8x128xf32>, i32 -> vector<8x128xf32>
    %725 = arith.mulf %722, %649 : vector<8x128xf32>
    %726 = arith.mulf %721, %723 : vector<8x128xf32>
    %727 = arith.addf %725, %726 : vector<8x128xf32>
    %728 = math.tanh %727 : vector<8x128xf32>
    %729 = arith.mulf %724, %728 : vector<8x128xf32>
    %730 = tpu.concatenate %651, %676 in 1 : vector<8x128xf32>, vector<8x128xf32> -> vector<8x256xf32>
    %731 = arith.truncf %730 : vector<8x256xf32> to vector<8x256xbf16>
    %c0_300 = arith.constant 0 : index
    %c0_301 = arith.constant 0 : index
    %732 = vector.load %arg8[%c0_300, %c0_301] : memref<256x128xbf16, #tpu.memory_space<vmem>>, vector<256x128xbf16>
    %cst_302 = arith.constant dense<0.000000e+00> : vector<8x128xf32>
    %733 = tpu.matmul %731, %732, %cst_302 {dimension_numbers = #tpu.dot_dimension_numbers<[1], [0], [0], [1], [0, 0, 1, 1], [], []>} : vector<8x256xbf16>, vector<256x128xbf16>, vector<8x128xf32> -> vector<8x128xf32>
    %c0_303 = arith.constant 0 : index
    %c0_304 = arith.constant 0 : index
    %734 = vector.load %arg9[%c0_303, %c0_304] : memref<1x128xf32, #tpu.memory_space<vmem>>, vector<1x128xf32>
    %735 = vector.broadcast %734 : vector<1x128xf32> to vector<8x128xf32>
    %736 = arith.addf %733, %735 : vector<8x128xf32>
    %737 = arith.negf %736 : vector<8x128xf32>
    %738 = math.exp %737 : vector<8x128xf32>
    %cst_305 = arith.constant 1.000000e+00 : f32
    %739 = vector.broadcast %cst_305 : f32 to vector<8x128xf32>
    %740 = arith.addf %739, %738 : vector<8x128xf32>
    %741 = arith.divf %739, %740 : vector<8x128xf32>
    %cst_306 = arith.constant 2.000000e+00 : f32
    %742 = vector.broadcast %cst_306 : f32 to vector<8x128xf32>
    %743 = arith.mulf %742, %741 : vector<8x128xf32>
    %cst_307 = arith.constant 1.000000e+00 : f32
    %744 = vector.broadcast %cst_307 : f32 to vector<8x128xf32>
    %745 = arith.subf %743, %744 : vector<8x128xf32>
    %746 = arith.select %22, %745, %741 : vector<8x128xi1>, vector<8x128xf32>
    %c96_i32_308 = arith.constant 96 : i32
    %747 = tpu.dynamic_rotate %746 by %c96_i32_308 dim 1 : vector<8x128xf32>, i32 -> vector<8x128xf32>
    %c64_i32_309 = arith.constant 64 : i32
    %748 = tpu.dynamic_rotate %746 by %c64_i32_309 dim 1 : vector<8x128xf32>, i32 -> vector<8x128xf32>
    %c32_i32_310 = arith.constant 32 : i32
    %749 = tpu.dynamic_rotate %746 by %c32_i32_310 dim 1 : vector<8x128xf32>, i32 -> vector<8x128xf32>
    %750 = arith.mulf %747, %674 : vector<8x128xf32>
    %751 = arith.mulf %746, %748 : vector<8x128xf32>
    %752 = arith.addf %750, %751 : vector<8x128xf32>
    %753 = math.tanh %752 : vector<8x128xf32>
    %754 = arith.mulf %749, %753 : vector<8x128xf32>
    %755 = vector.extract_strided_slice %701 {offsets = [4, 0], sizes = [1, 128], strides = [1, 1]} : vector<8x128xf32> to vector<1x128xf32>
    %756 = vector.shape_cast %755 : vector<1x128xf32> to vector<1x128xf32>
    %757 = vector.broadcast %756 : vector<1x128xf32> to vector<8x128xf32>
    %758 = tpu.concatenate %757, %729 in 1 : vector<8x128xf32>, vector<8x128xf32> -> vector<8x256xf32>
    %759 = arith.truncf %758 : vector<8x256xf32> to vector<8x256xbf16>
    %c0_311 = arith.constant 0 : index
    %c0_312 = arith.constant 0 : index
    %760 = vector.load %arg6[%c0_311, %c0_312] : memref<256x128xbf16, #tpu.memory_space<vmem>>, vector<256x128xbf16>
    %cst_313 = arith.constant dense<0.000000e+00> : vector<8x128xf32>
    %761 = tpu.matmul %759, %760, %cst_313 {dimension_numbers = #tpu.dot_dimension_numbers<[1], [0], [0], [1], [0, 0, 1, 1], [], []>} : vector<8x256xbf16>, vector<256x128xbf16>, vector<8x128xf32> -> vector<8x128xf32>
    %c0_314 = arith.constant 0 : index
    %c0_315 = arith.constant 0 : index
    %762 = vector.load %arg7[%c0_314, %c0_315] : memref<1x128xf32, #tpu.memory_space<vmem>>, vector<1x128xf32>
    %763 = vector.broadcast %762 : vector<1x128xf32> to vector<8x128xf32>
    %764 = arith.addf %761, %763 : vector<8x128xf32>
    %765 = arith.negf %764 : vector<8x128xf32>
    %766 = math.exp %765 : vector<8x128xf32>
    %cst_316 = arith.constant 1.000000e+00 : f32
    %767 = vector.broadcast %cst_316 : f32 to vector<8x128xf32>
    %768 = arith.addf %767, %766 : vector<8x128xf32>
    %769 = arith.divf %767, %768 : vector<8x128xf32>
    %cst_317 = arith.constant 2.000000e+00 : f32
    %770 = vector.broadcast %cst_317 : f32 to vector<8x128xf32>
    %771 = arith.mulf %770, %769 : vector<8x128xf32>
    %cst_318 = arith.constant 1.000000e+00 : f32
    %772 = vector.broadcast %cst_318 : f32 to vector<8x128xf32>
    %773 = arith.subf %771, %772 : vector<8x128xf32>
    %774 = arith.select %22, %773, %769 : vector<8x128xi1>, vector<8x128xf32>
    %c96_i32_319 = arith.constant 96 : i32
    %775 = tpu.dynamic_rotate %774 by %c96_i32_319 dim 1 : vector<8x128xf32>, i32 -> vector<8x128xf32>
    %c64_i32_320 = arith.constant 64 : i32
    %776 = tpu.dynamic_rotate %774 by %c64_i32_320 dim 1 : vector<8x128xf32>, i32 -> vector<8x128xf32>
    %c32_i32_321 = arith.constant 32 : i32
    %777 = tpu.dynamic_rotate %774 by %c32_i32_321 dim 1 : vector<8x128xf32>, i32 -> vector<8x128xf32>
    %778 = arith.mulf %775, %727 : vector<8x128xf32>
    %779 = arith.mulf %774, %776 : vector<8x128xf32>
    %780 = arith.addf %778, %779 : vector<8x128xf32>
    %781 = math.tanh %780 : vector<8x128xf32>
    %782 = arith.mulf %777, %781 : vector<8x128xf32>
    %783 = tpu.concatenate %729, %754 in 1 : vector<8x128xf32>, vector<8x128xf32> -> vector<8x256xf32>
    %784 = arith.truncf %783 : vector<8x256xf32> to vector<8x256xbf16>
    %c0_322 = arith.constant 0 : index
    %c0_323 = arith.constant 0 : index
    %785 = vector.load %arg8[%c0_322, %c0_323] : memref<256x128xbf16, #tpu.memory_space<vmem>>, vector<256x128xbf16>
    %cst_324 = arith.constant dense<0.000000e+00> : vector<8x128xf32>
    %786 = tpu.matmul %784, %785, %cst_324 {dimension_numbers = #tpu.dot_dimension_numbers<[1], [0], [0], [1], [0, 0, 1, 1], [], []>} : vector<8x256xbf16>, vector<256x128xbf16>, vector<8x128xf32> -> vector<8x128xf32>
    %c0_325 = arith.constant 0 : index
    %c0_326 = arith.constant 0 : index
    %787 = vector.load %arg9[%c0_325, %c0_326] : memref<1x128xf32, #tpu.memory_space<vmem>>, vector<1x128xf32>
    %788 = vector.broadcast %787 : vector<1x128xf32> to vector<8x128xf32>
    %789 = arith.addf %786, %788 : vector<8x128xf32>
    %790 = arith.negf %789 : vector<8x128xf32>
    %791 = math.exp %790 : vector<8x128xf32>
    %cst_327 = arith.constant 1.000000e+00 : f32
    %792 = vector.broadcast %cst_327 : f32 to vector<8x128xf32>
    %793 = arith.addf %792, %791 : vector<8x128xf32>
    %794 = arith.divf %792, %793 : vector<8x128xf32>
    %cst_328 = arith.constant 2.000000e+00 : f32
    %795 = vector.broadcast %cst_328 : f32 to vector<8x128xf32>
    %796 = arith.mulf %795, %794 : vector<8x128xf32>
    %cst_329 = arith.constant 1.000000e+00 : f32
    %797 = vector.broadcast %cst_329 : f32 to vector<8x128xf32>
    %798 = arith.subf %796, %797 : vector<8x128xf32>
    %799 = arith.select %22, %798, %794 : vector<8x128xi1>, vector<8x128xf32>
    %c96_i32_330 = arith.constant 96 : i32
    %800 = tpu.dynamic_rotate %799 by %c96_i32_330 dim 1 : vector<8x128xf32>, i32 -> vector<8x128xf32>
    %c64_i32_331 = arith.constant 64 : i32
    %801 = tpu.dynamic_rotate %799 by %c64_i32_331 dim 1 : vector<8x128xf32>, i32 -> vector<8x128xf32>
    %c32_i32_332 = arith.constant 32 : i32
    %802 = tpu.dynamic_rotate %799 by %c32_i32_332 dim 1 : vector<8x128xf32>, i32 -> vector<8x128xf32>
    %803 = arith.mulf %800, %752 : vector<8x128xf32>
    %804 = arith.mulf %799, %801 : vector<8x128xf32>
    %805 = arith.addf %803, %804 : vector<8x128xf32>
    %806 = math.tanh %805 : vector<8x128xf32>
    %807 = arith.mulf %802, %806 : vector<8x128xf32>
    %808 = tpu.concatenate %782, %807 in 1 : vector<8x128xf32>, vector<8x128xf32> -> vector<8x256xf32>
    %809 = arith.truncf %808 : vector<8x256xf32> to vector<8x256xbf16>
    %c0_333 = arith.constant 0 : index
    %c0_334 = arith.constant 0 : index
    %810 = vector.load %arg8[%c0_333, %c0_334] : memref<256x128xbf16, #tpu.memory_space<vmem>>, vector<256x128xbf16>
    %cst_335 = arith.constant dense<0.000000e+00> : vector<8x128xf32>
    %811 = tpu.matmul %809, %810, %cst_335 {dimension_numbers = #tpu.dot_dimension_numbers<[1], [0], [0], [1], [0, 0, 1, 1], [], []>} : vector<8x256xbf16>, vector<256x128xbf16>, vector<8x128xf32> -> vector<8x128xf32>
    %c0_336 = arith.constant 0 : index
    %c0_337 = arith.constant 0 : index
    %812 = vector.load %arg9[%c0_336, %c0_337] : memref<1x128xf32, #tpu.memory_space<vmem>>, vector<1x128xf32>
    %813 = vector.broadcast %812 : vector<1x128xf32> to vector<8x128xf32>
    %814 = arith.addf %811, %813 : vector<8x128xf32>
    %815 = arith.negf %814 : vector<8x128xf32>
    %816 = math.exp %815 : vector<8x128xf32>
    %cst_338 = arith.constant 1.000000e+00 : f32
    %817 = vector.broadcast %cst_338 : f32 to vector<8x128xf32>
    %818 = arith.addf %817, %816 : vector<8x128xf32>
    %819 = arith.divf %817, %818 : vector<8x128xf32>
    %cst_339 = arith.constant 2.000000e+00 : f32
    %820 = vector.broadcast %cst_339 : f32 to vector<8x128xf32>
    %821 = arith.mulf %820, %819 : vector<8x128xf32>
    %cst_340 = arith.constant 1.000000e+00 : f32
    %822 = vector.broadcast %cst_340 : f32 to vector<8x128xf32>
    %823 = arith.subf %821, %822 : vector<8x128xf32>
    %824 = arith.select %22, %823, %819 : vector<8x128xi1>, vector<8x128xf32>
    %c96_i32_341 = arith.constant 96 : i32
    %825 = tpu.dynamic_rotate %824 by %c96_i32_341 dim 1 : vector<8x128xf32>, i32 -> vector<8x128xf32>
    %c64_i32_342 = arith.constant 64 : i32
    %826 = tpu.dynamic_rotate %824 by %c64_i32_342 dim 1 : vector<8x128xf32>, i32 -> vector<8x128xf32>
    %c32_i32_343 = arith.constant 32 : i32
    %827 = tpu.dynamic_rotate %824 by %c32_i32_343 dim 1 : vector<8x128xf32>, i32 -> vector<8x128xf32>
    %828 = arith.mulf %825, %805 : vector<8x128xf32>
    %829 = arith.mulf %824, %826 : vector<8x128xf32>
    %830 = arith.addf %828, %829 : vector<8x128xf32>
    %831 = math.tanh %830 : vector<8x128xf32>
    %832 = arith.mulf %827, %831 : vector<8x128xf32>
    %833 = tpu.concatenate %272, %373, %474, %575, %676, %754, %807, %832 in 0 : vector<8x128xf32>, vector<8x128xf32>, vector<8x128xf32>, vector<8x128xf32>, vector<8x128xf32>, vector<8x128xf32>, vector<8x128xf32>, vector<8x128xf32> -> vector<64x128xf32>
    %c0_344 = arith.constant 0 : index
    %c0_345 = arith.constant 0 : index
    %834 = vector.load %arg10[%c0_344, %c0_345] : memref<128x128xf32, #tpu.memory_space<vmem>>, vector<128x128xf32>
    %cst_346 = arith.constant dense<0.000000e+00> : vector<64x128xf32>
    %835 = tpu.matmul %833, %834, %cst_346 {dimension_numbers = #tpu.dot_dimension_numbers<[1], [0], [0], [1], [0, 0, 1, 1], [], []>} : vector<64x128xf32>, vector<128x128xf32>, vector<64x128xf32> -> vector<64x128xf32>
    %c0_347 = arith.constant 0 : index
    %c0_348 = arith.constant 0 : index
    %836 = vector.load %arg11[%c0_347, %c0_348] : memref<1x128xf32, #tpu.memory_space<vmem>>, vector<1x128xf32>
    %837 = vector.broadcast %836 : vector<1x128xf32> to vector<64x128xf32>
    %838 = arith.addf %835, %837 : vector<64x128xf32>
    %c0_349 = arith.constant 0 : index
    %c0_350 = arith.constant 0 : index
    %839 = vector.load %arg12[%c0_349, %c0_350] : memref<64x128xf32, #tpu.memory_space<vmem>>, vector<64x128xf32>
    tpu.vector_store %arg12[%c0_349, %c0_350], %838 {strides = array<i32>} : memref<64x128xf32, #tpu.memory_space<vmem>>, vector<64x128xf32>,
    return
  }
}

</mosaic_0001>

<bundles_post_ra>
// kernel: forward.1
= control target key start
LH: loop header
LB: loop body
LE: loop exit
PB: predicated region body
PF: predicated region fallthrough
CT: control target
= control target key end

     0   :  { %17 = vsyncpa [#allocation3], 0  ;;  %s5827_s0 = inlined_call_operand.vmem [shape: s32[64,1], index: 0, kind: input, shape index: {}]   ;;  %s5828_s1 = inlined_call_operand.hbm [shape: f32[128,128], index: 1, kind: input, shape index: {}]   ;;  %s5829_s2 = inlined_call_operand.vmem [shape: f32[1,128], index: 2, kind: input, shape index: {}]   ;;  %s5830_s3 = inlined_call_operand.vmem [shape: bf16[128,128], index: 3, kind: input, shape index: {}]   ;;  %s5831_s4 = inlined_call_operand.hbm [shape: bf16[256,128], index: 4, kind: input, shape index: {}]   ;;  %s5832_s5 = inlined_call_operand.vmem [shape: f32[1,128], index: 5, kind: input, shape index: {}]   ;;  %s5833_s6 = inlined_call_operand.hbm [shape: bf16[256,128], index: 6, kind: input, shape index: {}]   ;;  %s5834_s7 = inlined_call_operand.vmem [shape: f32[1,128], index: 7, kind: input, shape index: {}]   ;;  %s5835_s8 = inlined_call_operand.hbm [shape: bf16[256,128], index: 8, kind: input, shape index: {}]   ;;  %s5836_s9 = inlined_call_operand.vmem [shape: f32[1,128], index: 9, kind: input, shape index: {}]   ;;  %s5837_s10 = inlined_call_operand.hbm [shape: f32[128,128], index: 10, kind: input, shape index: {}]   ;;  %s5838_s11 = inlined_call_operand.vmem [shape: f32[1,128], index: 11, kind: input, shape index: {}]   ;;  %s5839_s12 = inlined_call_operand.vmem [shape: f32[64,128], index: 12, kind: output, shape index: {}]  }
   0x1   :  { %18 = vsyncpa [#allocation5], 0 }
   0x2   :  { %19 = vsyncpa [#allocation8], 0  ;;  %s4437_s21 = smov [#allocation4]  }
   0x3   :  { %s43_s22 = sshll.u32 %s4437_s21, 4  ;;  %s44_s22 = int_to_ptr.vmem [resolvable:$true] %s43_s22 }
   0x4   :  { %s4339_s23 = scalar_lea.vmem %s44_s22, 2048  ;;  %p4344_p1 = scmp.lt.s32.totalorder %s44_s22, %s44_s22 }
   0x5   :  { %p4340_p0 = scmp.ne.s32.totalorder %s44_s22, %s4339_s23  ;;  %p4345_p2 = scmp.lt.s32.totalorder %s4339_s23, %s4339_s23 }
   0x7   :  { %p4346_p3 = por %p4345_p2, %p4344_p1 }
   0x9   :  { %p4347_p4 = pnand %p4346_p3, %p4340_p0 }
   0xb   :  { %4350 = shalt.err (!%p4347_p4)
}
   0xc   :  { %s4438_s24 = smov 64   ;;  %s4439_s25 = smov 4  }
   0xd   :  { %49 = dma.hbm_to_vmem [thread:$0]  %s5831_s4, 2048, %s44_s22, [#allocation5], %s4438_s24, %s4438_s24, %s4439_s25  }
   0xe   :  { %s4440_s28 = smov [#allocation7]   ;;  %s4441_s30 = smov [#allocation2]  }
   0xf   :  { %s71_s29 = sshll.u32 %s4440_s28, 4  ;;  %s27_s13 = sshll.u32 %s4441_s30, 4  ;;  %s72_s29 = int_to_ptr.vmem [resolvable:$true] %s71_s29  ;;  %s28_s13 = int_to_ptr.vmem [resolvable:$true] %s27_s13 }
  0x10   :  { %s4359_s14 = scalar_lea.vmem %s72_s29, 2048  ;;  %p4364_p6 = scmp.lt.s32.totalorder %s72_s29, %s72_s29 }
  0x11   :  { %p4360_p5 = scmp.ne.s32.totalorder %s72_s29, %s4359_s14  ;;  %p4365_p7 = scmp.lt.s32.totalorder %s4359_s14, %s4359_s14 }
  0x13   :  { %p4366_p8 = por %p4365_p7, %p4364_p6 }
  0x15   :  { %p4367_p9 = pnand %p4366_p8, %p4360_p5 }
  0x17   :  { %4370 = shalt.err (!%p4367_p9)
}
  0x18   :  { %77 = dma.hbm_to_vmem [thread:$0]  %s5835_s8, 2048, %s72_s29, [#allocation8], %s4438_s24, %s4438_s24, %s4439_s25  }
  0x19   :  { %s4379_s4 = scalar_lea.vmem %s28_s13, 2048  ;;  %p4384_p11 = scmp.lt.s32.totalorder %s28_s13, %s28_s13 }
  0x1a   :  { %p4380_p10 = scmp.ne.s32.totalorder %s28_s13, %s4379_s4  ;;  %p4385_p12 = scmp.lt.s32.totalorder %s4379_s4, %s4379_s4 }
  0x1c   :  { %p4386_p13 = por %p4385_p12, %p4384_p11 }
  0x1e   :  { %p4387_p0 = pnand %p4386_p13, %p4380_p10 }
  0x20   :  { %4390 = shalt.err (!%p4387_p0)
}
  0x21   :  { %s4442_s17 = smov 128   ;;  %s4443_s18 = smov 8  }
  0x22   :  { %33 = dma.hbm_to_vmem [thread:$0]  %s5828_s1, 2048, %s28_s13, [#allocation3], %s4442_s17, %s4442_s17, %s4443_s18  }
  0x23   :  { %s4444_s21 = smov [#allocation6]   ;;  %s4445_s23 = smov [#allocation9]  }
  0x24   :  { %s57_s22 = sshll.u32 %s4444_s21, 4  ;;  %s85_s26 = sshll.u32 %s4445_s23, 4  ;;  %s58_s22 = int_to_ptr.vmem [resolvable:$true] %s57_s22  ;;  %s86_s26 = int_to_ptr.vmem [resolvable:$true] %s85_s26 }
  0x25   :  { %s4399_s8 = scalar_lea.vmem %s58_s22, 2048  ;;  %p4404_p2 = scmp.lt.s32.totalorder %s58_s22, %s58_s22 }
  0x26   :  { %p4400_p1 = scmp.ne.s32.totalorder %s58_s22, %s4399_s8  ;;  %p4405_p3 = scmp.lt.s32.totalorder %s4399_s8, %s4399_s8 }
  0x28   :  { %p4406_p4 = por %p4405_p3, %p4404_p2 }
  0x2a   :  { %p4407_p5 = pnand %p4406_p4, %p4400_p1 }
  0x2c   :  { %4410 = shalt.err (!%p4407_p5)
}
  0x2d   :  { %63 = dma.hbm_to_vmem [thread:$0]  %s5833_s6, 2048, %s58_s22, [#allocation5], %s4438_s24, %s4438_s24, %s4439_s25  }
  0x2e   :  { %s4419_s1 = scalar_lea.vmem %s86_s26, 2048  ;;  %p4424_p7 = scmp.lt.s32.totalorder %s86_s26, %s86_s26 }
  0x2f   :  { %p4420_p6 = scmp.ne.s32.totalorder %s86_s26, %s4419_s1  ;;  %p4425_p8 = scmp.lt.s32.totalorder %s4419_s1, %s4419_s1 }
  0x31   :  { %p4426_p9 = por %p4425_p8, %p4424_p7 }
  0x33   :  { %p4427_p10 = pnand %p4426_p9, %p4420_p6 }
  0x35   :  { %4430 = shalt.err (!%p4427_p10)
}
  0x36   :  { %91 = dma.hbm_to_vmem [thread:$0]  %s5837_s10, 2048, %s86_s26, [#allocation8], %s4442_s17, %s4442_s17, %s4443_s18  }
  0x37   :  { %4431 = dma.done.wait [#allocation3], 2048  }
  0x38   :  { %4432 = vsyncadd [#allocation3], 4294965248 }
  0x39   :  { %4433 = dma.done.wait [#allocation5], 4096  }
  0x3a   :  { %4434 = vsyncadd [#allocation5], 4294963200 }
  0x3b   :  { %4435 = dma.done.wait [#allocation8], 4096  }
  0x3c   :  { %4436 = vsyncadd [#allocation8], 4294963200  ;;  %v4446_v0 = vmov 0   ;;  %v5840_v1 = vmov 0.0   ;;  %vm4448_vm0 = vmmov 0   ;;  %v110_v2 = vld [vmem:[%s5827_s0] sm:$0xff]  ;;  %v118_v31 = vlaneseq }
  0x3d   :  { %3963 = vset.pattern.permute.xlu0 %v4446_v0  ;;  %3743 = vmatprep.subr.bf16.mxu1 %v5840_v1  ;;  %v111_v3 = vld [vmem:[%s5827_s0 + $0x8] sm:$0xff]  ;;  %v4556_v4 = vld [vmem:[%s5830_s3 + $0x38] sm:$0xff]   ;;  %v182_v6 = vld [vmem:[#allocation2 + $0x70] sm:$0xff]  ;;  %v4449_v34 = vmov 1.0   ;;  %s4450_s16 = smov 32   ;;  %s4451_s4 = smov 96  }
  0x3e   :  { %3964 = vset.pattern.permute.xlu1 %v4446_v0  ;;  %3759 = vmatprep.mubr.msk.bf16.mxu1 %vm4448_vm0, %v5840_v1  ;;  %v183_v5 = vld [vmem:[#allocation2 + $0x78] sm:$0xff]  ;;  %v4562_v7 = vld [vmem:[%s5830_s3 + $0x30] sm:$0xff]   ;;  %v181_v8 = vld [vmem:[#allocation2 + $0x68] sm:$0xff]  ;;  %v4620_v32 = vand.u32 127, %v118_v31 }
  0x3f   :  { %121 = vperm.xlu0 %3963, %v110_v2   ;;  %3699 = vmatprep.subr.mxu0 %v183_v5  ;;  %v112_v9 = vld [vmem:[%s5827_s0 + $0x10] sm:$0xff]  ;;  %v180_v10 = vld [vmem:[#allocation2 + $0x60] sm:$0xff]  ;;  %v4571_v11 = vld [vmem:[%s5830_s3 + $0x28] sm:$0xff]  }
  0x40   :  { %3744 = vmatpush3.bf16.msra.mxu1 %v4556_v4  ;;  %3700 = vmatpush3.msra.mxu0 %v183_v5  ;;  %v179_v12 = vld [vmem:[#allocation2 + $0x58] sm:$0xff]  ;;  %v114_v13 = vld [vmem:[%s5827_s0 + $0x20] sm:$0xff]  ;;  %v178_v14 = vld [vmem:[#allocation2 + $0x50] sm:$0xff]  ;;  %vm296_vm4 = vcmp.ge.s32.totalorder %v4620_v32, 64  ;;  %vm297_vm5 = vcmp.lt.s32.totalorder %v4620_v32, 96 }
  0x41   :  { %3701 = vmatprep.subr.mxu0 %v182_v6  ;;  %3745 = vmatprep.subr.bf16.mxu1 %v5840_v1  ;;  %v4582_v15 = vld [vmem:[%s5830_s3 + $0x20] sm:$0xff]   ;;  %v177_v16 = vld [vmem:[#allocation2 + $0x48] sm:$0xff]  ;;  %v116_v17 = vld [vmem:[%s5827_s0 + $0x30] sm:$0xff] }
  0x42   :  { %3702 = vmatpush3.msra.mxu0 %v182_v6  ;;  %v176_v18 = vld [vmem:[#allocation2 + $0x40] sm:$0xff]  ;;  %v4591_v19 = vld [vmem:[%s5830_s3 + $0x18] sm:$0xff]   ;;  %v174_v21 = vld [vmem:[#allocation2 + $0x30] sm:$0xff] }
  0x43   :  { %124 = vperm.xlu0 %3963, %v111_v3   ;;  %3703 = vmatprep.subr.mxu0 %v181_v8  ;;  %v175_v20 = vld [vmem:[#allocation2 + $0x38] sm:$0xff]  ;;  %v4598_v22 = vld [vmem:[%s5830_s3 + $0x10] sm:$0xff]   ;;  %v173_v23 = vld [vmem:[#allocation2 + $0x28] sm:$0xff] }
  0x44   :  { %3746 = vmatpush3.bf16.msra.mxu1 %v4562_v7  ;;  %3704 = vmatpush3.msra.mxu0 %v181_v8  ;;  %v172_v24 = vld [vmem:[#allocation2 + $0x20] sm:$0xff]  ;;  %v4605_v25 = vld [vmem:[%s5830_s3 + $0x8] sm:$0xff]   ;;  %v171_v26 = vld [vmem:[#allocation2 + $0x18] sm:$0xff] }
  0x45   :  { %3705 = vmatprep.subr.mxu0 %v180_v10  ;;  %3747 = vmatprep.subr.bf16.mxu1 %v5840_v1  ;;  %v170_v27 = vld [vmem:[#allocation2 + $0x10] sm:$0xff]  ;;  %v4612_v28 = vld [vmem:[%s5830_s3] sm:$0xff]   ;;  %v169_v29 = vld [vmem:[#allocation2 + $0x8] sm:$0xff] }
  0x46   :  { %3706 = vmatpush3.msra.mxu0 %v180_v10  ;;  %v168_v30 = vld [vmem:[#allocation2] sm:$0xff]  ;;  %v4644_v41 = vld [vmem:[#allocation4 + $0x78] sm:$0xff]   ;;  %v4648_v43 = vld [vmem:[#allocation4 + $0x70] sm:$0xff]  }
  0x47   :  { %127 = vperm.xlu0 %3963, %v112_v9   ;;  %3707 = vmatprep.subr.mxu0 %v179_v12  ;;  %v4646_v42 = vld [vmem:[#allocation4 + $0x38] sm:$0xff]   ;;  %v4652_v44 = vld [vmem:[#allocation4 + $0x30] sm:$0xff]   ;;  %v4661_v46 = vld [vmem:[%s5829_s2] ss:$0 sm:$0xff] }
  0x48   :  { %3748 = vmatpush3.bf16.msra.mxu1 %v4571_v11  ;;  %3708 = vmatpush3.msra.mxu0 %v179_v12  ;;  %v4664_v53 = vld [vmem:[#allocation4 + $0x68] sm:$0xff]   ;;  %v4670_v55 = vld [vmem:[#allocation4 + $0x60] sm:$0xff]   ;;  %v4678_v59 = vld [vmem:[#allocation4 + $0x58] sm:$0xff]   ;;  %v4452_v12 = vmov 0.0|0.0  }
  0x49   :  { %3709 = vmatprep.subr.mxu0 %v178_v14  ;;  %3749 = vmatprep.subr.bf16.mxu1 %v5840_v1  ;;  %v4666_v54 = vld [vmem:[#allocation4 + $0x28] sm:$0xff]   ;;  %v4672_v56 = vld [vmem:[#allocation4 + $0x20] sm:$0xff]   ;;  %v4680_v60 = vld [vmem:[#allocation4 + $0x18] sm:$0xff]  }
  0x4a   :  { %3710 = vmatpush3.msra.mxu0 %v178_v14  ;;  %v4682_v61 = vld [vmem:[#allocation4 + $0x50] sm:$0xff]   ;;  %vm4684_vm6 = vmand %vm296_vm4, %vm297_vm5  ;;  %v4698_v3 = vld [vmem:[#allocation4 + $0x48] sm:$0xff]  }
  0x4b   :  { %133 = vperm.xlu0 %3963, %v114_v13   ;;  %3711 = vmatprep.subr.mxu0 %v177_v16  ;;  %v4701_v5 = vld [vmem:[#allocation4 + $0x8] sm:$0xff]   ;;  %v113_v6 = vld [vmem:[%s5827_s0 + $0x18] sm:$0xff]  ;;  %v4708_v8 = vld [vmem:[#allocation4 + $0x40] sm:$0xff]  }
  0x4c   :  { %3750 = vmatpush3.bf16.msra.mxu1 %v4582_v15  ;;  %3712 = vmatpush3.msra.mxu0 %v177_v16  ;;  %v4710_v9 = vld [vmem:[#allocation4] sm:$0xff]   ;;  %v115_v10 = vld [vmem:[%s5827_s0 + $0x28] sm:$0xff]  ;;  %v117_v13 = vld [vmem:[%s5827_s0 + $0x38] sm:$0xff] }
  0x4d   :  { %3713 = vmatprep.subr.mxu0 %v176_v18  ;;  %3751 = vmatprep.subr.bf16.mxu1 %v5840_v1 }
  0x4e   :  { %3714 = vmatpush3.msra.mxu0 %v176_v18 }
  0x4f   :  { %139 = vperm.xlu0 %3963, %v116_v17   ;;  %3715 = vmatprep.subr.mxu0 %v175_v20 }
  0x50   :  { %3752 = vmatpush3.bf16.msra.mxu1 %v4591_v19  ;;  %3716 = vmatpush3.msra.mxu0 %v175_v20 }
  0x51   :  { %3717 = vmatprep.subr.mxu0 %v174_v21  ;;  %3753 = vmatprep.subr.bf16.mxu1 %v5840_v1 }
  0x52   :  { %3718 = vmatpush3.msra.mxu0 %v174_v21 }
  0x53   :  { %3719 = vmatprep.subr.mxu0 %v173_v23 }
  0x54   :  { %3754 = vmatpush3.bf16.msra.mxu1 %v4598_v22  ;;  %3720 = vmatpush3.msra.mxu0 %v173_v23 }
  0x55   :  { %3721 = vmatprep.subr.mxu0 %v172_v24  ;;  %3755 = vmatprep.subr.bf16.mxu1 %v5840_v1 }
  0x56   :  { %3722 = vmatpush3.msra.mxu0 %v172_v24 }
  0x57   :  { %3723 = vmatprep.subr.mxu0 %v171_v26 }
  0x58   :  { %3756 = vmatpush3.bf16.msra.mxu1 %v4605_v25  ;;  %3724 = vmatpush3.msra.mxu0 %v171_v26 }
  0x59   :  { %3725 = vmatprep.subr.mxu0 %v170_v27  ;;  %3757 = vmatprep.subr.bf16.mxu1 %v5840_v1 }
  0x5a   :  { %3726 = vmatpush3.msra.mxu0 %v170_v27 }
  0x5b   :  { %3727 = vmatprep.subr.mxu0 %v169_v29 }
  0x5c   :  { %3758 = vmatpush3.bf16.msra.mxu1 %v4612_v28  ;;  %3728 = vmatpush3.msra.mxu0 %v169_v29 }
  0x5d   :  { %3729 = vmatprep.subr.mxu0 %v168_v30  ;;  %3093 = vmatprep.subr.bf16.mxu1 %v4644_v41 }
  0x5e   :  { %3730 = vmatpush3.msra.mxu0 %v168_v30 }
  0x5f   :  { %3760 = vmatmul.mubr.bf16.vlgmr.msra.gmra.mxu1 %v4446_v0  ;;  %3763 = vmatprep.subr.bf16.mxu0 %v5840_v1  ;;  %v4690_v0 = vld [vmem:[#allocation4 + $0x10] sm:$0xff]  }
  0x60   :  { %3094 = vmatpush3.bf16.msra.mxu1 %v4646_v42  ;;  %654 = vmatprep.mubr.bf16.mxu1 %v4452_v12 }
  0x61   :  { %3095 = vmatprep.subr.bf16.mxu1 %v4648_v43 }
  0x64   :  { %3096 = vmatpush3.bf16.msra.mxu1 %v4652_v44 }
  0x65   :  { %3097 = vmatprep.subr.bf16.mxu1 %v4664_v53 }
  0x68   :  { %3098 = vmatpush3.bf16.msra.mxu1 %v4666_v54 }
  0x69   :  { %3099 = vmatprep.subr.bf16.mxu1 %v4670_v55 }
  0x6c   :  { %3100 = vmatpush3.bf16.msra.mxu1 %v4672_v56 }
  0x6d   :  { %3101 = vmatprep.subr.bf16.mxu1 %v4678_v59 }
  0x70   :  { %3102 = vmatpush3.bf16.msra.mxu1 %v4680_v60 }
  0x71   :  { %3103 = vmatprep.subr.bf16.mxu1 %v4682_v61 }
  0x74   :  { %3104 = vmatpush3.bf16.msra.mxu1 %v4690_v0 }
  0x75   :  { %3105 = vmatprep.subr.bf16.mxu1 %v4698_v3 }
  0x78   :  { %3106 = vmatpush3.bf16.msra.mxu1 %v4701_v5 }
  0x79   :  { %3107 = vmatprep.subr.bf16.mxu1 %v4708_v8 }
  0x7c   :  { %3108 = vmatpush3.bf16.msra.mxu1 %v4710_v9 }
  0x7d   :  { %3124 = vmatprep.subr.bf16.mxu1 %v4644_v41 }
  0xba   :  { %v122_v33 = vpop.permute.xlu0 %121 }
  0xbb   :  { %vm144_vm1 = vcmp.eq.s32.totalorder %v122_v33, %v4620_v32 }
  0xbc   :  { %3731 = vmatprep.mubr.msk.f32.mxu0 %vm144_vm1, %v4449_v34 }
  0xbe   :  { %v125_v35 = vpop.permute.xlu0 %124 }
  0xbf   :  { %vm145_vm2 = vcmp.eq.s32.totalorder %v125_v35, %v4620_v32 }
  0xc0   :  { %3732 = vmatmul.mubr.msk.f32.vlgmr.msra.gmra.mxu0 %vm145_vm2, %v4449_v34 }
  0xc1   :  { %3764 = vmatpush3.bf16.msra.mxu0 %v4556_v4 }
  0xc2   :  { %v128_v36 = vpop.permute.xlu0 %127  ;;  %3765 = vmatprep.subr.bf16.mxu0 %v5840_v1 }
  0xc3   :  { %vm146_vm3 = vcmp.eq.s32.totalorder %v128_v36, %v4620_v32 }
  0xc4   :  { %3734 = vmatprep.mubr.msk.f32.mxu0 %vm146_vm3, %v4449_v34 }
  0xc5   :  { %3766 = vmatpush3.bf16.msra.mxu0 %v4562_v7 }
  0xc6   :  { %3767 = vmatprep.subr.bf16.mxu0 %v5840_v1  ;;  %v134_v21 = vpop.permute.xlu0 %133 }
  0xc7   :  { %vm148_vm8 = vcmp.eq.s32.totalorder %v134_v21, %v4620_v32 }
  0xc9   :  { %3768 = vmatpush3.bf16.msra.mxu0 %v4571_v11 }
  0xca   :  { %3769 = vmatprep.subr.bf16.mxu0 %v5840_v1  ;;  %v140_v24 = vpop.permute.xlu0 %139 }
  0xcb   :  { %vm150_vm10 = vcmp.eq.s32.totalorder %v140_v24, %v4620_v32 }
  0xcd   :  { %3770 = vmatpush3.bf16.msra.mxu0 %v4582_v15 }
  0xce   :  { %3771 = vmatprep.subr.bf16.mxu0 %v5840_v1 }
  0xd1   :  { %3772 = vmatpush3.bf16.msra.mxu0 %v4591_v19 }
  0xd2   :  { %3773 = vmatprep.subr.bf16.mxu0 %v5840_v1 }
  0xd5   :  { %3774 = vmatpush3.bf16.msra.mxu0 %v4598_v22 }
  0xd6   :  { %3775 = vmatprep.subr.bf16.mxu0 %v5840_v1 }
  0xd9   :  { %3776 = vmatpush3.bf16.msra.mxu0 %v4605_v25 }
  0xda   :  { %3777 = vmatprep.subr.bf16.mxu0 %v5840_v1 }
  0xdd   :  { %3778 = vmatpush3.bf16.msra.mxu0 %v4612_v28 }
  0xde   :  { %3783 = vmatprep.subr.bf16.mxu0 %v5840_v1 }
 0x11f   :  { %v397_v37 = vpop.f32.mrf.mxu1 }
 0x121   :  { %v3761_v38 = vpop.f32.mrf.mxu1 }
 0x123   :  { %v400_v39 = vpop.f32.mrf.mxu1 }
 0x125   :  { %v3762_v40 = vpop.f32.mrf.mxu1 }
 0x180   :  { %v4656_v45 = vpop.f32.mrf.mxu0 }
 0x182   :  { %v257_v47 = vpop.f32.mrf.mxu0 }
 0x183   :  { %v258_v48 = vadd.f32 %v4661_v46, %v257_v47  ;;  %v4785_v47 = vld [vmem:[%s5832_s5] ss:$0 sm:$0xff] }
 0x184   :  { %5865 = vst [vmem:[#allocation17_spill] sm:$0xff] %v4785_v47 }
 0x185   :  { %v403_v49 = vadd.f32 %v397_v37, %v258_v48 }
 0x187   :  { %v2935_v50 = vmul.f32 -1.442695, %v403_v49  ;;  %v263_v49 = vadd.f32 %v4656_v45, %v4661_v46 }
 0x189   :  { %4021 = vpow2.f32 %v2935_v50 }
 0x196   :  { %v4022_v51 = vpop.eup %4021 }
 0x197   :  { %v407_v52 = vadd.f32 1.0, %v4022_v51 }
 0x199   :  { %4023 = vrcp.f32 %v407_v52 }
 0x1a6   :  { %v4024_v57 = vpop.eup %4023 }
 0x1a7   :  { %v410_v58 = vmul.f32 2.0, %v4024_v57 }
 0x1a9   :  { %v2936_v63 = vadd.f32 -1.0, %v410_v58 }
 0x1ab   :  { %v412_v2 = vsel %vm4684_vm6, %v2936_v63, %v4024_v57 }
 0x1ac   :  { %417 = vrot.lane.b32.xlu0 %v412_v2, %s4450_s16  ;;  %413 = vrot.lane.b32.xlu1 %v412_v2, %s4451_s4 }
 0x1b0   :  { %415 = vrot.lane.b32.xlu1 %v412_v2, %s4438_s24 }
 0x1b4   :  { %130 = vperm.xlu1 %3964, %v113_v6  }
 0x1b8   :  { %136 = vperm.xlu1 %3964, %v115_v10  }
 0x1bc   :  { %142 = vperm.xlu1 %3964, %v117_v13  }
 0x21e   :  { %v414_v14 = vpop.permute.xlu1 %413  ;;  %v418_v29 = vpop.permute.xlu0 %417 }
 0x21f   :  { %v419_v17 = vmul.f32 0.0, %v414_v14 }
 0x222   :  { %v416_v16 = vpop.permute.xlu1 %415 }
 0x223   :  { %v420_v18 = vmul.f32 %v416_v16, %v412_v2 }
 0x225   :  { %v4722_v20 = vadd.f32 %v420_v18, %v419_v17 }
 0x227   :  { %4025 = vtanh.f32 %v4722_v20 }
 0x22f   :  { %v131_v23 = vpop.permute.xlu1 %130 }
 0x230   :  { %vm147_vm7 = vcmp.eq.s32.totalorder %v131_v23, %v4620_v32 }
 0x231   :  { %3735 = vmatmul.mubr.msk.f32.gmra.mxu0 %vm147_vm7, %v4449_v34 }
 0x232   :  { %3737 = vmatprep.mubr.msk.f32.mxu0 %vm148_vm8, %v4449_v34 }
 0x233   :  { %v137_v26 = vpop.permute.xlu1 %136 }
 0x234   :  { %v4026_v27 = vpop.eup %4025  ;;  %vm149_vm9 = vcmp.eq.s32.totalorder %v137_v26, %v4620_v32 }
 0x235   :  { %3738 = vmatmul.mubr.msk.f32.gmra.mxu0 %vm149_vm9, %v4449_v34  ;;  %v423_v30 = vmul.f32 %v4026_v27, %v418_v29 }
 0x236   :  { %3740 = vmatprep.mubr.msk.f32.mxu0 %vm150_vm10, %v4449_v34 }
 0x237   :  { %v143_v33 = vpop.permute.xlu1 %142  ;;  %v424_v35 = vpack.c.bf16 %v423_v30, %v423_v30 }
 0x238   :  { %vm151_vm11 = vcmp.eq.s32.totalorder %v143_v33, %v4620_v32 }
 0x239   :  { %3741 = vmatmul.mubr.msk.f32.gmra.mxu0 %vm151_vm11, %v4449_v34  ;;  %655 = vmatmul.mubr.bf16.vlgmr.msra.gmra.mxu1 %v424_v35 }
 0x23a   :  { %3779 = vmatprep.mubr.msk.bf16.mxu0 %vm4448_vm0, %v5840_v1  ;;  %3125 = vmatpush3.bf16.msra.mxu1 %v4646_v42 }
 0x23b   :  { %3126 = vmatprep.subr.bf16.mxu1 %v4648_v43 }
 0x23d   :  { %3780 = vmatmul.mubr.bf16.vlgmr.msra.gmra.mxu0 %v424_v35  ;;  %v4800_v35 = vld [vmem:[#allocation6 + $0x78] sm:$0xff]  }
 0x23e   :  { %3784 = vmatpush3.bf16.msra.mxu0 %v4556_v4  ;;  %3127 = vmatpush3.bf16.msra.mxu1 %v4652_v44  ;;  %5866 = vst [vmem:[#allocation18_spill] sm:$0xff] %v4800_v35 }
 0x23f   :  { %3785 = vmatprep.subr.bf16.mxu0 %v5840_v1  ;;  %3128 = vmatprep.subr.bf16.mxu1 %v4664_v53 }
 0x240   :  { %3799 = vmatprep.mubr.msk.bf16.mxu0 %vm4448_vm0, %v5840_v1 }
 0x242   :  { %3786 = vmatpush3.bf16.msra.mxu0 %v4562_v7  ;;  %3129 = vmatpush3.bf16.msra.mxu1 %v4666_v54 }
 0x243   :  { %3787 = vmatprep.subr.bf16.mxu0 %v5840_v1  ;;  %3130 = vmatprep.subr.bf16.mxu1 %v4670_v55 }
 0x246   :  { %3788 = vmatpush3.bf16.msra.mxu0 %v4571_v11  ;;  %3131 = vmatpush3.bf16.msra.mxu1 %v4672_v56 }
 0x247   :  { %3789 = vmatprep.subr.bf16.mxu0 %v5840_v1  ;;  %3132 = vmatprep.subr.bf16.mxu1 %v4678_v59 }
 0x24a   :  { %3790 = vmatpush3.bf16.msra.mxu0 %v4582_v15  ;;  %3133 = vmatpush3.bf16.msra.mxu1 %v4680_v60 }
 0x24b   :  { %3791 = vmatprep.subr.bf16.mxu0 %v5840_v1  ;;  %3134 = vmatprep.subr.bf16.mxu1 %v4682_v61 }
 0x24e   :  { %3792 = vmatpush3.bf16.msra.mxu0 %v4591_v19  ;;  %3135 = vmatpush3.bf16.msra.mxu1 %v4690_v0 }
 0x24f   :  { %3793 = vmatprep.subr.bf16.mxu0 %v5840_v1  ;;  %3136 = vmatprep.subr.bf16.mxu1 %v4698_v3 }
 0x252   :  { %3794 = vmatpush3.bf16.msra.mxu0 %v4598_v22  ;;  %3137 = vmatpush3.bf16.msra.mxu1 %v4701_v5 }
 0x253   :  { %3795 = vmatprep.subr.bf16.mxu0 %v5840_v1  ;;  %3138 = vmatprep.subr.bf16.mxu1 %v4708_v8 }
 0x256   :  { %3796 = vmatpush3.bf16.msra.mxu0 %v4605_v25  ;;  %3139 = vmatpush3.bf16.msra.mxu1 %v4710_v9 }
 0x257   :  { %3797 = vmatprep.subr.bf16.mxu0 %v5840_v1  ;;  %3803 = vmatprep.subr.bf16.mxu1 %v5840_v1 }
 0x25a   :  { %3798 = vmatpush3.bf16.msra.mxu0 %v4612_v28 }
 0x25b   :  { %3146 = vmatprep.subr.bf16.mxu0 %v4800_v35 }
 0x2f1   :  { %v4770_v32 = vpop.f32.mrf.mxu0 }
 0x2f3   :  { %v4772_v34 = vpop.f32.mrf.mxu0 }
 0x2f5   :  { %v4774_v36 = vpop.f32.mrf.mxu0 }
 0x2f6   :  { %5861 = vst [vmem:[#allocation13_spill] sm:$0xff] %v4774_v36 }
 0x2f7   :  { %v4776_v37 = vpop.f32.mrf.mxu0 }
 0x2f8   :  { %5862 = vst [vmem:[#allocation14_spill] sm:$0xff] %v4776_v37 }
 0x2f9   :  { %v4778_v38 = vpop.f32.mrf.mxu0  ;;  %v3109_v39 = vpop.f32.mrf.mxu1 }
 0x2fa   :  { %5863 = vst [vmem:[#allocation15_spill] sm:$0xff] %v4778_v38  ;;  %v4987_v38 = vld [vmem:[#allocation7] sm:$0xff]  }
 0x2fb   :  { %v4780_v40 = vpop.f32.mrf.mxu0  ;;  %v3110_v48 = vpop.f32.mrf.mxu1 }
 0x2fc   :  { %5864 = vst [vmem:[#allocation16_spill] sm:$0xff] %v4780_v40  ;;  %v3111_v50 = vadd.f32 %v3110_v48, %v3109_v39 }
 0x2fd   :  { %v459_v51 = vpop.f32.mrf.mxu0  ;;  %v3112_v52 = vpop.f32.mrf.mxu1 }
 0x2fe   :  { %v657_v57 = vadd.f32 %v3111_v50, %v4785_v47  ;;  %v465_v58 = vadd.f32 %v459_v51, %v263_v49 }
 0x2ff   :  { %v3781_v63 = vpop.f32.mrf.mxu0  ;;  %v3113_v2 = vpop.f32.mrf.mxu1 }
 0x300   :  { %v2956_v6 = vmul.f32 -1.442695, %v657_v57  ;;  %v2937_v10 = vmul.f32 -1.442695, %v465_v58 }
 0x301   :  { %v462_v13 = vpop.f32.mrf.mxu0 }
 0x302   :  { %4027 = vpow2.f32 %v2956_v6 }
 0x303   :  { %4029 = vpow2.f32 %v2937_v10  ;;  %v3782_v14 = vpop.f32.mrf.mxu0 }
 0x30f   :  { %v4028_v16 = vpop.eup %4027 }
 0x310   :  { %v4030_v17 = vpop.eup %4029  ;;  %v665_v18 = vadd.f32 1.0, %v4028_v16 }
 0x311   :  { %v469_v21 = vadd.f32 1.0, %v4030_v17 }
 0x312   :  { %4031 = vrcp.f32 %v665_v18 }
 0x313   :  { %4033 = vrcp.f32 %v469_v21  ;;  %v4810_v21 = vld [vmem:[#allocation6 + $0x38] sm:$0xff]  }
 0x31f   :  { %v4032_v45 = vpop.eup %4031 }
 0x320   :  { %v4034_v23 = vpop.eup %4033  ;;  %v668_v24 = vmul.f32 2.0, %v4032_v45 }
 0x321   :  { %v472_v26 = vmul.f32 2.0, %v4034_v23 }
 0x322   :  { %v2957_v27 = vadd.f32 -1.0, %v668_v24  ;;  %v4819_v24 = vld [vmem:[#allocation6 + $0x68] sm:$0xff]  }
 0x323   :  { %v2938_v30 = vadd.f32 -1.0, %v472_v26  ;;  %v4826_v26 = vld [vmem:[#allocation6 + $0x28] sm:$0xff]  }
 0x324   :  { %v670_v29 = vsel %vm4684_vm6, %v2957_v27, %v4032_v45  ;;  %v4829_v27 = vld [vmem:[#allocation6 + $0x60] sm:$0xff]  }
 0x325   :  { %673 = vrot.lane.b32.xlu0 %v670_v29, %s4438_s24  ;;  %671 = vrot.lane.b32.xlu1 %v670_v29, %s4451_s4  ;;  %v474_v33 = vsel %vm4684_vm6, %v2938_v30, %v4034_v23  ;;  %v4812_v23 = vld [vmem:[#allocation6 + $0x70] sm:$0xff]   ;;  %v4842_v30 = vld [vmem:[#allocation6 + $0x18] sm:$0xff]  }
 0x329   :  { %477 = vrot.lane.b32.xlu0 %v474_v33, %s4438_s24  ;;  %475 = vrot.lane.b32.xlu1 %v474_v33, %s4451_s4 }
 0x32d   :  { %479 = vrot.lane.b32.xlu0 %v474_v33, %s4450_s16  ;;  %675 = vrot.lane.b32.xlu1 %v670_v29, %s4450_s16 }
 0x397   :  { %v674_v39 = vpop.permute.xlu0 %673  ;;  %v672_v48 = vpop.permute.xlu1 %671 }
 0x398   :  { %v678_v49 = vmul.f32 %v674_v39, %v670_v29  ;;  %v677_v50 = vmul.f32 0.0, %v672_v48  ;;  %v4837_v29 = vld [vmem:[#allocation6 + $0x58] sm:$0xff]   ;;  %v4854_v39 = vld [vmem:[#allocation6 + $0x48] sm:$0xff]  }
 0x399   :  { %v4859_v48 = vld [vmem:[#allocation6 + $0x8] sm:$0xff]  }
 0x39a   :  { %v4803_v51 = vadd.f32 %v678_v49, %v677_v50  ;;  %v4864_v49 = vld [vmem:[#allocation6 + $0x40] sm:$0xff]  }
 0x39b   :  { %v478_v52 = vpop.permute.xlu0 %477  ;;  %v476_v57 = vpop.permute.xlu1 %475 }
 0x39c   :  { %4035 = vtanh.f32 %v4803_v51  ;;  %v482_v58 = vmul.f32 %v478_v52, %v474_v33  ;;  %v481_v63 = vmul.f32 %v476_v57, %v4722_v20  ;;  %v4815_v20 = vld [vmem:[#allocation6 + $0x30] sm:$0xff]  }
 0x39d   :  { %v4850_v33 = vld [vmem:[#allocation6 + $0x10] sm:$0xff]  }
 0x39e   :  { %v4807_v2 = vadd.f32 %v482_v58, %v481_v63 }
 0x39f   :  { %v676_v10 = vpop.permute.xlu1 %675  ;;  %v480_v17 = vpop.permute.xlu0 %479 }
 0x3a0   :  { %4037 = vtanh.f32 %v4807_v2 }
 0x3a9   :  { %v4036_v6 = vpop.eup %4035 }
 0x3aa   :  { %v681_v13 = vmul.f32 %v4036_v6, %v676_v10 }
 0x3ac   :  { %v744_v14 = vpack.c.bf16 %v681_v13, %v681_v13 }
 0x3ad   :  { %v4038_v16 = vpop.eup %4037 }
 0x3ae   :  { %v485_v18 = vmul.f32 %v4038_v16, %v480_v17  ;;  %777 = vmatprep.mubr.bf16.mxu1 %v744_v14 }
 0x3b0   :  { %v682_v45 = vpack.c.bf16 %v485_v18, %v485_v18 }
 0x3b2   :  { %3800 = vmatmul.mubr.bf16.vlgmr.msra.gmra.mxu0 %v682_v45  ;;  %778 = vmatmul.mubr.bf16.vlgmr.msra.gmra.mxu1 %v682_v45 }
 0x3b3   :  { %3147 = vmatpush3.bf16.msra.mxu0 %v4810_v21  ;;  %977 = vmatprep.mubr.bf16.mxu0 %v4452_v12 }
 0x3b4   :  { %3148 = vmatprep.subr.bf16.mxu0 %v4812_v23  ;;  %3804 = vmatpush3.bf16.msra.mxu1 %v4556_v4  ;;  %v4834_v4 = vld [vmem:[#allocation6 + $0x20] sm:$0xff]  }
 0x3b5   :  { %3805 = vmatprep.subr.bf16.mxu1 %v5840_v1  ;;  %3819 = vmatprep.mubr.msk.bf16.mxu1 %vm4448_vm0, %v5840_v1 }
 0x3b7   :  { %3149 = vmatpush3.bf16.msra.mxu0 %v4815_v20 }
 0x3b8   :  { %3150 = vmatprep.subr.bf16.mxu0 %v4819_v24  ;;  %3806 = vmatpush3.bf16.msra.mxu1 %v4562_v7  ;;  %v4845_v7 = vld [vmem:[#allocation6 + $0x50] sm:$0xff]  }
 0x3b9   :  { %3807 = vmatprep.subr.bf16.mxu1 %v5840_v1 }
 0x3bb   :  { %3151 = vmatpush3.bf16.msra.mxu0 %v4826_v26 }
 0x3bc   :  { %3152 = vmatprep.subr.bf16.mxu0 %v4829_v27  ;;  %3808 = vmatpush3.bf16.msra.mxu1 %v4571_v11  ;;  %v806_v11 = vshrl.u32 %v118_v31, 7  ;;  %v4869_v31 = vld [vmem:[#allocation6] sm:$0xff]  }
 0x3bd   :  { %3809 = vmatprep.subr.bf16.mxu1 %v5840_v1 }
 0x3bf   :  { %3153 = vmatpush3.bf16.msra.mxu0 %v4834_v4 }
 0x3c0   :  { %3154 = vmatprep.subr.bf16.mxu0 %v4837_v29  ;;  %3810 = vmatpush3.bf16.msra.mxu1 %v4582_v15  ;;  %v4861_v15 = vsub.s32 4, %v806_v11 }
 0x3c1   :  { %3811 = vmatprep.subr.bf16.mxu1 %v5840_v1 }
 0x3c3   :  { %3155 = vmatpush3.bf16.msra.mxu0 %v4842_v30 }
 0x3c4   :  { %3156 = vmatprep.subr.bf16.mxu0 %v4845_v7  ;;  %3812 = vmatpush3.bf16.msra.mxu1 %v4591_v19  ;;  %v808_v19 = vrot.slane %v681_v13, %v4861_v15 }
 0x3c5   :  { %3813 = vmatprep.subr.bf16.mxu1 %v5840_v1 }
 0x3c6   :  { %v809_v50 = vpack.c.bf16 %v808_v19, %v808_v19 }
 0x3c7   :  { %3157 = vmatpush3.bf16.msra.mxu0 %v4850_v33 }
 0x3c8   :  { %3158 = vmatprep.subr.bf16.mxu0 %v4854_v39  ;;  %3814 = vmatpush3.bf16.msra.mxu1 %v4598_v22  ;;  %v268_v22 = vadd.f32 %v4661_v46, %v4772_v34 }
 0x3c9   :  { %3815 = vmatprep.subr.bf16.mxu1 %v5840_v1 }
 0x3cb   :  { %3159 = vmatpush3.bf16.msra.mxu0 %v4859_v48 }
 0x3cc   :  { %3160 = vmatprep.subr.bf16.mxu0 %v4864_v49  ;;  %3816 = vmatpush3.bf16.msra.mxu1 %v4605_v25 }
 0x3cd   :  { %3817 = vmatprep.subr.bf16.mxu1 %v5840_v1 }
 0x3cf   :  { %3161 = vmatpush3.bf16.msra.mxu0 %v4869_v31 }
 0x3d0   :  { %3177 = vmatprep.subr.bf16.mxu0 %v4644_v41  ;;  %3818 = vmatpush3.bf16.msra.mxu1 %v4612_v28 }
 0x3d1   :  { %3199 = vmatprep.subr.bf16.mxu1 %v4800_v35 }
 0x3d2   :  { %978 = vmatmul.mubr.bf16.vlgmr.msra.gmra.mxu0 %v809_v50 }
 0x3d3   :  { %3178 = vmatpush3.bf16.msra.mxu0 %v4646_v42 }
 0x3d4   :  { %3179 = vmatprep.subr.bf16.mxu0 %v4648_v43 }
 0x3d7   :  { %3180 = vmatpush3.bf16.msra.mxu0 %v4652_v44 }
 0x3d8   :  { %3181 = vmatprep.subr.bf16.mxu0 %v4664_v53 }
 0x3db   :  { %3182 = vmatpush3.bf16.msra.mxu0 %v4666_v54 }
 0x3dc   :  { %3183 = vmatprep.subr.bf16.mxu0 %v4670_v55 }
 0x3df   :  { %3184 = vmatpush3.bf16.msra.mxu0 %v4672_v56 }
 0x3e0   :  { %3185 = vmatprep.subr.bf16.mxu0 %v4678_v59 }
 0x3e3   :  { %3186 = vmatpush3.bf16.msra.mxu0 %v4680_v60 }
 0x3e4   :  { %3187 = vmatprep.subr.bf16.mxu0 %v4682_v61 }
 0x3e7   :  { %3188 = vmatpush3.bf16.msra.mxu0 %v4690_v0 }
 0x3e8   :  { %3189 = vmatprep.subr.bf16.mxu0 %v4698_v3 }
 0x3eb   :  { %3190 = vmatpush3.bf16.msra.mxu0 %v4701_v5 }
 0x3ec   :  { %3191 = vmatprep.subr.bf16.mxu0 %v4708_v8 }
 0x3ef   :  { %3192 = vmatpush3.bf16.msra.mxu0 %v4710_v9 }
 0x472   :  { %v717_v25 = vpop.f32.mrf.mxu0  ;;  %v3140_v28 = vpop.f32.mrf.mxu1 }
 0x473   :  { %v723_v52 = vadd.f32 %v717_v25, %v268_v22  ;;  %v4900_v22 = vld [vmem:[%s5834_s7] ss:$0 sm:$0xff] }
 0x474   :  { %v3801_v57 = vpop.f32.mrf.mxu0  ;;  %v3141_v58 = vpop.f32.mrf.mxu1 }
 0x475   :  { %v2958_v63 = vmul.f32 -1.442695, %v723_v52  ;;  %v3142_v6 = vadd.f32 %v3141_v58, %v3140_v28 }
 0x476   :  { %v720_v10 = vpop.f32.mrf.mxu0  ;;  %v3143_v13 = vpop.f32.mrf.mxu1 }
 0x477   :  { %4039 = vpow2.f32 %v2958_v63  ;;  %v780_v14 = vadd.f32 %v3142_v6, %v4785_v47 }
 0x478   :  { %v3802_v16 = vpop.f32.mrf.mxu0  ;;  %v3144_v17 = vpop.f32.mrf.mxu1 }
 0x479   :  { %v2960_v18 = vmul.f32 -1.442695, %v780_v14 }
 0x47b   :  { %4041 = vpow2.f32 %v2960_v18 }
 0x484   :  { %v4040_v45 = vpop.eup %4039 }
 0x485   :  { %v727_v11 = vadd.f32 1.0, %v4040_v45 }
 0x487   :  { %4043 = vrcp.f32 %v727_v11 }
 0x488   :  { %v4042_v19 = vpop.eup %4041 }
 0x489   :  { %v788_v34 = vadd.f32 1.0, %v4042_v19 }
 0x48b   :  { %4045 = vrcp.f32 %v788_v34  ;;  %v4913_v34 = vld [vmem:[#allocation7 + $0x78] sm:$0xff]  }
 0x48c   :  { %5867 = vst [vmem:[#allocation19_spill] sm:$0xff] %v4913_v34  ;;  %3221 = vmatprep.subr.bf16.mxu0 %v4913_v34 }
 0x492   :  { %v3162_v50 = vpop.f32.mrf.mxu0 }
 0x494   :  { %v3163_v25 = vpop.f32.mrf.mxu0  ;;  %v4044_v52 = vpop.eup %4043 }
 0x495   :  { %v3164_v28 = vadd.f32 %v3163_v25, %v3162_v50  ;;  %v730_v14 = vmul.f32 2.0, %v4044_v52 }
 0x496   :  { %v3165_v57 = vpop.f32.mrf.mxu0 }
 0x497   :  { %v980_v58 = vadd.f32 %v3164_v28, %v4900_v22  ;;  %v2959_v18 = vadd.f32 -1.0, %v730_v14 }
 0x498   :  { %v4046_v63 = vpop.eup %4045  ;;  %v3166_v6 = vpop.f32.mrf.mxu0 }
 0x499   :  { %v2979_v10 = vmul.f32 -1.442695, %v980_v58  ;;  %v791_v13 = vmul.f32 2.0, %v4046_v63  ;;  %v732_v45 = vsel %vm4684_vm6, %v2959_v18, %v4044_v52 }
 0x49b   :  { %4047 = vpow2.f32 %v2979_v10  ;;  %v2961_v16 = vadd.f32 -1.0, %v791_v13 }
 0x49d   :  { %v793_v17 = vsel %vm4684_vm6, %v2961_v16, %v4046_v63 }
 0x49e   :  { %796 = vrot.lane.b32.xlu0 %v793_v17, %s4438_s24  ;;  %794 = vrot.lane.b32.xlu1 %v793_v17, %s4451_s4 }
 0x4a2   :  { %735 = vrot.lane.b32.xlu0 %v732_v45, %s4438_s24  ;;  %733 = vrot.lane.b32.xlu1 %v732_v45, %s4451_s4 }
 0x4a6   :  { %737 = vrot.lane.b32.xlu0 %v732_v45, %s4450_s16  ;;  %798 = vrot.lane.b32.xlu1 %v793_v17, %s4450_s16 }
 0x4a8   :  { %v4048_v11 = vpop.eup %4047 }
 0x4a9   :  { %v988_v19 = vadd.f32 1.0, %v4048_v11 }
 0x4ab   :  { %4049 = vrcp.f32 %v988_v19 }
 0x4b8   :  { %v4050_v50 = vpop.eup %4049 }
 0x4b9   :  { %v991_v25 = vmul.f32 2.0, %v4050_v50 }
 0x4bb   :  { %v2980_v28 = vadd.f32 -1.0, %v991_v25 }
 0x4bd   :  { %v993_v52 = vsel %vm4684_vm6, %v2980_v28, %v4050_v50 }
 0x4be   :  { %996 = vrot.lane.b32.xlu0 %v993_v52, %s4438_s24  ;;  %994 = vrot.lane.b32.xlu1 %v993_v52, %s4451_s4 }
 0x4c2   :  { %998 = vrot.lane.b32.xlu1 %v993_v52, %s4450_s16 }
 0x510   :  { %v797_v57 = vpop.permute.xlu0 %796  ;;  %v795_v58 = vpop.permute.xlu1 %794 }
 0x511   :  { %v801_v63 = vmul.f32 %v797_v57, %v793_v17  ;;  %v800_v6 = vmul.f32 %v795_v58, %v4803_v51  ;;  %v4929_v58 = vld [vmem:[#allocation7 + $0x38] sm:$0xff]  }
 0x513   :  { %v4922_v10 = vadd.f32 %v801_v63, %v800_v6  ;;  %v4931_v6 = vld [vmem:[#allocation7 + $0x70] sm:$0xff]  }
 0x514   :  { %v736_v13 = vpop.permute.xlu0 %735  ;;  %v734_v14 = vpop.permute.xlu1 %733 }
 0x515   :  { %4051 = vtanh.f32 %v4922_v10  ;;  %v740_v16 = vmul.f32 %v736_v13, %v732_v45  ;;  %v739_v18 = vmul.f32 %v734_v14, %v4807_v2  ;;  %v4935_v2 = vld [vmem:[#allocation7 + $0x30] sm:$0xff]   ;;  %v4939_v45 = vld [vmem:[#allocation7 + $0x68] sm:$0xff]  }
 0x517   :  { %v4926_v11 = vadd.f32 %v740_v16, %v739_v18  ;;  %v4944_v16 = vld [vmem:[#allocation7 + $0x28] sm:$0xff]  }
 0x518   :  { %v799_v50 = vpop.permute.xlu1 %798  ;;  %v738_v57 = vpop.permute.xlu0 %737 }
 0x519   :  { %4053 = vtanh.f32 %v4926_v11 }
 0x522   :  { %v4052_v19 = vpop.eup %4051 }
 0x523   :  { %v804_v25 = vmul.f32 %v4052_v19, %v799_v50  ;;  %v4948_v50 = vld [vmem:[#allocation7 + $0x60] sm:$0xff]  }
 0x525   :  { %v1067_v28 = vpack.c.bf16 %v804_v25, %v804_v25  ;;  %v1131_v40 = vrot.slane %v804_v25, %v4861_v15 }
 0x526   :  { %v4054_v17 = vpop.eup %4053 }
 0x527   :  { %v743_v51 = vmul.f32 %v4054_v17, %v738_v57  ;;  %1100 = vmatprep.mubr.bf16.mxu0 %v1067_v28  ;;  %v4963_v17 = vld [vmem:[#allocation7 + $0x18] sm:$0xff]   ;;  %v4967_v57 = vld [vmem:[#allocation7 + $0x50] sm:$0xff]   ;;  %v1132_v37 = vpack.c.bf16 %v1131_v40, %v1131_v40 }
 0x529   :  { %v1005_v63 = vpack.c.bf16 %v743_v51, %v743_v51  ;;  %v4971_v51 = vld [vmem:[#allocation7 + $0x10] sm:$0xff]  }
 0x52b   :  { %3820 = vmatmul.mubr.bf16.vlgmr.msra.gmra.mxu1 %v1005_v63  ;;  %1101 = vmatmul.mubr.bf16.vlgmr.msra.gmra.mxu0 %v1005_v63  ;;  %v4975_v63 = vld [vmem:[#allocation7 + $0x48] sm:$0xff]  }
 0x52c   :  { %3200 = vmatpush3.bf16.msra.mxu1 %v4810_v21  ;;  %3222 = vmatpush3.bf16.msra.mxu0 %v4929_v58 }
 0x52d   :  { %3201 = vmatprep.subr.bf16.mxu1 %v4812_v23  ;;  %3223 = vmatprep.subr.bf16.mxu0 %v4931_v6 }
 0x52e   :  { %1361 = vmatprep.mubr.bf16.mxu0 %v4452_v12  ;;  %v4954_v12 = vld [vmem:[#allocation7 + $0x20] sm:$0xff]  }
 0x530   :  { %3202 = vmatpush3.bf16.msra.mxu1 %v4815_v20  ;;  %3224 = vmatpush3.bf16.msra.mxu0 %v4935_v2  ;;  %v997_v13 = vpop.permute.xlu0 %996  ;;  %v995_v14 = vpop.permute.xlu1 %994 }
 0x531   :  { %v1001_v18 = vmul.f32 %v997_v13, %v993_v52  ;;  %v1000_v19 = vmul.f32 0.0, %v995_v14  ;;  %3203 = vmatprep.subr.bf16.mxu1 %v4819_v24  ;;  %3225 = vmatprep.subr.bf16.mxu0 %v4939_v45  ;;  %v4959_v52 = vld [vmem:[#allocation7 + $0x58] sm:$0xff]   ;;  %v4979_v13 = vld [vmem:[#allocation7 + $0x8] sm:$0xff]   ;;  %v4983_v14 = vld [vmem:[#allocation7 + $0x40] sm:$0xff]  }
 0x533   :  { %v4950_v28 = vadd.f32 %v1001_v18, %v1000_v19 }
 0x534   :  { %3204 = vmatpush3.bf16.msra.mxu1 %v4826_v26  ;;  %3226 = vmatpush3.bf16.msra.mxu0 %v4944_v16  ;;  %v999_v19 = vpop.permute.xlu1 %998 }
 0x535   :  { %4055 = vtanh.f32 %v4950_v28  ;;  %3205 = vmatprep.subr.bf16.mxu1 %v4829_v27  ;;  %3227 = vmatprep.subr.bf16.mxu0 %v4948_v50 }
 0x538   :  { %3206 = vmatpush3.bf16.msra.mxu1 %v4834_v4  ;;  %3228 = vmatpush3.bf16.msra.mxu0 %v4954_v12 }
 0x539   :  { %3207 = vmatprep.subr.bf16.mxu1 %v4837_v29  ;;  %3229 = vmatprep.subr.bf16.mxu0 %v4959_v52 }
 0x53c   :  { %3208 = vmatpush3.bf16.msra.mxu1 %v4842_v30  ;;  %3230 = vmatpush3.bf16.msra.mxu0 %v4963_v17 }
 0x53d   :  { %3209 = vmatprep.subr.bf16.mxu1 %v4845_v7  ;;  %3231 = vmatprep.subr.bf16.mxu0 %v4967_v57 }
 0x540   :  { %3210 = vmatpush3.bf16.msra.mxu1 %v4850_v33  ;;  %3232 = vmatpush3.bf16.msra.mxu0 %v4971_v51 }
 0x541   :  { %3211 = vmatprep.subr.bf16.mxu1 %v4854_v39  ;;  %3233 = vmatprep.subr.bf16.mxu0 %v4975_v63 }
 0x542   :  { %v4056_v18 = vpop.eup %4055 }
 0x543   :  { %v1004_v1 = vmul.f32 %v4056_v18, %v999_v19  ;;  %v5868_v18 = vmov 0.0  }
 0x544   :  { %3212 = vmatpush3.bf16.msra.mxu1 %v4859_v48  ;;  %3234 = vmatpush3.bf16.msra.mxu0 %v4979_v13 }
 0x545   :  { %v1133_v36 = vpack.c.bf16 %v1004_v1, %v1004_v1  ;;  %3213 = vmatprep.subr.bf16.mxu1 %v4864_v49  ;;  %3235 = vmatprep.subr.bf16.mxu0 %v4983_v14  ;;  %v5000_v1 = vld [vmem:[%s5830_s3 + $0x38] sm:$0xff]  }
 0x547   :  { %1166 = vmatprep.mubr.bf16.mxu1 %v1133_v36 }
 0x548   :  { %3214 = vmatpush3.bf16.msra.mxu1 %v4869_v31  ;;  %3236 = vmatpush3.bf16.msra.mxu0 %v4987_v38 }
 0x549   :  { %3252 = vmatprep.subr.bf16.mxu0 %v4644_v41  ;;  %3823 = vmatprep.subr.bf16.mxu1 %v5868_v18  ;;  %v5011_v41 = vld [vmem:[%s5830_s3 + $0x30] sm:$0xff]  }
 0x54b   :  { %1167 = vmatmul.mubr.bf16.vlgmr.msra.gmra.mxu1 %v1132_v37  ;;  %1362 = vmatmul.mubr.bf16.vlgmr.msra.gmra.mxu0 %v1133_v36 }
 0x54c   :  { %3253 = vmatpush3.bf16.msra.mxu0 %v4646_v42  ;;  %3824 = vmatpush3.bf16.msra.mxu1 %v5000_v1  ;;  %v5020_v42 = vld [vmem:[%s5830_s3 + $0x28] sm:$0xff]  }
 0x54d   :  { %3254 = vmatprep.subr.bf16.mxu0 %v4648_v43  ;;  %3825 = vmatprep.subr.bf16.mxu1 %v5868_v18  ;;  %v5029_v43 = vld [vmem:[%s5830_s3 + $0x20] sm:$0xff]  }
 0x54e   :  { %3839 = vmatprep.mubr.msk.bf16.mxu1 %vm4448_vm0, %v5868_v18 }
 0x550   :  { %3255 = vmatpush3.bf16.msra.mxu0 %v4652_v44  ;;  %3826 = vmatpush3.bf16.msra.mxu1 %v5011_v41  ;;  %v5038_v44 = vld [vmem:[%s5830_s3 + $0x18] sm:$0xff]  }
 0x551   :  { %3256 = vmatprep.subr.bf16.mxu0 %v4664_v53  ;;  %3827 = vmatprep.subr.bf16.mxu1 %v5868_v18  ;;  %v5047_v53 = vld [vmem:[%s5830_s3 + $0x10] sm:$0xff]  }
 0x554   :  { %3257 = vmatpush3.bf16.msra.mxu0 %v4666_v54  ;;  %3828 = vmatpush3.bf16.msra.mxu1 %v5020_v42  ;;  %v5056_v54 = vld [vmem:[%s5830_s3 + $0x8] sm:$0xff]  }
 0x555   :  { %3258 = vmatprep.subr.bf16.mxu0 %v4670_v55  ;;  %3829 = vmatprep.subr.bf16.mxu1 %v5868_v18  ;;  %5869 = vst [vmem:[#allocation20_spill] sm:$0xff] %v5056_v54  ;;  %v5065_v55 = vld [vmem:[%s5830_s3] sm:$0xff]  }
 0x556   :  { %5870 = vst [vmem:[#allocation21_spill] sm:$0xff] %v5065_v55 }
 0x558   :  { %3259 = vmatpush3.bf16.msra.mxu0 %v4672_v56  ;;  %3830 = vmatpush3.bf16.msra.mxu1 %v5029_v43  ;;  %v273_v56 = vadd.f32 %v4770_v32, %v4661_v46 }
 0x559   :  { %3260 = vmatprep.subr.bf16.mxu0 %v4678_v59  ;;  %3831 = vmatprep.subr.bf16.mxu1 %v5868_v18 }
 0x55c   :  { %3261 = vmatpush3.bf16.msra.mxu0 %v4680_v60  ;;  %3832 = vmatpush3.bf16.msra.mxu1 %v5038_v44 }
 0x55d   :  { %3262 = vmatprep.subr.bf16.mxu0 %v4682_v61  ;;  %3833 = vmatprep.subr.bf16.mxu1 %v5868_v18 }
 0x560   :  { %3263 = vmatpush3.bf16.msra.mxu0 %v4690_v0  ;;  %3834 = vmatpush3.bf16.msra.mxu1 %v5047_v53 }
 0x561   :  { %3264 = vmatprep.subr.bf16.mxu0 %v4698_v3  ;;  %3835 = vmatprep.subr.bf16.mxu1 %v5868_v18 }
 0x564   :  { %3265 = vmatpush3.bf16.msra.mxu0 %v4701_v5  ;;  %3836 = vmatpush3.bf16.msra.mxu1 %v5056_v54 }
 0x565   :  { %3266 = vmatprep.subr.bf16.mxu0 %v4708_v8  ;;  %3837 = vmatprep.subr.bf16.mxu1 %v5868_v18 }
 0x568   :  { %3267 = vmatpush3.bf16.msra.mxu0 %v4710_v9  ;;  %3838 = vmatpush3.bf16.msra.mxu1 %v5065_v55 }
 0x569   :  { %3296 = vmatprep.subr.bf16.mxu0 %v4913_v34  ;;  %3274 = vmatprep.subr.bf16.mxu1 %v4800_v35 }
 0x5eb   :  { %v1040_v59 = vpop.f32.mrf.mxu1  ;;  %v3193_v60 = vpop.f32.mrf.mxu0 }
 0x5ec   :  { %v1046_v61 = vadd.f32 %v1040_v59, %v273_v56 }
 0x5ed   :  { %v3821_v0 = vpop.f32.mrf.mxu1  ;;  %v3194_v3 = vpop.f32.mrf.mxu0 }
 0x5ee   :  { %v2981_v5 = vmul.f32 -1.442695, %v1046_v61  ;;  %v3195_v8 = vadd.f32 %v3194_v3, %v3193_v60  ;;  %v5076_v60 = vld [vmem:[%s5836_s9] ss:$0 sm:$0xff] }
 0x5ef   :  { %v1043_v9 = vpop.f32.mrf.mxu1  ;;  %v3196_v36 = vpop.f32.mrf.mxu0 }
 0x5f0   :  { %4057 = vpow2.f32 %v2981_v5  ;;  %v1103_v37 = vadd.f32 %v3195_v8, %v4785_v47 }
 0x5f1   :  { %v3822_v40 = vpop.f32.mrf.mxu1  ;;  %v3197_v25 = vpop.f32.mrf.mxu0 }
 0x5f2   :  { %v2983_v19 = vmul.f32 -1.442695, %v1103_v37 }
 0x5f4   :  { %4059 = vpow2.f32 %v2983_v19 }
 0x5fd   :  { %v4058_v35 = vpop.eup %4057 }
 0x5fe   :  { %v1050_v34 = vadd.f32 1.0, %v4058_v35 }
 0x600   :  { %4061 = vrcp.f32 %v1050_v34 }
 0x601   :  { %v4060_v55 = vpop.eup %4059 }
 0x602   :  { %v1111_v46 = vadd.f32 1.0, %v4060_v55 }
 0x604   :  { %4063 = vrcp.f32 %v1111_v46 }
 0x60b   :  { %v3215_v32 = vpop.f32.mrf.mxu1  ;;  %v3237_v56 = vpop.f32.mrf.mxu0 }
 0x60d   :  { %v3216_v59 = vpop.f32.mrf.mxu1  ;;  %v3238_v61 = vpop.f32.mrf.mxu0 }
 0x60e   :  { %v3217_v0 = vadd.f32 %v3216_v59, %v3215_v32  ;;  %v3239_v3 = vadd.f32 %v3238_v61, %v3237_v56  ;;  %v4062_v5 = vpop.eup %4061 }
 0x60f   :  { %v3218_v8 = vpop.f32.mrf.mxu1  ;;  %v3240_v9 = vpop.f32.mrf.mxu0  ;;  %v1053_v46 = vmul.f32 2.0, %v4062_v5 }
 0x610   :  { %v1169_v35 = vadd.f32 %v3217_v0, %v4900_v22  ;;  %v1364_v34 = vadd.f32 %v3239_v3, %v5076_v60 }
 0x611   :  { %v4064_v55 = vpop.eup %4063  ;;  %v3219_v36 = vpop.f32.mrf.mxu1  ;;  %v2982_v56 = vadd.f32 -1.0, %v1053_v46 }
 0x612   :  { %v3241_v37 = vpop.f32.mrf.mxu0  ;;  %v2985_v40 = vmul.f32 -1.442695, %v1169_v35  ;;  %v3004_v25 = vmul.f32 -1.442695, %v1364_v34  ;;  %v1114_v19 = vmul.f32 2.0, %v4064_v55 }
 0x613   :  { %v1055_v59 = vsel %vm4684_vm6, %v2982_v56, %v4062_v5 }
 0x614   :  { %4065 = vpow2.f32 %v2985_v40  ;;  %v2984_v47 = vadd.f32 -1.0, %v1114_v19 }
 0x615   :  { %4067 = vpow2.f32 %v3004_v25 }
 0x616   :  { %v1116_v32 = vsel %vm4684_vm6, %v2984_v47, %v4064_v55 }
 0x617   :  { %1117 = vrot.lane.b32.xlu0 %v1116_v32, %s4451_s4  ;;  %1119 = vrot.lane.b32.xlu1 %v1116_v32, %s4438_s24 }
 0x61b   :  { %1056 = vrot.lane.b32.xlu0 %v1055_v59, %s4451_s4  ;;  %1058 = vrot.lane.b32.xlu1 %v1055_v59, %s4438_s24 }
 0x61f   :  { %1121 = vrot.lane.b32.xlu0 %v1116_v32, %s4450_s16  ;;  %1060 = vrot.lane.b32.xlu1 %v1055_v59, %s4450_s16 }
 0x621   :  { %v4066_v61 = vpop.eup %4065 }
 0x622   :  { %v4068_v0 = vpop.eup %4067  ;;  %v1177_v3 = vadd.f32 1.0, %v4066_v61 }
 0x623   :  { %v1372_v47 = vadd.f32 1.0, %v4068_v0 }
 0x624   :  { %4069 = vrcp.f32 %v1177_v3 }
 0x625   :  { %4071 = vrcp.f32 %v1372_v47 }
 0x631   :  { %v4070_v8 = vpop.eup %4069 }
 0x632   :  { %v4072_v9 = vpop.eup %4071  ;;  %v1180_v34 = vmul.f32 2.0, %v4070_v8 }
 0x633   :  { %v1375_v35 = vmul.f32 2.0, %v4072_v9 }
 0x634   :  { %v2986_v36 = vadd.f32 -1.0, %v1180_v34 }
 0x635   :  { %v3005_v55 = vadd.f32 -1.0, %v1375_v35 }
 0x636   :  { %v1182_v37 = vsel %vm4684_vm6, %v2986_v36, %v4070_v8 }
 0x637   :  { %v1377_v5 = vsel %vm4684_vm6, %v3005_v55, %v4072_v9 }
 0x638   :  { %1380 = vrot.lane.b32.xlu1 %v1377_v5, %s4438_s24  ;;  %1378 = vrot.lane.b32.xlu0 %v1377_v5, %s4451_s4 }
 0x63c   :  { %1185 = vrot.lane.b32.xlu1 %v1182_v37, %s4438_s24  ;;  %1183 = vrot.lane.b32.xlu0 %v1182_v37, %s4451_s4 }
 0x640   :  { %1187 = vrot.lane.b32.xlu1 %v1182_v37, %s4450_s16  ;;  %1382 = vrot.lane.b32.xlu0 %v1377_v5, %s4450_s16 }
 0x689   :  { %v1118_v40 = vpop.permute.xlu0 %1117  ;;  %v1120_v25 = vpop.permute.xlu1 %1119 }
 0x68a   :  { %v1123_v19 = vmul.f32 %v1118_v40, %v4922_v10  ;;  %v1124_v46 = vmul.f32 %v1120_v25, %v1116_v32 }
 0x68c   :  { %v5101_v56 = vadd.f32 %v1124_v46, %v1123_v19 }
 0x68d   :  { %v1057_v61 = vpop.permute.xlu0 %1056  ;;  %v1059_v0 = vpop.permute.xlu1 %1058 }
 0x68e   :  { %4073 = vtanh.f32 %v5101_v56  ;;  %v1062_v3 = vmul.f32 %v1057_v61, %v4926_v11  ;;  %v1063_v47 = vmul.f32 %v1059_v0, %v1055_v59  ;;  %v5168_v0 = vld [vmem:[#allocation4 + $0x68] sm:$0xff]  }
 0x690   :  { %v5105_v8 = vadd.f32 %v1063_v47, %v1062_v3  ;;  %v5172_v3 = vld [vmem:[#allocation4 + $0x28] sm:$0xff]   ;;  %v5176_v47 = vld [vmem:[#allocation4 + $0x60] sm:$0xff]  }
 0x691   :  { %v1122_v35 = vpop.permute.xlu0 %1121  ;;  %v1061_v10 = vpop.permute.xlu1 %1060 }
 0x692   :  { %4075 = vtanh.f32 %v5105_v8 }
 0x69b   :  { %v4074_v9 = vpop.eup %4073 }
 0x69c   :  { %v1127_v34 = vmul.f32 %v4074_v9, %v1122_v35  ;;  %v5180_v9 = vld [vmem:[#allocation4 + $0x20] sm:$0xff]   ;;  %v5184_v35 = vld [vmem:[#allocation4 + $0x58] sm:$0xff]  }
 0x69e   :  { %v1451_v55 = vpack.c.bf16 %v1127_v34, %v1127_v34 }
 0x69f   :  { %v4076_v36 = vpop.eup %4075 }
 0x6a0   :  { %v1066_v32 = vmul.f32 %v4076_v36, %v1061_v10  ;;  %1484 = vmatprep.mubr.bf16.mxu0 %v1451_v55  ;;  %v5192_v55 = vld [vmem:[#allocation4 + $0x50] sm:$0xff]   ;;  %v5200_v10 = vld [vmem:[#allocation4 + $0x48] sm:$0xff]  }
 0x6a1   :  { %v5196_v36 = vld [vmem:[#allocation4 + $0x10] sm:$0xff]  }
 0x6a2   :  { %v1389_v40 = vpack.c.bf16 %v1066_v32, %v1066_v32  ;;  %v5204_v32 = vld [vmem:[#allocation4 + $0x8] sm:$0xff]  }
 0x6a4   :  { %3840 = vmatmul.mubr.bf16.vlgmr.msra.gmra.mxu1 %v1389_v40  ;;  %1485 = vmatmul.mubr.bf16.vlgmr.msra.gmra.mxu0 %v1389_v40  ;;  %v5208_v40 = vld [vmem:[#allocation4 + $0x40] sm:$0xff]  }
 0x6a5   :  { %3297 = vmatpush3.bf16.msra.mxu0 %v4929_v58  ;;  %3275 = vmatpush3.bf16.msra.mxu1 %v4810_v21  ;;  %5872 = vst [vmem:[#allocation23_spill] sm:$0xff] %v5208_v40 }
 0x6a6   :  { %3298 = vmatprep.subr.bf16.mxu0 %v4931_v6  ;;  %3276 = vmatprep.subr.bf16.mxu1 %v4812_v23 }
 0x6a9   :  { %3299 = vmatpush3.bf16.msra.mxu0 %v4935_v2  ;;  %3277 = vmatpush3.bf16.msra.mxu1 %v4815_v20 }
 0x6aa   :  { %v1379_v11 = vpop.permute.xlu0 %1378  ;;  %v1381_v59 = vpop.permute.xlu1 %1380  ;;  %3300 = vmatprep.subr.bf16.mxu0 %v4939_v45  ;;  %3278 = vmatprep.subr.bf16.mxu1 %v4819_v24 }
 0x6ab   :  { %v1384_v25 = vmul.f32 0.0, %v1379_v11  ;;  %v1385_v19 = vmul.f32 %v1381_v59, %v1377_v5  ;;  %v5154_v5 = vld [vmem:[#allocation4 + $0x38] sm:$0xff]   ;;  %v5212_v11 = vld [vmem:[#allocation4] sm:$0xff]  }
 0x6ac   :  { %5873 = vst [vmem:[#allocation24_spill] sm:$0xff] %v5212_v11  ;;  %v5874_v59 = vld [vmem:[#allocation21_spill] sm:$0xff] }
 0x6ad   :  { %v5116_v46 = vadd.f32 %v1385_v19, %v1384_v25  ;;  %3301 = vmatpush3.bf16.msra.mxu0 %v4944_v16  ;;  %3279 = vmatpush3.bf16.msra.mxu1 %v4826_v26  ;;  %v5875_v25 = vld [vmem:[#allocation19_spill] sm:$0xff]  ;;  %v5876_v19 = vld [vmem:[#allocation18_spill] sm:$0xff] }
 0x6ae   :  { %v1184_v21 = vpop.permute.xlu0 %1183  ;;  %v1186_v23 = vpop.permute.xlu1 %1185  ;;  %3302 = vmatprep.subr.bf16.mxu0 %v4948_v50  ;;  %3280 = vmatprep.subr.bf16.mxu1 %v4829_v27 }
 0x6af   :  { %4077 = vtanh.f32 %v5116_v46  ;;  %v1189_v20 = vmul.f32 %v1184_v21, %v4950_v28  ;;  %v1190_v61 = vmul.f32 %v1186_v23, %v1182_v37  ;;  %v5150_v28 = vld [vmem:[#allocation4 + $0x78] sm:$0xff]   ;;  %v5158_v37 = vld [vmem:[#allocation4 + $0x70] sm:$0xff]   ;;  %v5221_v21 = vld [vmem:[%s5829_s2] ss:$0 sm:$0xff] }
 0x6b0   :  { %v5877_v23 = vld [vmem:[#allocation14_spill] sm:$0xff] }
 0x6b1   :  { %v5124_v24 = vadd.f32 %v1190_v61, %v1189_v20  ;;  %3303 = vmatpush3.bf16.msra.mxu0 %v4954_v12  ;;  %3281 = vmatpush3.bf16.msra.mxu1 %v4834_v4  ;;  %v278_v20 = vadd.f32 %v5221_v21, %v5877_v23 }
 0x6b2   :  { %3304 = vmatprep.subr.bf16.mxu0 %v4959_v52  ;;  %3282 = vmatprep.subr.bf16.mxu1 %v4837_v29  ;;  %v1383_v27 = vpop.permute.xlu0 %1382 }
 0x6b3   :  { %4079 = vtanh.f32 %v5124_v24 }
 0x6b5   :  { %3305 = vmatpush3.bf16.msra.mxu0 %v4963_v17  ;;  %3283 = vmatpush3.bf16.msra.mxu1 %v4842_v30 }
 0x6b6   :  { %3306 = vmatprep.subr.bf16.mxu0 %v4967_v57  ;;  %3284 = vmatprep.subr.bf16.mxu1 %v4845_v7  ;;  %v1515_v7 = vrot.slane %v1127_v34, %v4861_v15  ;;  %v5188_v34 = vld [vmem:[#allocation4 + $0x18] sm:$0xff]  }
 0x6b9   :  { %3307 = vmatpush3.bf16.msra.mxu0 %v4971_v51  ;;  %3285 = vmatpush3.bf16.msra.mxu1 %v4850_v33  ;;  %v1188_v33 = vpop.permute.xlu1 %1187 }
 0x6ba   :  { %3308 = vmatprep.subr.bf16.mxu0 %v4975_v63  ;;  %3286 = vmatprep.subr.bf16.mxu1 %v4854_v39 }
 0x6bc   :  { %v4078_v26 = vpop.eup %4077 }
 0x6bd   :  { %v5139_v4 = vmul.f32 %v4078_v26, %v1383_v27  ;;  %3309 = vmatpush3.bf16.msra.mxu0 %v4979_v13  ;;  %3287 = vmatpush3.bf16.msra.mxu1 %v4859_v48 }
 0x6be   :  { %3310 = vmatprep.subr.bf16.mxu0 %v4983_v14  ;;  %3288 = vmatprep.subr.bf16.mxu1 %v4864_v49  ;;  %v1516_v49 = vpack.c.bf16 %v1515_v7, %v1515_v7 }
 0x6bf   :  { %5871 = vst [vmem:[#allocation22_spill] sm:$0xff] %v5139_v4  ;;  %v1578_v29 = vpack.c.bf16 %v5139_v4, %v5139_v4 }
 0x6c0   :  { %v4080_v30 = vpop.eup %4079 }
 0x6c1   :  { %v1193_v39 = vmul.f32 %v4080_v30, %v1188_v33  ;;  %1611 = vmatprep.mubr.bf16.mxu0 %v1578_v29  ;;  %3311 = vmatpush3.bf16.msra.mxu0 %v4987_v38 }
 0x6c2   :  { %3289 = vmatpush3.bf16.msra.mxu1 %v4869_v31  ;;  %3327 = vmatprep.subr.bf16.mxu0 %v5150_v28  ;;  %v5164_v31 = vld [vmem:[#allocation4 + $0x30] sm:$0xff]  }
 0x6c3   :  { %v1517_v48 = vpack.c.bf16 %v1193_v39, %v1193_v39  ;;  %3843 = vmatprep.subr.bf16.mxu1 %v5868_v18 }
 0x6c5   :  { %1550 = vmatprep.mubr.bf16.mxu1 %v1517_v48  ;;  %1612 = vmatmul.mubr.bf16.vlgmr.msra.gmra.mxu0 %v1517_v48 }
 0x6c6   :  { %1551 = vmatmul.mubr.bf16.vlgmr.msra.gmra.mxu1 %v1516_v49  ;;  %3328 = vmatpush3.bf16.msra.mxu0 %v5154_v5  ;;  %v5878_v49 = vld [vmem:[#allocation17_spill] sm:$0xff] }
 0x6c7   :  { %3844 = vmatpush3.bf16.msra.mxu1 %v5000_v1  ;;  %3329 = vmatprep.subr.bf16.mxu0 %v5158_v37 }
 0x6c8   :  { %3845 = vmatprep.subr.bf16.mxu1 %v5868_v18  ;;  %3859 = vmatprep.mubr.msk.bf16.mxu1 %vm4448_vm0, %v5868_v18 }
 0x6ca   :  { %3330 = vmatpush3.bf16.msra.mxu0 %v5164_v31 }
 0x6cb   :  { %3846 = vmatpush3.bf16.msra.mxu1 %v5011_v41  ;;  %3331 = vmatprep.subr.bf16.mxu0 %v5168_v0 }
 0x6cc   :  { %3847 = vmatprep.subr.bf16.mxu1 %v5868_v18 }
 0x6ce   :  { %3332 = vmatpush3.bf16.msra.mxu0 %v5172_v3 }
 0x6cf   :  { %3848 = vmatpush3.bf16.msra.mxu1 %v5020_v42  ;;  %3333 = vmatprep.subr.bf16.mxu0 %v5176_v47 }
 0x6d0   :  { %3849 = vmatprep.subr.bf16.mxu1 %v5868_v18 }
 0x6d2   :  { %3334 = vmatpush3.bf16.msra.mxu0 %v5180_v9 }
 0x6d3   :  { %3850 = vmatpush3.bf16.msra.mxu1 %v5029_v43  ;;  %3335 = vmatprep.subr.bf16.mxu0 %v5184_v35 }
 0x6d4   :  { %3851 = vmatprep.subr.bf16.mxu1 %v5868_v18 }
 0x6d6   :  { %3336 = vmatpush3.bf16.msra.mxu0 %v5188_v34 }
 0x6d7   :  { %3852 = vmatpush3.bf16.msra.mxu1 %v5038_v44  ;;  %3337 = vmatprep.subr.bf16.mxu0 %v5192_v55 }
 0x6d8   :  { %3853 = vmatprep.subr.bf16.mxu1 %v5868_v18 }
 0x6da   :  { %3338 = vmatpush3.bf16.msra.mxu0 %v5196_v36 }
 0x6db   :  { %3854 = vmatpush3.bf16.msra.mxu1 %v5047_v53  ;;  %3339 = vmatprep.subr.bf16.mxu0 %v5200_v10 }
 0x6dc   :  { %3855 = vmatprep.subr.bf16.mxu1 %v5868_v18 }
 0x6de   :  { %3340 = vmatpush3.bf16.msra.mxu0 %v5204_v32 }
 0x6df   :  { %3856 = vmatpush3.bf16.msra.mxu1 %v5056_v54  ;;  %3341 = vmatprep.subr.bf16.mxu0 %v5208_v40 }
 0x6e0   :  { %3857 = vmatprep.subr.bf16.mxu1 %v5868_v18 }
 0x6e2   :  { %3342 = vmatpush3.bf16.msra.mxu0 %v5212_v11 }
 0x6e3   :  { %3858 = vmatpush3.bf16.msra.mxu1 %v5874_v59  ;;  %3371 = vmatprep.subr.bf16.mxu0 %v5875_v25 }
 0x6e4   :  { %3349 = vmatprep.subr.bf16.mxu1 %v5876_v19 }
 0x764   :  { %v1424_v61 = vpop.f32.mrf.mxu1  ;;  %v3268_v26 = vpop.f32.mrf.mxu0 }
 0x765   :  { %v1430_v27 = vadd.f32 %v1424_v61, %v278_v20 }
 0x766   :  { %v3841_v29 = vpop.f32.mrf.mxu1  ;;  %v3269_v30 = vpop.f32.mrf.mxu0 }
 0x767   :  { %v3006_v7 = vmul.f32 -1.442695, %v1430_v27  ;;  %v3270_v33 = vadd.f32 %v3269_v30, %v3268_v26 }
 0x768   :  { %v1427_v39 = vpop.f32.mrf.mxu1  ;;  %v3271_v48 = vpop.f32.mrf.mxu0 }
 0x769   :  { %4081 = vpow2.f32 %v3006_v7  ;;  %v1487_v19 = vadd.f32 %v3270_v33, %v5878_v49 }
 0x76a   :  { %v3842_v4 = vpop.f32.mrf.mxu1  ;;  %v3272_v25 = vpop.f32.mrf.mxu0 }
 0x76b   :  { %v3008_v59 = vmul.f32 -1.442695, %v1487_v19 }
 0x76d   :  { %4083 = vpow2.f32 %v3008_v59 }
 0x776   :  { %v4082_v11 = vpop.eup %4081 }
 0x777   :  { %v1434_v40 = vadd.f32 1.0, %v4082_v11 }
 0x779   :  { %4085 = vrcp.f32 %v1434_v40 }
 0x77a   :  { %v4084_v54 = vpop.eup %4083 }
 0x77b   :  { %v1495_v23 = vadd.f32 1.0, %v4084_v54 }
 0x77d   :  { %4087 = vrcp.f32 %v1495_v23 }
 0x785   :  { %v3312_v20 = vpop.f32.mrf.mxu0 }
 0x786   :  { %v3290_v61 = vpop.f32.mrf.mxu1  ;;  %v4086_v27 = vpop.eup %4085 }
 0x787   :  { %v3313_v29 = vpop.f32.mrf.mxu0  ;;  %v1437_v49 = vmul.f32 2.0, %v4086_v27 }
 0x788   :  { %v3314_v26 = vadd.f32 %v3313_v29, %v3312_v20  ;;  %v3291_v30 = vpop.f32.mrf.mxu1 }
 0x789   :  { %v3292_v39 = vadd.f32 %v3291_v30, %v3290_v61  ;;  %v3315_v7 = vpop.f32.mrf.mxu0  ;;  %v3007_v61 = vadd.f32 -1.0, %v1437_v49 }
 0x78a   :  { %v4088_v48 = vpop.eup %4087  ;;  %v1614_v4 = vadd.f32 %v3314_v26, %v5076_v60  ;;  %v3293_v25 = vpop.f32.mrf.mxu1 }
 0x78b   :  { %v1553_v59 = vadd.f32 %v3292_v39, %v4900_v22  ;;  %v3316_v33 = vpop.f32.mrf.mxu0  ;;  %v1498_v11 = vmul.f32 2.0, %v4088_v48  ;;  %v1439_v22 = vsel %vm4684_vm6, %v3007_v61, %v4086_v27 }
 0x78c   :  { %v3012_v40 = vmul.f32 -1.442695, %v1614_v4  ;;  %v3294_v54 = vpop.f32.mrf.mxu1 }
 0x78d   :  { %v3010_v19 = vmul.f32 -1.442695, %v1553_v59  ;;  %v3009_v23 = vadd.f32 -1.0, %v1498_v11 }
 0x78e   :  { %4089 = vpow2.f32 %v3012_v40 }
 0x78f   :  { %4091 = vpow2.f32 %v3010_v19  ;;  %v1500_v20 = vsel %vm4684_vm6, %v3009_v23, %v4088_v48 }
 0x790   :  { %1503 = vrot.lane.b32.xlu1 %v1500_v20, %s4438_s24  ;;  %1501 = vrot.lane.b32.xlu0 %v1500_v20, %s4451_s4 }
 0x794   :  { %1442 = vrot.lane.b32.xlu1 %v1439_v22, %s4438_s24  ;;  %1440 = vrot.lane.b32.xlu0 %v1439_v22, %s4451_s4 }
 0x798   :  { %1444 = vrot.lane.b32.xlu1 %v1439_v22, %s4450_s16  ;;  %1505 = vrot.lane.b32.xlu0 %v1500_v20, %s4450_s16 }
 0x79b   :  { %v4090_v29 = vpop.eup %4089 }
 0x79c   :  { %v4092_v26 = vpop.eup %4091  ;;  %v1622_v30 = vadd.f32 1.0, %v4090_v29 }
 0x79d   :  { %v1561_v39 = vadd.f32 1.0, %v4092_v26 }
 0x79e   :  { %4093 = vrcp.f32 %v1622_v30 }
 0x79f   :  { %4095 = vrcp.f32 %v1561_v39 }
 0x7ab   :  { %v4094_v7 = vpop.eup %4093 }
 0x7ac   :  { %v4096_v48 = vpop.eup %4095  ;;  %v1625_v4 = vmul.f32 2.0, %v4094_v7 }
 0x7ad   :  { %v1564_v25 = vmul.f32 2.0, %v4096_v48 }
 0x7ae   :  { %v3013_v59 = vadd.f32 -1.0, %v1625_v4 }
 0x7af   :  { %v3011_v33 = vadd.f32 -1.0, %v1564_v25 }
 0x7b0   :  { %v1627_v27 = vsel %vm4684_vm6, %v3013_v59, %v4094_v7 }
 0x7b1   :  { %1630 = vrot.lane.b32.xlu1 %v1627_v27, %s4438_s24  ;;  %1628 = vrot.lane.b32.xlu0 %v1627_v27, %s4451_s4  ;;  %v1566_v11 = vsel %vm4684_vm6, %v3011_v33, %v4096_v48 }
 0x7b5   :  { %1569 = vrot.lane.b32.xlu1 %v1566_v11, %s4438_s24  ;;  %1567 = vrot.lane.b32.xlu0 %v1566_v11, %s4451_s4 }
 0x7b9   :  { %1571 = vrot.lane.b32.xlu1 %v1566_v11, %s4450_s16  ;;  %1632 = vrot.lane.b32.xlu0 %v1627_v27, %s4450_s16 }
 0x802   :  { %v1502_v49 = vpop.permute.xlu0 %1501  ;;  %v1504_v40 = vpop.permute.xlu1 %1503 }
 0x803   :  { %v1507_v54 = vmul.f32 %v1502_v49, %v5101_v56  ;;  %v1508_v19 = vmul.f32 %v1504_v40, %v1500_v20  ;;  %v5269_v49 = vld [vmem:[#allocation6 + $0x30] sm:$0xff]  }
 0x805   :  { %v5249_v23 = vadd.f32 %v1508_v19, %v1507_v54 }
 0x806   :  { %v1441_v61 = vpop.permute.xlu0 %1440  ;;  %v1443_v29 = vpop.permute.xlu1 %1442 }
 0x807   :  { %4097 = vtanh.f32 %v5249_v23  ;;  %v1446_v26 = vmul.f32 %v1441_v61, %v5105_v8  ;;  %v1447_v30 = vmul.f32 %v1443_v29, %v1439_v22  ;;  %v5261_v8 = vld [vmem:[#allocation6 + $0x38] sm:$0xff]   ;;  %v5265_v22 = vld [vmem:[#allocation6 + $0x70] sm:$0xff]  }
 0x809   :  { %v5253_v39 = vadd.f32 %v1447_v30, %v1446_v26 }
 0x80a   :  { %v1506_v48 = vpop.permute.xlu0 %1505  ;;  %v1445_v25 = vpop.permute.xlu1 %1444 }
 0x80b   :  { %4099 = vtanh.f32 %v5253_v39 }
 0x814   :  { %v4098_v7 = vpop.eup %4097 }
 0x815   :  { %v5256_v4 = vmul.f32 %v4098_v7, %v1506_v48 }
 0x817   :  { %v1701_v56 = vpack.c.bf16 %v5256_v4, %v5256_v4 }
 0x818   :  { %v4100_v20 = vpop.eup %4099 }
 0x819   :  { %v1450_v59 = vmul.f32 %v4100_v20, %v1445_v25  ;;  %1734 = vmatprep.mubr.bf16.mxu0 %v1701_v56  ;;  %v1765_v20 = vrot.slane %v5256_v4, %v4861_v15 }
 0x81b   :  { %v1639_v33 = vpack.c.bf16 %v1450_v59, %v1450_v59 }
 0x81d   :  { %3860 = vmatmul.mubr.bf16.vlgmr.msra.gmra.mxu1 %v1639_v33  ;;  %1735 = vmatmul.mubr.bf16.vlgmr.msra.gmra.mxu0 %v1639_v33  ;;  %v1766_v33 = vpack.c.bf16 %v1765_v20, %v1765_v20 }
 0x81e   :  { %3372 = vmatpush3.bf16.msra.mxu0 %v4929_v58  ;;  %3350 = vmatpush3.bf16.msra.mxu1 %v5261_v8  ;;  %v5273_v58 = vld [vmem:[#allocation6 + $0x68] sm:$0xff]  }
 0x81f   :  { %3373 = vmatprep.subr.bf16.mxu0 %v4931_v6  ;;  %3351 = vmatprep.subr.bf16.mxu1 %v5265_v22 }
 0x822   :  { %3374 = vmatpush3.bf16.msra.mxu0 %v4935_v2  ;;  %3352 = vmatpush3.bf16.msra.mxu1 %v5269_v49  ;;  %v5280_v2 = vld [vmem:[#allocation6 + $0x28] sm:$0xff]  }
 0x823   :  { %v1629_v40 = vpop.permute.xlu0 %1628  ;;  %v1631_v54 = vpop.permute.xlu1 %1630  ;;  %3375 = vmatprep.subr.bf16.mxu0 %v4939_v45  ;;  %3353 = vmatprep.subr.bf16.mxu1 %v5273_v58  ;;  %v5284_v45 = vld [vmem:[#allocation6 + $0x60] sm:$0xff]  }
 0x824   :  { %v1634_v6 = vmul.f32 %v1629_v40, %v5116_v46  ;;  %v1635_v19 = vmul.f32 %v1631_v54, %v1627_v27 }
 0x826   :  { %v5277_v61 = vadd.f32 %v1635_v19, %v1634_v6  ;;  %3376 = vmatpush3.bf16.msra.mxu0 %v4944_v16  ;;  %3354 = vmatpush3.bf16.msra.mxu1 %v5280_v2  ;;  %v5292_v16 = vld [vmem:[#allocation6 + $0x20] sm:$0xff]  }
 0x827   :  { %v1568_v29 = vpop.permute.xlu0 %1567  ;;  %v1570_v26 = vpop.permute.xlu1 %1569  ;;  %3377 = vmatprep.subr.bf16.mxu0 %v4948_v50  ;;  %3355 = vmatprep.subr.bf16.mxu1 %v5284_v45  ;;  %v5296_v50 = vld [vmem:[#allocation6 + $0x58] sm:$0xff]  }
 0x828   :  { %4101 = vtanh.f32 %v5277_v61  ;;  %v1573_v46 = vmul.f32 %v1568_v29, %v5124_v24  ;;  %v1574_v27 = vmul.f32 %v1570_v26, %v1566_v11  ;;  %v5301_v24 = vld [vmem:[#allocation6 + $0x18] sm:$0xff]   ;;  %v5313_v11 = vld [vmem:[#allocation6 + $0x48] sm:$0xff]  }
 0x82a   :  { %v5289_v30 = vadd.f32 %v1574_v27, %v1573_v46  ;;  %3378 = vmatpush3.bf16.msra.mxu0 %v4954_v12  ;;  %3356 = vmatpush3.bf16.msra.mxu1 %v5292_v16  ;;  %v5305_v12 = vld [vmem:[#allocation6 + $0x50] sm:$0xff]  }
 0x82b   :  { %3379 = vmatprep.subr.bf16.mxu0 %v4959_v52  ;;  %3357 = vmatprep.subr.bf16.mxu1 %v5296_v50  ;;  %v5309_v52 = vld [vmem:[#allocation6 + $0x10] sm:$0xff]   ;;  %v1633_v7 = vpop.permute.xlu0 %1632  ;;  %v1572_v25 = vpop.permute.xlu1 %1571 }
 0x82c   :  { %4103 = vtanh.f32 %v5289_v30 }
 0x82e   :  { %3380 = vmatpush3.bf16.msra.mxu0 %v4963_v17  ;;  %3358 = vmatpush3.bf16.msra.mxu1 %v5301_v24 }
 0x82f   :  { %3381 = vmatprep.subr.bf16.mxu0 %v4967_v57  ;;  %3359 = vmatprep.subr.bf16.mxu1 %v5305_v12  ;;  %v5319_v57 = vld [vmem:[#allocation6 + $0x8] sm:$0xff]  }
 0x832   :  { %3382 = vmatpush3.bf16.msra.mxu0 %v4971_v51  ;;  %3360 = vmatpush3.bf16.msra.mxu1 %v5309_v52  ;;  %v5323_v51 = vld [vmem:[#allocation6 + $0x40] sm:$0xff]  }
 0x833   :  { %3383 = vmatprep.subr.bf16.mxu0 %v4975_v63  ;;  %3361 = vmatprep.subr.bf16.mxu1 %v5313_v11  ;;  %5880 = vst [vmem:[#allocation14_spill] sm:$0xff] %v5323_v51 }
 0x835   :  { %v4102_v17 = vpop.eup %4101 }
 0x836   :  { %v5316_v48 = vmul.f32 %v4102_v17, %v1633_v7  ;;  %3384 = vmatpush3.bf16.msra.mxu0 %v4979_v13  ;;  %3362 = vmatpush3.bf16.msra.mxu1 %v5319_v57  ;;  %v5331_v13 = vld [vmem:[#allocation6] sm:$0xff]  }
 0x837   :  { %3385 = vmatprep.subr.bf16.mxu0 %v4983_v14  ;;  %3363 = vmatprep.subr.bf16.mxu1 %v5323_v51  ;;  %v5377_v7 = vld [vmem:[%s5832_s5] ss:$0 sm:$0xff] }
 0x838   :  { %5879 = vst [vmem:[#allocation18_spill] sm:$0xff] %v5316_v48  ;;  %v1828_v63 = vpack.c.bf16 %v5316_v48, %v5316_v48  ;;  %v5489_v48 = vld [vmem:[#allocation7] sm:$0xff]  }
 0x839   :  { %v4104_v56 = vpop.eup %4103 }
 0x83a   :  { %v1577_v59 = vmul.f32 %v4104_v56, %v1572_v25  ;;  %1861 = vmatprep.mubr.bf16.mxu0 %v1828_v63  ;;  %3386 = vmatpush3.bf16.msra.mxu0 %v4987_v38  ;;  %v5881_v38 = vld [vmem:[#allocation20_spill] sm:$0xff] }
 0x83b   :  { %3364 = vmatpush3.bf16.msra.mxu1 %v5331_v13  ;;  %3402 = vmatprep.subr.bf16.mxu0 %v5150_v28 }
 0x83c   :  { %v1767_v14 = vpack.c.bf16 %v1577_v59, %v1577_v59  ;;  %3863 = vmatprep.subr.bf16.mxu1 %v5868_v18 }
 0x83e   :  { %1800 = vmatprep.mubr.bf16.mxu1 %v1767_v14  ;;  %1862 = vmatmul.mubr.bf16.vlgmr.msra.gmra.mxu0 %v1767_v14 }
 0x83f   :  { %1801 = vmatmul.mubr.bf16.vlgmr.msra.gmra.mxu1 %v1766_v33  ;;  %3403 = vmatpush3.bf16.msra.mxu0 %v5154_v5 }
 0x840   :  { %3864 = vmatpush3.bf16.msra.mxu1 %v5000_v1  ;;  %3404 = vmatprep.subr.bf16.mxu0 %v5158_v37  ;;  %v5882_v1 = vld [vmem:[#allocation23_spill] sm:$0xff] }
 0x841   :  { %3865 = vmatprep.subr.bf16.mxu1 %v5868_v18  ;;  %3879 = vmatprep.mubr.msk.bf16.mxu1 %vm4448_vm0, %v5868_v18 }
 0x843   :  { %3405 = vmatpush3.bf16.msra.mxu0 %v5164_v31 }
 0x844   :  { %3866 = vmatpush3.bf16.msra.mxu1 %v5011_v41  ;;  %3406 = vmatprep.subr.bf16.mxu0 %v5168_v0  ;;  %v5883_v41 = vld [vmem:[#allocation24_spill] sm:$0xff] }
 0x845   :  { %3867 = vmatprep.subr.bf16.mxu1 %v5868_v18 }
 0x847   :  { %3407 = vmatpush3.bf16.msra.mxu0 %v5172_v3 }
 0x848   :  { %3868 = vmatpush3.bf16.msra.mxu1 %v5020_v42  ;;  %3408 = vmatprep.subr.bf16.mxu0 %v5176_v47  ;;  %v5884_v42 = vld [vmem:[#allocation21_spill] sm:$0xff] }
 0x849   :  { %3869 = vmatprep.subr.bf16.mxu1 %v5868_v18 }
 0x84b   :  { %3409 = vmatpush3.bf16.msra.mxu0 %v5180_v9 }
 0x84c   :  { %3870 = vmatpush3.bf16.msra.mxu1 %v5029_v43  ;;  %3410 = vmatprep.subr.bf16.mxu0 %v5184_v35  ;;  %v5885_v43 = vld [vmem:[#allocation19_spill] sm:$0xff] }
 0x84d   :  { %3871 = vmatprep.subr.bf16.mxu1 %v5868_v18 }
 0x84f   :  { %3411 = vmatpush3.bf16.msra.mxu0 %v5188_v34 }
 0x850   :  { %3872 = vmatpush3.bf16.msra.mxu1 %v5038_v44  ;;  %3412 = vmatprep.subr.bf16.mxu0 %v5192_v55  ;;  %v5369_v44 = vld [vmem:[#allocation6 + $0x78] sm:$0xff]  }
 0x851   :  { %3873 = vmatprep.subr.bf16.mxu1 %v5868_v18 }
 0x853   :  { %3413 = vmatpush3.bf16.msra.mxu0 %v5196_v36 }
 0x854   :  { %3874 = vmatpush3.bf16.msra.mxu1 %v5047_v53  ;;  %3414 = vmatprep.subr.bf16.mxu0 %v5200_v10  ;;  %v5886_v53 = vld [vmem:[#allocation13_spill] sm:$0xff] }
 0x855   :  { %3875 = vmatprep.subr.bf16.mxu1 %v5868_v18  ;;  %v283_v4 = vadd.f32 %v5221_v21, %v5886_v53 }
 0x857   :  { %3415 = vmatpush3.bf16.msra.mxu0 %v5204_v32 }
 0x858   :  { %3876 = vmatpush3.bf16.msra.mxu1 %v5881_v38  ;;  %3416 = vmatprep.subr.bf16.mxu0 %v5882_v1 }
 0x859   :  { %3877 = vmatprep.subr.bf16.mxu1 %v5868_v18 }
 0x85b   :  { %3417 = vmatpush3.bf16.msra.mxu0 %v5883_v41 }
 0x85c   :  { %3878 = vmatpush3.bf16.msra.mxu1 %v5884_v42  ;;  %3446 = vmatprep.subr.bf16.mxu0 %v5885_v43 }
 0x85d   :  { %3424 = vmatprep.subr.bf16.mxu1 %v5369_v44 }
 0x8dd   :  { %v1674_v40 = vpop.f32.mrf.mxu1  ;;  %v3343_v54 = vpop.f32.mrf.mxu0 }
 0x8de   :  { %v1680_v6 = vadd.f32 %v1674_v40, %v283_v4 }
 0x8df   :  { %v3861_v19 = vpop.f32.mrf.mxu1  ;;  %v3344_v29 = vpop.f32.mrf.mxu0 }
 0x8e0   :  { %v3014_v26 = vmul.f32 -1.442695, %v1680_v6  ;;  %v3345_v46 = vadd.f32 %v3344_v29, %v3343_v54 }
 0x8e1   :  { %v1677_v27 = vpop.f32.mrf.mxu1  ;;  %v3346_v17 = vpop.f32.mrf.mxu0 }
 0x8e2   :  { %4105 = vpow2.f32 %v3014_v26  ;;  %v1737_v63 = vadd.f32 %v5377_v7, %v3345_v46  ;;  %v5384_v27 = vld [vmem:[%s5834_s7] ss:$0 sm:$0xff] }
 0x8e3   :  { %v3862_v56 = vpop.f32.mrf.mxu1  ;;  %v3347_v20 = vpop.f32.mrf.mxu0 }
 0x8e4   :  { %v3016_v25 = vmul.f32 -1.442695, %v1737_v63 }
 0x8e6   :  { %4107 = vpow2.f32 %v3016_v25 }
 0x8ef   :  { %v4106_v59 = vpop.eup %4105 }
 0x8f0   :  { %v1684_v14 = vadd.f32 1.0, %v4106_v59 }
 0x8f2   :  { %4109 = vrcp.f32 %v1684_v14 }
 0x8f3   :  { %v4108_v33 = vpop.eup %4107 }
 0x8f4   :  { %v1745_v38 = vadd.f32 1.0, %v4108_v33 }
 0x8f6   :  { %4111 = vrcp.f32 %v1745_v38 }
 0x8fe   :  { %v3387_v42 = vpop.f32.mrf.mxu0 }
 0x8ff   :  { %v3365_v43 = vpop.f32.mrf.mxu1  ;;  %v4110_v4 = vpop.eup %4109 }
 0x900   :  { %v3388_v53 = vpop.f32.mrf.mxu0  ;;  %v1687_v20 = vmul.f32 2.0, %v4110_v4 }
 0x901   :  { %v3389_v40 = vadd.f32 %v3388_v53, %v3387_v42  ;;  %v3366_v54 = vpop.f32.mrf.mxu1 }
 0x902   :  { %v3367_v6 = vadd.f32 %v3366_v54, %v3365_v43  ;;  %v3390_v19 = vpop.f32.mrf.mxu0  ;;  %v3015_v38 = vadd.f32 -1.0, %v1687_v20 }
 0x903   :  { %v4112_v29 = vpop.eup %4111  ;;  %v1864_v26 = vadd.f32 %v3389_v40, %v5076_v60  ;;  %v3368_v46 = vpop.f32.mrf.mxu1 }
 0x904   :  { %v1803_v17 = vadd.f32 %v5384_v27, %v3367_v6  ;;  %v3391_v63 = vpop.f32.mrf.mxu0  ;;  %v1748_v56 = vmul.f32 2.0, %v4112_v29  ;;  %v1689_v42 = vsel %vm4684_vm6, %v3015_v38, %v4110_v4 }
 0x905   :  { %v3020_v25 = vmul.f32 -1.442695, %v1864_v26  ;;  %v3369_v59 = vpop.f32.mrf.mxu1 }
 0x906   :  { %v3018_v14 = vmul.f32 -1.442695, %v1803_v17  ;;  %v3017_v33 = vadd.f32 -1.0, %v1748_v56 }
 0x907   :  { %4113 = vpow2.f32 %v3020_v25 }
 0x908   :  { %4115 = vpow2.f32 %v3018_v14  ;;  %v1750_v60 = vsel %vm4684_vm6, %v3017_v33, %v4112_v29 }
 0x909   :  { %1753 = vrot.lane.b32.xlu1 %v1750_v60, %s4438_s24  ;;  %1751 = vrot.lane.b32.xlu0 %v1750_v60, %s4451_s4 }
 0x90d   :  { %1692 = vrot.lane.b32.xlu1 %v1689_v42, %s4438_s24  ;;  %1690 = vrot.lane.b32.xlu0 %v1689_v42, %s4451_s4 }
 0x911   :  { %1694 = vrot.lane.b32.xlu1 %v1689_v42, %s4450_s16  ;;  %1755 = vrot.lane.b32.xlu0 %v1750_v60, %s4450_s16 }
 0x914   :  { %v4114_v43 = vpop.eup %4113 }
 0x915   :  { %v4116_v53 = vpop.eup %4115  ;;  %v1872_v40 = vadd.f32 1.0, %v4114_v43 }
 0x916   :  { %v1811_v54 = vadd.f32 1.0, %v4116_v53 }
 0x917   :  { %4117 = vrcp.f32 %v1872_v40 }
 0x918   :  { %4119 = vrcp.f32 %v1811_v54 }
 0x924   :  { %v4118_v6 = vpop.eup %4117 }
 0x925   :  { %v4120_v19 = vpop.eup %4119  ;;  %v1875_v29 = vmul.f32 2.0, %v4118_v6 }
 0x926   :  { %v1814_v26 = vmul.f32 2.0, %v4120_v19 }
 0x927   :  { %v3021_v46 = vadd.f32 -1.0, %v1875_v29 }
 0x928   :  { %v3019_v17 = vadd.f32 -1.0, %v1814_v26 }
 0x929   :  { %v1877_v4 = vsel %vm4684_vm6, %v3021_v46, %v4118_v6 }
 0x92a   :  { %1880 = vrot.lane.b32.xlu1 %v1877_v4, %s4438_s24  ;;  %1878 = vrot.lane.b32.xlu0 %v1877_v4, %s4451_s4  ;;  %v1816_v63 = vsel %vm4684_vm6, %v3019_v17, %v4120_v19  ;;  %v5427_v17 = vld [vmem:[#allocation7 + $0x30] sm:$0xff]  }
 0x92e   :  { %1819 = vrot.lane.b32.xlu1 %v1816_v63, %s4438_s24  ;;  %1817 = vrot.lane.b32.xlu0 %v1816_v63, %s4451_s4 }
 0x932   :  { %1821 = vrot.lane.b32.xlu1 %v1816_v63, %s4450_s16  ;;  %1882 = vrot.lane.b32.xlu0 %v1877_v4, %s4450_s16 }
 0x97b   :  { %v1752_v56 = vpop.permute.xlu0 %1751  ;;  %v1754_v20 = vpop.permute.xlu1 %1753 }
 0x97c   :  { %v1757_v25 = vmul.f32 %v1752_v56, %v5249_v23  ;;  %v1758_v59 = vmul.f32 %v1754_v20, %v1750_v60 }
 0x97e   :  { %v5408_v14 = vadd.f32 %v1758_v59, %v1757_v25  ;;  %v5431_v25 = vld [vmem:[#allocation7 + $0x68] sm:$0xff]  }
 0x97f   :  { %v1691_v33 = vpop.permute.xlu0 %1690  ;;  %v1693_v38 = vpop.permute.xlu1 %1692 }
 0x980   :  { %4121 = vtanh.f32 %v5408_v14  ;;  %v1696_v43 = vmul.f32 %v1691_v33, %v5253_v39  ;;  %v1697_v53 = vmul.f32 %v1693_v38, %v1689_v42  ;;  %v5419_v39 = vld [vmem:[#allocation7 + $0x38] sm:$0xff]   ;;  %v5423_v42 = vld [vmem:[#allocation7 + $0x70] sm:$0xff]  }
 0x982   :  { %v5412_v40 = vadd.f32 %v1697_v53, %v1696_v43  ;;  %v5438_v43 = vld [vmem:[#allocation7 + $0x28] sm:$0xff]  }
 0x983   :  { %v1756_v6 = vpop.permute.xlu0 %1755  ;;  %v1695_v29 = vpop.permute.xlu1 %1694 }
 0x984   :  { %4123 = vtanh.f32 %v5412_v40 }
 0x98d   :  { %v4122_v54 = vpop.eup %4121 }
 0x98e   :  { %v5415_v19 = vmul.f32 %v4122_v54, %v1756_v6  ;;  %v5442_v6 = vld [vmem:[#allocation7 + $0x60] sm:$0xff]  }
 0x990   :  { %v1951_v23 = vpack.c.bf16 %v5415_v19, %v5415_v19 }
 0x991   :  { %v4124_v60 = vpop.eup %4123 }
 0x992   :  { %v1700_v26 = vmul.f32 %v4124_v60, %v1695_v29  ;;  %1984 = vmatprep.mubr.bf16.mxu0 %v1951_v23  ;;  %v5450_v60 = vld [vmem:[#allocation7 + $0x20] sm:$0xff]   ;;  %v5454_v29 = vld [vmem:[#allocation7 + $0x58] sm:$0xff]  }
 0x994   :  { %v1889_v46 = vpack.c.bf16 %v1700_v26, %v1700_v26  ;;  %v5459_v26 = vld [vmem:[#allocation7 + $0x18] sm:$0xff]  }
 0x996   :  { %3880 = vmatmul.mubr.bf16.vlgmr.msra.gmra.mxu1 %v1889_v46  ;;  %1985 = vmatmul.mubr.bf16.vlgmr.msra.gmra.mxu0 %v1889_v46  ;;  %v5471_v46 = vld [vmem:[#allocation7 + $0x48] sm:$0xff]  }
 0x997   :  { %3447 = vmatpush3.bf16.msra.mxu0 %v5419_v39  ;;  %3425 = vmatpush3.bf16.msra.mxu1 %v5261_v8 }
 0x998   :  { %3448 = vmatprep.subr.bf16.mxu0 %v5423_v42  ;;  %3426 = vmatprep.subr.bf16.mxu1 %v5265_v22 }
 0x99b   :  { %3449 = vmatpush3.bf16.msra.mxu0 %v5427_v17  ;;  %3427 = vmatpush3.bf16.msra.mxu1 %v5269_v49 }
 0x99c   :  { %v1879_v56 = vpop.permute.xlu0 %1878  ;;  %v1881_v20 = vpop.permute.xlu1 %1880  ;;  %3450 = vmatprep.subr.bf16.mxu0 %v5431_v25  ;;  %3428 = vmatprep.subr.bf16.mxu1 %v5273_v58 }
 0x99d   :  { %v1884_v59 = vmul.f32 %v1879_v56, %v5277_v61  ;;  %v1885_v33 = vmul.f32 %v1881_v20, %v1877_v4 }
 0x99f   :  { %v5436_v38 = vadd.f32 %v1885_v33, %v1884_v59  ;;  %3451 = vmatpush3.bf16.msra.mxu0 %v5438_v43  ;;  %3429 = vmatpush3.bf16.msra.mxu1 %v5280_v2  ;;  %v5477_v33 = vld [vmem:[#allocation7 + $0x8] sm:$0xff]  }
 0x9a0   :  { %v1818_v53 = vpop.permute.xlu0 %1817  ;;  %v1820_v54 = vpop.permute.xlu1 %1819  ;;  %3452 = vmatprep.subr.bf16.mxu0 %v5442_v6  ;;  %3430 = vmatprep.subr.bf16.mxu1 %v5284_v45 }
 0x9a1   :  { %4125 = vtanh.f32 %v5436_v38  ;;  %v1823_v61 = vmul.f32 %v1818_v53, %v5289_v30  ;;  %v1824_v4 = vmul.f32 %v1820_v54, %v1816_v63  ;;  %v5463_v30 = vld [vmem:[#allocation7 + $0x50] sm:$0xff]   ;;  %v5481_v53 = vld [vmem:[#allocation7 + $0x40] sm:$0xff]  }
 0x9a2   :  { %v5467_v63 = vld [vmem:[#allocation7 + $0x10] sm:$0xff]   ;;  %5887 = vst [vmem:[#allocation17_spill] sm:$0xff] %v5481_v53 }
 0x9a3   :  { %v5448_v23 = vadd.f32 %v1824_v4, %v1823_v61  ;;  %3453 = vmatpush3.bf16.msra.mxu0 %v5450_v60  ;;  %3431 = vmatpush3.bf16.msra.mxu1 %v5292_v16  ;;  %v2015_v4 = vrot.slane %v5415_v19, %v4861_v15  ;;  %v4271_v19 = vld [vmem:[%s5830_s3 + $0x38] sm:$0xff]  }
 0x9a4   :  { %3454 = vmatprep.subr.bf16.mxu0 %v5454_v29  ;;  %3432 = vmatprep.subr.bf16.mxu1 %v5296_v50  ;;  %v1883_v20 = vpop.permute.xlu0 %1882 }
 0x9a5   :  { %4127 = vtanh.f32 %v5448_v23 }
 0x9a7   :  { %3455 = vmatpush3.bf16.msra.mxu0 %v5459_v26  ;;  %3433 = vmatpush3.bf16.msra.mxu1 %v5301_v24 }
 0x9a8   :  { %3456 = vmatprep.subr.bf16.mxu0 %v5463_v30  ;;  %3434 = vmatprep.subr.bf16.mxu1 %v5305_v12 }
 0x9ab   :  { %3457 = vmatpush3.bf16.msra.mxu0 %v5467_v63  ;;  %3435 = vmatpush3.bf16.msra.mxu1 %v5309_v52 }
 0x9ac   :  { %3458 = vmatprep.subr.bf16.mxu0 %v5471_v46  ;;  %3436 = vmatprep.subr.bf16.mxu1 %v5313_v11 }
 0x9ae   :  { %v4126_v56 = vpop.eup %4125 }
 0x9af   :  { %v5475_v59 = vmul.f32 %v4126_v56, %v1883_v20  ;;  %3459 = vmatpush3.bf16.msra.mxu0 %v5477_v33  ;;  %3437 = vmatpush3.bf16.msra.mxu1 %v5319_v57  ;;  %v1822_v56 = vpop.permute.xlu1 %1821 }
 0x9b0   :  { %3460 = vmatprep.subr.bf16.mxu0 %v5481_v53  ;;  %3438 = vmatprep.subr.bf16.mxu1 %v5323_v51  ;;  %v2016_v51 = vpack.c.bf16 %v2015_v4, %v2015_v4 }
 0x9b1   :  { %v2078_v54 = vpack.c.bf16 %v5475_v59, %v5475_v59 }
 0x9b2   :  { %v4128_v61 = vpop.eup %4127 }
 0x9b3   :  { %v1827_v20 = vmul.f32 %v4128_v61, %v1822_v56  ;;  %2111 = vmatprep.mubr.bf16.mxu0 %v2078_v54  ;;  %3461 = vmatpush3.bf16.msra.mxu0 %v5489_v48 }
 0x9b4   :  { %3439 = vmatpush3.bf16.msra.mxu1 %v5331_v13  ;;  %3477 = vmatprep.subr.bf16.mxu0 %v5150_v28  ;;  %v4272_v28 = vld [vmem:[%s5830_s3 + $0x30] sm:$0xff]  }
 0x9b5   :  { %v2017_v53 = vpack.c.bf16 %v1827_v20, %v1827_v20  ;;  %3883 = vmatprep.subr.bf16.mxu1 %v5868_v18 }
 0x9b7   :  { %2050 = vmatprep.mubr.bf16.mxu1 %v2017_v53  ;;  %2112 = vmatmul.mubr.bf16.vlgmr.msra.gmra.mxu0 %v2017_v53 }
 0x9b8   :  { %2051 = vmatmul.mubr.bf16.vlgmr.msra.gmra.mxu1 %v2016_v51  ;;  %3478 = vmatpush3.bf16.msra.mxu0 %v5154_v5  ;;  %v4273_v5 = vld [vmem:[%s5830_s3 + $0x28] sm:$0xff]  }
 0x9b9   :  { %3884 = vmatpush3.bf16.msra.mxu1 %v4271_v19  ;;  %3479 = vmatprep.subr.bf16.mxu0 %v5158_v37  ;;  %v4274_v37 = vld [vmem:[%s5830_s3 + $0x20] sm:$0xff]  }
 0x9ba   :  { %3885 = vmatprep.subr.bf16.mxu1 %v5868_v18  ;;  %3899 = vmatprep.mubr.msk.bf16.mxu1 %vm4448_vm0, %v5868_v18 }
 0x9bc   :  { %3480 = vmatpush3.bf16.msra.mxu0 %v5164_v31  ;;  %v4275_v31 = vld [vmem:[%s5830_s3 + $0x18] sm:$0xff]  }
 0x9bd   :  { %3886 = vmatpush3.bf16.msra.mxu1 %v4272_v28  ;;  %3481 = vmatprep.subr.bf16.mxu0 %v5168_v0  ;;  %v4276_v0 = vld [vmem:[%s5830_s3 + $0x10] sm:$0xff]  }
 0x9be   :  { %3887 = vmatprep.subr.bf16.mxu1 %v5868_v18 }
 0x9c0   :  { %3482 = vmatpush3.bf16.msra.mxu0 %v5172_v3  ;;  %v4277_v3 = vld [vmem:[%s5830_s3 + $0x8] sm:$0xff]  }
 0x9c1   :  { %3888 = vmatpush3.bf16.msra.mxu1 %v4273_v5  ;;  %3483 = vmatprep.subr.bf16.mxu0 %v5176_v47  ;;  %v4278_v47 = vld [vmem:[%s5830_s3] sm:$0xff]  }
 0x9c2   :  { %3889 = vmatprep.subr.bf16.mxu1 %v5868_v18 }
 0x9c4   :  { %3484 = vmatpush3.bf16.msra.mxu0 %v5180_v9  ;;  %v5543_v9 = vld [vmem:[#allocation7 + $0x78] sm:$0xff]  }
 0x9c5   :  { %3890 = vmatpush3.bf16.msra.mxu1 %v4274_v37  ;;  %3485 = vmatprep.subr.bf16.mxu0 %v5184_v35  ;;  %v5888_v35 = vld [vmem:[#allocation16_spill] sm:$0xff] }
 0x9c6   :  { %3891 = vmatprep.subr.bf16.mxu1 %v5868_v18 }
 0x9c8   :  { %3486 = vmatpush3.bf16.msra.mxu0 %v5188_v34  ;;  %v288_v34 = vadd.f32 %v5221_v21, %v5888_v35 }
 0x9c9   :  { %3892 = vmatpush3.bf16.msra.mxu1 %v4275_v31  ;;  %3487 = vmatprep.subr.bf16.mxu0 %v5192_v55 }
 0x9ca   :  { %3893 = vmatprep.subr.bf16.mxu1 %v5868_v18 }
 0x9cc   :  { %3488 = vmatpush3.bf16.msra.mxu0 %v5196_v36 }
 0x9cd   :  { %3894 = vmatpush3.bf16.msra.mxu1 %v4276_v0  ;;  %3489 = vmatprep.subr.bf16.mxu0 %v5200_v10 }
 0x9ce   :  { %3895 = vmatprep.subr.bf16.mxu1 %v5868_v18 }
 0x9d0   :  { %3490 = vmatpush3.bf16.msra.mxu0 %v5204_v32 }
 0x9d1   :  { %3896 = vmatpush3.bf16.msra.mxu1 %v4277_v3  ;;  %3491 = vmatprep.subr.bf16.mxu0 %v5882_v1 }
 0x9d2   :  { %3897 = vmatprep.subr.bf16.mxu1 %v5868_v18 }
 0x9d4   :  { %3492 = vmatpush3.bf16.msra.mxu0 %v5883_v41 }
 0x9d5   :  { %3898 = vmatpush3.bf16.msra.mxu1 %v4278_v47  ;;  %3521 = vmatprep.subr.bf16.mxu0 %v5543_v9 }
 0x9d6   :  { %3499 = vmatprep.subr.bf16.mxu1 %v5369_v44 }
 0xa56   :  { %v1924_v55 = vpop.f32.mrf.mxu1  ;;  %v3418_v36 = vpop.f32.mrf.mxu0 }
 0xa57   :  { %v1930_v10 = vadd.f32 %v1924_v55, %v288_v34 }
 0xa58   :  { %v3881_v18 = vpop.f32.mrf.mxu1  ;;  %v3419_v32 = vpop.f32.mrf.mxu0 }
 0xa59   :  { %v3022_v51 = vmul.f32 -1.442695, %v1930_v10  ;;  %v3420_v1 = vadd.f32 %v3419_v32, %v3418_v36  ;;  %v5553_v36 = vld [vmem:[%s5836_s9] ss:$0 sm:$0xff] }
 0xa5a   :  { %v1927_v41 = vpop.f32.mrf.mxu1  ;;  %v3421_v53 = vpop.f32.mrf.mxu0 }
 0xa5b   :  { %4129 = vpow2.f32 %v3022_v51  ;;  %v1987_v54 = vadd.f32 %v5377_v7, %v3420_v1 }
 0xa5c   :  { %v3882_v61 = vpop.f32.mrf.mxu1  ;;  %v3422_v4 = vpop.f32.mrf.mxu0 }
 0xa5d   :  { %v3024_v56 = vmul.f32 -1.442695, %v1987_v54 }
 0xa5f   :  { %4131 = vpow2.f32 %v3024_v56 }
 0xa68   :  { %v4130_v20 = vpop.eup %4129 }
 0xa69   :  { %v1934_v19 = vadd.f32 1.0, %v4130_v20 }
 0xa6b   :  { %4133 = vrcp.f32 %v1934_v19 }
 0xa6c   :  { %v4132_v28 = vpop.eup %4131 }
 0xa6d   :  { %v1995_v21 = vadd.f32 1.0, %v4132_v28 }
 0xa6f   :  { %4135 = vrcp.f32 %v1995_v21 }
 0xa77   :  { %v3462_v5 = vpop.f32.mrf.mxu0 }
 0xa78   :  { %v3440_v37 = vpop.f32.mrf.mxu1  ;;  %v4134_v0 = vpop.eup %4133 }
 0xa79   :  { %v3463_v31 = vpop.f32.mrf.mxu0  ;;  %v1937_v41 = vmul.f32 2.0, %v4134_v0 }
 0xa7a   :  { %v3464_v3 = vadd.f32 %v3463_v31, %v3462_v5  ;;  %v3441_v47 = vpop.f32.mrf.mxu1 }
 0xa7b   :  { %v3442_v35 = vadd.f32 %v3441_v47, %v3440_v37  ;;  %v3465_v34 = vpop.f32.mrf.mxu0  ;;  %v3023_v20 = vadd.f32 -1.0, %v1937_v41 }
 0xa7c   :  { %v4136_v55 = vpop.eup %4135  ;;  %v2114_v10 = vadd.f32 %v5553_v36, %v3464_v3  ;;  %v3443_v18 = vpop.f32.mrf.mxu1 }
 0xa7d   :  { %v2053_v32 = vadd.f32 %v5384_v27, %v3442_v35  ;;  %v3466_v51 = vpop.f32.mrf.mxu0  ;;  %v1998_v1 = vmul.f32 2.0, %v4136_v55  ;;  %v1939_v19 = vsel %vm4684_vm6, %v3023_v20, %v4134_v0 }
 0xa7e   :  { %v3028_v53 = vmul.f32 -1.442695, %v2114_v10  ;;  %v3444_v54 = vpop.f32.mrf.mxu1 }
 0xa7f   :  { %v3026_v61 = vmul.f32 -1.442695, %v2053_v32  ;;  %v3025_v4 = vadd.f32 -1.0, %v1998_v1 }
 0xa80   :  { %4137 = vpow2.f32 %v3028_v53 }
 0xa81   :  { %4139 = vpow2.f32 %v3026_v61  ;;  %v2000_v56 = vsel %vm4684_vm6, %v3025_v4, %v4136_v55 }
 0xa82   :  { %2003 = vrot.lane.b32.xlu1 %v2000_v56, %s4438_s24  ;;  %2001 = vrot.lane.b32.xlu0 %v2000_v56, %s4451_s4 }
 0xa86   :  { %1942 = vrot.lane.b32.xlu1 %v1939_v19, %s4438_s24  ;;  %1940 = vrot.lane.b32.xlu0 %v1939_v19, %s4451_s4 }
 0xa8a   :  { %1944 = vrot.lane.b32.xlu1 %v1939_v19, %s4450_s16  ;;  %2005 = vrot.lane.b32.xlu0 %v2000_v56, %s4450_s16 }
 0xa8d   :  { %v4138_v28 = vpop.eup %4137 }
 0xa8e   :  { %v4140_v21 = vpop.eup %4139  ;;  %v2122_v5 = vadd.f32 1.0, %v4138_v28 }
 0xa8f   :  { %v2061_v37 = vadd.f32 1.0, %v4140_v21 }
 0xa90   :  { %4141 = vrcp.f32 %v2122_v5 }
 0xa91   :  { %4143 = vrcp.f32 %v2061_v37 }
 0xa9d   :  { %v4142_v31 = vpop.eup %4141 }
 0xa9e   :  { %v4144_v3 = vpop.eup %4143  ;;  %v2125_v47 = vmul.f32 2.0, %v4142_v31 }
 0xa9f   :  { %v2064_v35 = vmul.f32 2.0, %v4144_v3 }
 0xaa0   :  { %v3029_v34 = vadd.f32 -1.0, %v2125_v47 }
 0xaa1   :  { %v3027_v55 = vadd.f32 -1.0, %v2064_v35 }
 0xaa2   :  { %v2127_v0 = vsel %vm4684_vm6, %v3029_v34, %v4142_v31 }
 0xaa3   :  { %2130 = vrot.lane.b32.xlu1 %v2127_v0, %s4438_s24  ;;  %2128 = vrot.lane.b32.xlu0 %v2127_v0, %s4451_s4  ;;  %v2066_v10 = vsel %vm4684_vm6, %v3027_v55, %v4144_v3 }
 0xaa7   :  { %2069 = vrot.lane.b32.xlu1 %v2066_v10, %s4438_s24  ;;  %2067 = vrot.lane.b32.xlu0 %v2066_v10, %s4451_s4 }
 0xaab   :  { %2071 = vrot.lane.b32.xlu1 %v2066_v10, %s4450_s16  ;;  %2132 = vrot.lane.b32.xlu0 %v2127_v0, %s4450_s16 }
 0xaf4   :  { %v2002_v18 = vpop.permute.xlu0 %2001  ;;  %v2004_v32 = vpop.permute.xlu1 %2003 }
 0xaf5   :  { %v2007_v51 = vmul.f32 %v2002_v18, %v5408_v14  ;;  %v2008_v1 = vmul.f32 %v2004_v32, %v2000_v56 }
 0xaf7   :  { %v5578_v41 = vadd.f32 %v2008_v1, %v2007_v51 }
 0xaf8   :  { %v1941_v53 = vpop.permute.xlu0 %1940  ;;  %v1943_v54 = vpop.permute.xlu1 %1942 }
 0xaf9   :  { %4145 = vtanh.f32 %v5578_v41  ;;  %v1946_v61 = vmul.f32 %v1941_v53, %v5412_v40  ;;  %v1947_v4 = vmul.f32 %v1943_v54, %v1939_v19  ;;  %v5890_v53 = vld [vmem:[#allocation14_spill] sm:$0xff] }
 0xafb   :  { %v5582_v20 = vadd.f32 %v1947_v4, %v1946_v61 }
 0xafc   :  { %v2006_v21 = vpop.permute.xlu0 %2005  ;;  %v1945_v14 = vpop.permute.xlu1 %1944 }
 0xafd   :  { %4147 = vtanh.f32 %v5582_v20 }
 0xb06   :  { %v4146_v28 = vpop.eup %4145 }
 0xb07   :  { %v2011_v5 = vmul.f32 %v4146_v28, %v2006_v21 }
 0xb09   :  { %v2201_v37 = vpack.c.bf16 %v2011_v5, %v2011_v5  ;;  %v2265_v4 = vrot.slane %v2011_v5, %v4861_v15  ;;  %v4283_v5 = vld [vmem:[#allocation4 + $0x70] sm:$0xff]  }
 0xb0a   :  { %v4148_v31 = vpop.eup %4147 }
 0xb0b   :  { %v1950_v56 = vmul.f32 %v4148_v31, %v1945_v14  ;;  %2234 = vmatprep.mubr.bf16.mxu0 %v2201_v37  ;;  %v4281_v31 = vld [vmem:[#allocation4 + $0x78] sm:$0xff]   ;;  %v2266_v14 = vpack.c.bf16 %v2265_v4, %v2265_v4 }
 0xb0d   :  { %v2139_v3 = vpack.c.bf16 %v1950_v56, %v1950_v56  ;;  %v4282_v56 = vld [vmem:[#allocation4 + $0x38] sm:$0xff]  }
 0xb0f   :  { %3900 = vmatmul.mubr.bf16.vlgmr.msra.gmra.mxu1 %v2139_v3  ;;  %2235 = vmatmul.mubr.bf16.vlgmr.msra.gmra.mxu0 %v2139_v3  ;;  %v4284_v3 = vld [vmem:[#allocation4 + $0x30] sm:$0xff]  }
 0xb10   :  { %3522 = vmatpush3.bf16.msra.mxu0 %v5419_v39  ;;  %3500 = vmatpush3.bf16.msra.mxu1 %v5261_v8 }
 0xb11   :  { %3523 = vmatprep.subr.bf16.mxu0 %v5423_v42  ;;  %3501 = vmatprep.subr.bf16.mxu1 %v5265_v22 }
 0xb14   :  { %3524 = vmatpush3.bf16.msra.mxu0 %v5427_v17  ;;  %3502 = vmatpush3.bf16.msra.mxu1 %v5269_v49 }
 0xb15   :  { %v2129_v40 = vpop.permute.xlu0 %2128  ;;  %v2131_v19 = vpop.permute.xlu1 %2130  ;;  %3525 = vmatprep.subr.bf16.mxu0 %v5431_v25  ;;  %3503 = vmatprep.subr.bf16.mxu1 %v5273_v58 }
 0xb16   :  { %v2134_v47 = vmul.f32 %v2129_v40, %v5436_v38  ;;  %v2135_v35 = vmul.f32 %v2131_v19, %v2127_v0  ;;  %v4285_v40 = vld [vmem:[#allocation4 + $0x68] sm:$0xff]  }
 0xb17   :  { %v4286_v19 = vld [vmem:[#allocation4 + $0x28] sm:$0xff]  }
 0xb18   :  { %v5594_v34 = vadd.f32 %v2135_v35, %v2134_v47  ;;  %3526 = vmatpush3.bf16.msra.mxu0 %v5438_v43  ;;  %3504 = vmatpush3.bf16.msra.mxu1 %v5280_v2 }
 0xb19   :  { %v2068_v55 = vpop.permute.xlu0 %2067  ;;  %v2070_v18 = vpop.permute.xlu1 %2069  ;;  %3527 = vmatprep.subr.bf16.mxu0 %v5442_v6  ;;  %3505 = vmatprep.subr.bf16.mxu1 %v5284_v45 }
 0xb1a   :  { %4149 = vtanh.f32 %v5594_v34  ;;  %v2073_v32 = vmul.f32 %v2068_v55, %v5448_v23  ;;  %v2074_v51 = vmul.f32 %v2070_v18, %v2066_v10  ;;  %v5889_v10 = vld [vmem:[#allocation17_spill] sm:$0xff] }
 0xb1c   :  { %v5602_v1 = vadd.f32 %v2074_v51, %v2073_v32  ;;  %3528 = vmatpush3.bf16.msra.mxu0 %v5450_v60  ;;  %3506 = vmatpush3.bf16.msra.mxu1 %v5292_v16 }
 0xb1d   :  { %3529 = vmatprep.subr.bf16.mxu0 %v5454_v29  ;;  %3507 = vmatprep.subr.bf16.mxu1 %v5296_v50  ;;  %v2133_v23 = vpop.permute.xlu0 %2132  ;;  %v2072_v28 = vpop.permute.xlu1 %2071 }
 0xb1e   :  { %4151 = vtanh.f32 %v5602_v1 }
 0xb20   :  { %3530 = vmatpush3.bf16.msra.mxu0 %v5459_v26  ;;  %3508 = vmatpush3.bf16.msra.mxu1 %v5301_v24 }
 0xb21   :  { %3531 = vmatprep.subr.bf16.mxu0 %v5463_v30  ;;  %3509 = vmatprep.subr.bf16.mxu1 %v5305_v12 }
 0xb24   :  { %3532 = vmatpush3.bf16.msra.mxu0 %v5467_v63  ;;  %3510 = vmatpush3.bf16.msra.mxu1 %v5309_v52 }
 0xb25   :  { %3533 = vmatprep.subr.bf16.mxu0 %v5471_v46  ;;  %3511 = vmatprep.subr.bf16.mxu1 %v5313_v11 }
 0xb27   :  { %v4150_v38 = vpop.eup %4149 }
 0xb28   :  { %v5617_v0 = vmul.f32 %v4150_v38, %v2133_v23  ;;  %3534 = vmatpush3.bf16.msra.mxu0 %v5477_v33  ;;  %3512 = vmatpush3.bf16.msra.mxu1 %v5319_v57 }
 0xb29   :  { %3535 = vmatprep.subr.bf16.mxu0 %v5889_v10  ;;  %3513 = vmatprep.subr.bf16.mxu1 %v5890_v53 }
 0xb2a   :  { %v2328_v54 = vpack.c.bf16 %v5617_v0, %v5617_v0 }
 0xb2b   :  { %v4152_v61 = vpop.eup %4151 }
 0xb2c   :  { %v2077_v21 = vmul.f32 %v4152_v61, %v2072_v28  ;;  %2361 = vmatprep.mubr.bf16.mxu0 %v2328_v54  ;;  %3536 = vmatpush3.bf16.msra.mxu0 %v5489_v48 }
 0xb2d   :  { %3514 = vmatpush3.bf16.msra.mxu1 %v5331_v13  ;;  %3565 = vmatprep.subr.bf16.mxu0 %v5369_v44 }
 0xb2e   :  { %v2267_v37 = vpack.c.bf16 %v2077_v21, %v2077_v21  ;;  %3543 = vmatprep.subr.bf16.mxu1 %v4281_v31 }
 0xb30   :  { %2300 = vmatprep.mubr.bf16.mxu1 %v2267_v37  ;;  %2362 = vmatmul.mubr.bf16.vlgmr.msra.gmra.mxu0 %v2267_v37 }
 0xb31   :  { %2301 = vmatmul.mubr.bf16.vlgmr.msra.gmra.mxu1 %v2266_v14  ;;  %3566 = vmatpush3.bf16.msra.mxu0 %v5261_v8  ;;  %v4287_v8 = vld [vmem:[#allocation4 + $0x60] sm:$0xff]  }
 0xb32   :  { %3544 = vmatpush3.bf16.msra.mxu1 %v4282_v56  ;;  %3567 = vmatprep.subr.bf16.mxu0 %v5265_v22  ;;  %v4288_v22 = vld [vmem:[#allocation4 + $0x20] sm:$0xff]  }
 0xb33   :  { %3545 = vmatprep.subr.bf16.mxu1 %v4283_v5 }
 0xb35   :  { %3568 = vmatpush3.bf16.msra.mxu0 %v5269_v49  ;;  %v4289_v49 = vld [vmem:[#allocation4 + $0x58] sm:$0xff]  }
 0xb36   :  { %3546 = vmatpush3.bf16.msra.mxu1 %v4284_v3  ;;  %3569 = vmatprep.subr.bf16.mxu0 %v5273_v58  ;;  %v4290_v58 = vld [vmem:[#allocation4 + $0x18] sm:$0xff]  }
 0xb37   :  { %3547 = vmatprep.subr.bf16.mxu1 %v4285_v40 }
 0xb39   :  { %3570 = vmatpush3.bf16.msra.mxu0 %v5280_v2  ;;  %v4291_v2 = vld [vmem:[#allocation4 + $0x50] sm:$0xff]  }
 0xb3a   :  { %3548 = vmatpush3.bf16.msra.mxu1 %v4286_v19  ;;  %3571 = vmatprep.subr.bf16.mxu0 %v5284_v45  ;;  %v4292_v45 = vld [vmem:[#allocation4 + $0x10] sm:$0xff]  }
 0xb3b   :  { %3549 = vmatprep.subr.bf16.mxu1 %v4287_v8 }
 0xb3d   :  { %3572 = vmatpush3.bf16.msra.mxu0 %v5292_v16  ;;  %v4293_v16 = vld [vmem:[#allocation4 + $0x48] sm:$0xff]  }
 0xb3e   :  { %3550 = vmatpush3.bf16.msra.mxu1 %v4288_v22  ;;  %3573 = vmatprep.subr.bf16.mxu0 %v5296_v50  ;;  %v4294_v50 = vld [vmem:[#allocation4 + $0x8] sm:$0xff]  }
 0xb3f   :  { %3551 = vmatprep.subr.bf16.mxu1 %v4289_v49 }
 0xb41   :  { %3574 = vmatpush3.bf16.msra.mxu0 %v5301_v24  ;;  %v4295_v24 = vld [vmem:[#allocation4 + $0x40] sm:$0xff]  }
 0xb42   :  { %3552 = vmatpush3.bf16.msra.mxu1 %v4290_v58  ;;  %3575 = vmatprep.subr.bf16.mxu0 %v5305_v12  ;;  %v4296_v12 = vld [vmem:[#allocation4] sm:$0xff]  }
 0xb43   :  { %3553 = vmatprep.subr.bf16.mxu1 %v4291_v2 }
 0xb45   :  { %3576 = vmatpush3.bf16.msra.mxu0 %v5309_v52  ;;  %v4297_v52 = vld [vmem:[%s5829_s2] ss:$0 sm:$0xff] }
 0xb46   :  { %3554 = vmatpush3.bf16.msra.mxu1 %v4292_v45  ;;  %3577 = vmatprep.subr.bf16.mxu0 %v5313_v11  ;;  %v5891_v11 = vld [vmem:[#allocation15_spill] sm:$0xff] }
 0xb47   :  { %3555 = vmatprep.subr.bf16.mxu1 %v4293_v16 }
 0xb49   :  { %3578 = vmatpush3.bf16.msra.mxu0 %v5319_v57  ;;  %v293_v57 = vadd.f32 %v4297_v52, %v5891_v11 }
 0xb4a   :  { %3556 = vmatpush3.bf16.msra.mxu1 %v4294_v50  ;;  %3579 = vmatprep.subr.bf16.mxu0 %v5890_v53 }
 0xb4b   :  { %3557 = vmatprep.subr.bf16.mxu1 %v4295_v24 }
 0xb4d   :  { %3580 = vmatpush3.bf16.msra.mxu0 %v5331_v13 }
 0xb4e   :  { %3558 = vmatpush3.bf16.msra.mxu1 %v4296_v12  ;;  %3609 = vmatprep.subr.bf16.mxu0 %v5369_v44 }
 0xb4f   :  { %3587 = vmatprep.subr.bf16.mxu1 %v5543_v9 }
 0xbcf   :  { %v2174_v47 = vpop.f32.mrf.mxu1  ;;  %v3493_v35 = vpop.f32.mrf.mxu0 }
 0xbd0   :  { %v2180_v55 = vadd.f32 %v2174_v47, %v293_v57 }
 0xbd1   :  { %v3901_v18 = vpop.f32.mrf.mxu1  ;;  %v3494_v32 = vpop.f32.mrf.mxu0 }
 0xbd2   :  { %v3030_v51 = vmul.f32 -1.442695, %v2180_v55  ;;  %v3495_v38 = vadd.f32 %v3494_v32, %v3493_v35 }
 0xbd3   :  { %v2177_v13 = vpop.f32.mrf.mxu1  ;;  %v3496_v23 = vpop.f32.mrf.mxu0 }
 0xbd4   :  { %4153 = vpow2.f32 %v3030_v51  ;;  %v2237_v44 = vadd.f32 %v5377_v7, %v3495_v38 }
 0xbd5   :  { %v3902_v53 = vpop.f32.mrf.mxu1  ;;  %v3497_v54 = vpop.f32.mrf.mxu0 }
 0xbd6   :  { %v3032_v61 = vmul.f32 -1.442695, %v2237_v44 }
 0xbd8   :  { %4155 = vpow2.f32 %v3032_v61 }
 0xbe1   :  { %v4154_v4 = vpop.eup %4153 }
 0xbe2   :  { %v2184_v28 = vadd.f32 1.0, %v4154_v4 }
 0xbe4   :  { %4157 = vrcp.f32 %v2184_v28 }
 0xbe5   :  { %v4156_v21 = vpop.eup %4155 }
 0xbe6   :  { %v2245_v37 = vadd.f32 1.0, %v4156_v21 }
 0xbe8   :  { %4159 = vrcp.f32 %v2245_v37 }
 0xbf0   :  { %v3537_v31 = vpop.f32.mrf.mxu0 }
 0xbf1   :  { %v3515_v14 = vpop.f32.mrf.mxu1  ;;  %v4158_v5 = vpop.eup %4157 }
 0xbf2   :  { %v3538_v56 = vpop.f32.mrf.mxu0  ;;  %v2187_v16 = vmul.f32 2.0, %v4158_v5 }
 0xbf3   :  { %v3539_v3 = vadd.f32 %v3538_v56, %v3537_v31  ;;  %v3516_v40 = vpop.f32.mrf.mxu1 }
 0xbf4   :  { %v3517_v19 = vadd.f32 %v3516_v40, %v3515_v14  ;;  %v3540_v8 = vpop.f32.mrf.mxu0  ;;  %v3031_v57 = vadd.f32 -1.0, %v2187_v16 }
 0xbf5   :  { %v4160_v22 = vpop.eup %4159  ;;  %v2364_v7 = vadd.f32 %v5553_v36, %v3539_v3  ;;  %v3518_v49 = vpop.f32.mrf.mxu1 }
 0xbf6   :  { %v2303_v58 = vadd.f32 %v5384_v27, %v3517_v19  ;;  %v3541_v2 = vpop.f32.mrf.mxu0  ;;  %v2248_v45 = vmul.f32 2.0, %v4160_v22  ;;  %v2189_v27 = vsel %vm4684_vm6, %v3031_v57, %v4158_v5 }
 0xbf7   :  { %v3036_v50 = vmul.f32 -1.442695, %v2364_v7  ;;  %v3519_v24 = vpop.f32.mrf.mxu1 }
 0xbf8   :  { %v3034_v12 = vmul.f32 -1.442695, %v2303_v58  ;;  %v3033_v52 = vadd.f32 -1.0, %v2248_v45 }
 0xbf9   :  { %4161 = vpow2.f32 %v3036_v50 }
 0xbfa   :  { %4163 = vpow2.f32 %v3034_v12  ;;  %v2250_v11 = vsel %vm4684_vm6, %v3033_v52, %v4160_v22 }
 0xbfb   :  { %2253 = vrot.lane.b32.xlu1 %v2250_v11, %s4438_s24  ;;  %2251 = vrot.lane.b32.xlu0 %v2250_v11, %s4451_s4 }
 0xbff   :  { %2192 = vrot.lane.b32.xlu1 %v2189_v27, %s4438_s24  ;;  %2190 = vrot.lane.b32.xlu0 %v2189_v27, %s4451_s4 }
 0xc03   :  { %2194 = vrot.lane.b32.xlu1 %v2189_v27, %s4450_s16  ;;  %2255 = vrot.lane.b32.xlu0 %v2250_v11, %s4450_s16 }
 0xc06   :  { %v4162_v47 = vpop.eup %4161 }
 0xc07   :  { %v4164_v35 = vpop.eup %4163  ;;  %v2372_v55 = vadd.f32 1.0, %v4162_v47 }
 0xc08   :  { %v2311_v18 = vadd.f32 1.0, %v4164_v35 }
 0xc09   :  { %4165 = vrcp.f32 %v2372_v55 }
 0xc0a   :  { %4167 = vrcp.f32 %v2311_v18 }
 0xc16   :  { %v4166_v32 = vpop.eup %4165 }
 0xc17   :  { %v4168_v51 = vpop.eup %4167  ;;  %v2375_v38 = vmul.f32 2.0, %v4166_v32 }
 0xc18   :  { %v2314_v13 = vmul.f32 2.0, %v4168_v51 }
 0xc19   :  { %v3037_v23 = vadd.f32 -1.0, %v2375_v38 }
 0xc1a   :  { %v3035_v53 = vadd.f32 -1.0, %v2314_v13  ;;  %v4298_v13 = vld [vmem:[#allocation6 + $0x38] sm:$0xff]  }
 0xc1b   :  { %v2377_v44 = vsel %vm4684_vm6, %v3037_v23, %v4166_v32  ;;  %v4299_v23 = vld [vmem:[#allocation6 + $0x70] sm:$0xff]  }
 0xc1c   :  { %2380 = vrot.lane.b32.xlu1 %v2377_v44, %s4438_s24  ;;  %2378 = vrot.lane.b32.xlu0 %v2377_v44, %s4451_s4  ;;  %v2316_v54 = vsel %vm4684_vm6, %v3035_v53, %v4168_v51  ;;  %v4301_v53 = vld [vmem:[#allocation6 + $0x68] sm:$0xff]  }
 0xc20   :  { %2319 = vrot.lane.b32.xlu1 %v2316_v54, %s4438_s24  ;;  %2317 = vrot.lane.b32.xlu0 %v2316_v54, %s4451_s4 }
 0xc24   :  { %2321 = vrot.lane.b32.xlu1 %v2316_v54, %s4450_s16  ;;  %2382 = vrot.lane.b32.xlu0 %v2377_v44, %s4450_s16 }
 0xc6d   :  { %v2252_v61 = vpop.permute.xlu0 %2251  ;;  %v2254_v4 = vpop.permute.xlu1 %2253 }
 0xc6e   :  { %v2257_v28 = vmul.f32 %v2252_v61, %v5578_v41  ;;  %v2258_v21 = vmul.f32 %v2254_v4, %v2250_v11 }
 0xc70   :  { %v5674_v37 = vadd.f32 %v2258_v21, %v2257_v28 }
 0xc71   :  { %v2191_v31 = vpop.permute.xlu0 %2190  ;;  %v2193_v14 = vpop.permute.xlu1 %2192 }
 0xc72   :  { %4169 = vtanh.f32 %v5674_v37  ;;  %v2196_v56 = vmul.f32 %v2191_v31, %v5582_v20  ;;  %v2197_v5 = vmul.f32 %v2193_v14, %v2189_v27 }
 0xc74   :  { %v2198_v3 = vadd.f32 %v2197_v5, %v2196_v56 }
 0xc75   :  { %v2256_v19 = vpop.permute.xlu0 %2255  ;;  %v2195_v49 = vpop.permute.xlu1 %2194 }
 0xc76   :  { %4171 = vtanh.f32 %v2198_v3 }
 0xc7f   :  { %v4170_v40 = vpop.eup %4169 }
 0xc80   :  { %v2261_v8 = vmul.f32 %v4170_v40, %v2256_v19 }
 0xc82   :  { %v2390_v22 = vpack.c.bf16 %v2261_v8, %v2261_v8  ;;  %v2454_v55 = vrot.slane %v2261_v8, %v4861_v15 }
 0xc83   :  { %v4172_v7 = vpop.eup %4171 }
 0xc84   :  { %v2200_v58 = vmul.f32 %v4172_v7, %v2195_v49  ;;  %2423 = vmatprep.mubr.bf16.mxu1 %v2390_v22  ;;  %v2455_v38 = vpack.c.bf16 %v2454_v55, %v2454_v55  ;;  %v5730_v49 = vld [vmem:[%s5834_s7] ss:$0 sm:$0xff] }
 0xc86   :  { %v2389_v41 = vpack.c.bf16 %v2200_v58, %v2200_v58 }
 0xc88   :  { %2424 = vmatmul.mubr.bf16.vlgmr.msra.gmra.mxu1 %v2389_v41 }
 0xc89   :  { %3588 = vmatpush3.bf16.msra.mxu1 %v5419_v39 }
 0xc8a   :  { %3589 = vmatprep.subr.bf16.mxu1 %v5423_v42 }
 0xc8d   :  { %3590 = vmatpush3.bf16.msra.mxu1 %v5427_v17 }
 0xc8e   :  { %v2379_v20 = vpop.permute.xlu0 %2378  ;;  %v2381_v2 = vpop.permute.xlu1 %2380  ;;  %3591 = vmatprep.subr.bf16.mxu1 %v5431_v25 }
 0xc8f   :  { %v2384_v45 = vmul.f32 %v2379_v20, %v5594_v34  ;;  %v2385_v16 = vmul.f32 %v2381_v2, %v2377_v44  ;;  %v4300_v44 = vld [vmem:[#allocation6 + $0x30] sm:$0xff]  }
 0xc91   :  { %v5683_v50 = vadd.f32 %v2385_v16, %v2384_v45  ;;  %3592 = vmatpush3.bf16.msra.mxu1 %v5438_v43 }
 0xc92   :  { %v2318_v24 = vpop.permute.xlu0 %2317  ;;  %v2320_v12 = vpop.permute.xlu1 %2319  ;;  %3593 = vmatprep.subr.bf16.mxu1 %v5442_v6 }
 0xc93   :  { %4173 = vtanh.f32 %v5683_v50  ;;  %v2323_v52 = vmul.f32 %v2318_v24, %v5602_v1  ;;  %v2324_v11 = vmul.f32 %v2320_v12, %v2316_v54  ;;  %v4302_v54 = vld [vmem:[#allocation6 + $0x28] sm:$0xff]  }
 0xc95   :  { %v5689_v57 = vadd.f32 %v2324_v11, %v2323_v52  ;;  %3594 = vmatpush3.bf16.msra.mxu1 %v5450_v60 }
 0xc96   :  { %3595 = vmatprep.subr.bf16.mxu1 %v5454_v29  ;;  %v2383_v27 = vpop.permute.xlu0 %2382  ;;  %v2322_v18 = vpop.permute.xlu1 %2321 }
 0xc97   :  { %4175 = vtanh.f32 %v5689_v57 }
 0xc99   :  { %3596 = vmatpush3.bf16.msra.mxu1 %v5459_v26 }
 0xc9a   :  { %3597 = vmatprep.subr.bf16.mxu1 %v5463_v30 }
 0xc9d   :  { %3598 = vmatpush3.bf16.msra.mxu1 %v5467_v63 }
 0xc9e   :  { %3599 = vmatprep.subr.bf16.mxu1 %v5471_v46 }
 0xca0   :  { %v4174_v34 = vpop.eup %4173 }
 0xca1   :  { %v5698_v1 = vmul.f32 %v4174_v34, %v2383_v27  ;;  %3600 = vmatpush3.bf16.msra.mxu1 %v5477_v33 }
 0xca2   :  { %3601 = vmatprep.subr.bf16.mxu1 %v5889_v10 }
 0xca3   :  { %v2517_v47 = vpack.c.bf16 %v5698_v1, %v5698_v1 }
 0xca4   :  { %v4176_v35 = vpop.eup %4175 }
 0xca5   :  { %v2327_v32 = vmul.f32 %v4176_v35, %v2322_v18  ;;  %2550 = vmatprep.mubr.bf16.mxu1 %v2517_v47  ;;  %3602 = vmatpush3.bf16.msra.mxu1 %v5489_v48 }
 0xca6   :  { %3631 = vmatprep.subr.bf16.mxu1 %v5543_v9 }
 0xca7   :  { %v2456_v51 = vpack.c.bf16 %v2327_v32, %v2327_v32 }
 0xca9   :  { %2489 = vmatprep.mubr.bf16.mxu0 %v2456_v51  ;;  %2551 = vmatmul.mubr.bf16.vlgmr.msra.gmra.mxu1 %v2456_v51 }
 0xcaa   :  { %2490 = vmatmul.mubr.bf16.vlgmr.msra.gmra.mxu0 %v2455_v38  ;;  %3632 = vmatpush3.bf16.msra.mxu1 %v5419_v39  ;;  %v4303_v39 = vld [vmem:[#allocation6 + $0x60] sm:$0xff]  }
 0xcab   :  { %3610 = vmatpush3.bf16.msra.mxu0 %v4298_v13  ;;  %3633 = vmatprep.subr.bf16.mxu1 %v5423_v42  ;;  %v4304_v42 = vld [vmem:[#allocation6 + $0x20] sm:$0xff]  }
 0xcac   :  { %3611 = vmatprep.subr.bf16.mxu0 %v4299_v23  ;;  %v2782_v23 = vld [vmem:[#allocation9 + $0x78] sm:$0xff] }
 0xcae   :  { %3634 = vmatpush3.bf16.msra.mxu1 %v5427_v17  ;;  %v4305_v17 = vld [vmem:[#allocation6 + $0x58] sm:$0xff]  }
 0xcaf   :  { %3612 = vmatpush3.bf16.msra.mxu0 %v4300_v44  ;;  %3635 = vmatprep.subr.bf16.mxu1 %v5431_v25  ;;  %v4306_v25 = vld [vmem:[#allocation6 + $0x18] sm:$0xff]  }
 0xcb0   :  { %3613 = vmatprep.subr.bf16.mxu0 %v4301_v53 }
 0xcb2   :  { %3636 = vmatpush3.bf16.msra.mxu1 %v5438_v43  ;;  %v4307_v43 = vld [vmem:[#allocation6 + $0x50] sm:$0xff]  }
 0xcb3   :  { %3614 = vmatpush3.bf16.msra.mxu0 %v4302_v54  ;;  %3637 = vmatprep.subr.bf16.mxu1 %v5442_v6  ;;  %v4308_v6 = vld [vmem:[#allocation6 + $0x10] sm:$0xff]  }
 0xcb4   :  { %3615 = vmatprep.subr.bf16.mxu0 %v4303_v39 }
 0xcb6   :  { %3638 = vmatpush3.bf16.msra.mxu1 %v5450_v60  ;;  %v4309_v60 = vld [vmem:[#allocation6 + $0x48] sm:$0xff]  }
 0xcb7   :  { %3616 = vmatpush3.bf16.msra.mxu0 %v4304_v42  ;;  %3639 = vmatprep.subr.bf16.mxu1 %v5454_v29  ;;  %v4310_v29 = vld [vmem:[#allocation6 + $0x8] sm:$0xff]  }
 0xcb8   :  { %3617 = vmatprep.subr.bf16.mxu0 %v4305_v17 }
 0xcba   :  { %3640 = vmatpush3.bf16.msra.mxu1 %v5459_v26  ;;  %v4311_v26 = vld [vmem:[#allocation6 + $0x40] sm:$0xff]  }
 0xcbb   :  { %3618 = vmatpush3.bf16.msra.mxu0 %v4306_v25  ;;  %3641 = vmatprep.subr.bf16.mxu1 %v5463_v30  ;;  %v4312_v30 = vld [vmem:[#allocation6] sm:$0xff]  }
 0xcbc   :  { %3619 = vmatprep.subr.bf16.mxu0 %v4307_v43 }
 0xcbe   :  { %3642 = vmatpush3.bf16.msra.mxu1 %v5467_v63 }
 0xcbf   :  { %3620 = vmatpush3.bf16.msra.mxu0 %v4308_v6  ;;  %3643 = vmatprep.subr.bf16.mxu1 %v5471_v46 }
 0xcc0   :  { %3621 = vmatprep.subr.bf16.mxu0 %v4309_v60 }
 0xcc2   :  { %3644 = vmatpush3.bf16.msra.mxu1 %v5477_v33  ;;  %v4313_v33 = vld [vmem:[%s5832_s5] ss:$0 sm:$0xff] }
 0xcc3   :  { %3622 = vmatpush3.bf16.msra.mxu0 %v4310_v29  ;;  %3645 = vmatprep.subr.bf16.mxu1 %v5889_v10 }
 0xcc4   :  { %3623 = vmatprep.subr.bf16.mxu0 %v4311_v26 }
 0xcc6   :  { %3646 = vmatpush3.bf16.msra.mxu1 %v5489_v48 }
 0xcc7   :  { %3624 = vmatpush3.bf16.msra.mxu0 %v4312_v30  ;;  %3903 = vmatprep.subr.mxu1 %v2782_v23 }
 0xcc8   :  { %3653 = vmatprep.subr.bf16.mxu0 %v5543_v9 }
 0xd48   :  { %v3559_v63 = vpop.f32.mrf.mxu1 }
 0xd4a   :  { %v3560_v61 = vpop.f32.mrf.mxu1 }
 0xd4b   :  { %v3561_v4 = vadd.f32 %v3560_v61, %v3559_v63 }
 0xd4c   :  { %v3562_v46 = vpop.f32.mrf.mxu1 }
 0xd4d   :  { %v2426_v28 = vadd.f32 %v4313_v33, %v3561_v4 }
 0xd4e   :  { %v3563_v21 = vpop.f32.mrf.mxu1 }
 0xd4f   :  { %v3038_v31 = vmul.f32 -1.442695, %v2426_v28 }
 0xd51   :  { %4177 = vpow2.f32 %v3038_v31 }
 0xd5e   :  { %v4178_v10 = vpop.eup %4177 }
 0xd5f   :  { %v2434_v14 = vadd.f32 1.0, %v4178_v10 }
 0xd61   :  { %4179 = vrcp.f32 %v2434_v14 }
 0xd69   :  { %v3603_v48 = vpop.f32.mrf.mxu1 }
 0xd6a   :  { %v3581_v56 = vpop.f32.mrf.mxu0 }
 0xd6b   :  { %v3604_v5 = vpop.f32.mrf.mxu1 }
 0xd6c   :  { %v3605_v3 = vadd.f32 %v3604_v5, %v3603_v48  ;;  %v3582_v9 = vpop.f32.mrf.mxu0  ;;  %v2781_v5 = vld [vmem:[#allocation9 + $0x70] sm:$0xff] }
 0xd6d   :  { %v3583_v40 = vadd.f32 %v3582_v9, %v3581_v56  ;;  %v3606_v19 = vpop.f32.mrf.mxu1  ;;  %v5892_v9 = vld [vmem:[#allocation22_spill] sm:$0xff] }
 0xd6e   :  { %v4180_v8 = vpop.eup %4179  ;;  %v2553_v22 = vadd.f32 %v5553_v36, %v3605_v3  ;;  %v3584_v7 = vpop.f32.mrf.mxu0  ;;  %v2780_v3 = vld [vmem:[#allocation9 + $0x68] sm:$0xff]  ;;  %v4315_v19 = vld [vmem:[#allocation7 + $0x38] sm:$0xff]  }
 0xd6f   :  { %v2492_v58 = vadd.f32 %v5730_v49, %v3583_v40  ;;  %v3607_v41 = vpop.f32.mrf.mxu1  ;;  %v2437_v20 = vmul.f32 2.0, %v4180_v8  ;;  %v2779_v40 = vld [vmem:[#allocation9 + $0x60] sm:$0xff]  ;;  %v4317_v7 = vld [vmem:[#allocation7 + $0x30] sm:$0xff]  }
 0xd70   :  { %v3042_v2 = vmul.f32 -1.442695, %v2553_v22  ;;  %v3585_v45 = vpop.f32.mrf.mxu0  ;;  %v2777_v22 = vld [vmem:[#allocation9 + $0x50] sm:$0xff]  ;;  %v2776_v41 = vld [vmem:[#allocation9 + $0x48] sm:$0xff] }
 0xd71   :  { %v3040_v16 = vmul.f32 -1.442695, %v2492_v58  ;;  %v3039_v24 = vadd.f32 -1.0, %v2437_v20  ;;  %v4318_v58 = vld [vmem:[#allocation7 + $0x68] sm:$0xff]   ;;  %v2775_v20 = vld [vmem:[#allocation9 + $0x40] sm:$0xff] }
 0xd72   :  { %4181 = vpow2.f32 %v3042_v2  ;;  %v4319_v2 = vld [vmem:[#allocation7 + $0x28] sm:$0xff]   ;;  %v4320_v45 = vld [vmem:[#allocation7 + $0x60] sm:$0xff]  }
 0xd73   :  { %4183 = vpow2.f32 %v3040_v16  ;;  %v2439_v12 = vsel %vm4684_vm6, %v3039_v24, %v4180_v8  ;;  %v2778_v8 = vld [vmem:[#allocation9 + $0x58] sm:$0xff]  ;;  %v2773_v24 = vld [vmem:[#allocation9 + $0x30] sm:$0xff] }
 0xd74   :  { %2442 = vrot.lane.b32.xlu1 %v2439_v12, %s4438_s24  ;;  %2440 = vrot.lane.b32.xlu0 %v2439_v12, %s4451_s4  ;;  %v2774_v16 = vld [vmem:[#allocation9 + $0x38] sm:$0xff] }
 0xd7f   :  { %v4182_v52 = vpop.eup %4181 }
 0xd80   :  { %v4184_v11 = vpop.eup %4183  ;;  %v2561_v34 = vadd.f32 1.0, %v4182_v52  ;;  %v4322_v52 = vld [vmem:[#allocation7 + $0x58] sm:$0xff]  }
 0xd81   :  { %v2500_v27 = vadd.f32 1.0, %v4184_v11  ;;  %v2772_v11 = vld [vmem:[#allocation9 + $0x28] sm:$0xff] }
 0xd82   :  { %4185 = vrcp.f32 %v2561_v34  ;;  %v2771_v34 = vld [vmem:[#allocation9 + $0x20] sm:$0xff] }
 0xd83   :  { %4187 = vrcp.f32 %v2500_v27  ;;  %v4323_v27 = vld [vmem:[#allocation7 + $0x18] sm:$0xff]  }
 0xd8f   :  { %v4186_v47 = vpop.eup %4185 }
 0xd90   :  { %v4188_v35 = vpop.eup %4187  ;;  %v2564_v55 = vmul.f32 2.0, %v4186_v47 }
 0xd91   :  { %v2503_v18 = vmul.f32 2.0, %v4188_v35 }
 0xd92   :  { %v3043_v32 = vadd.f32 -1.0, %v2564_v55  ;;  %v2769_v55 = vld [vmem:[#allocation9 + $0x10] sm:$0xff] }
 0xd93   :  { %v3041_v38 = vadd.f32 -1.0, %v2503_v18  ;;  %v4325_v18 = vld [vmem:[#allocation7 + $0x10] sm:$0xff]  }
 0xd94   :  { %v2566_v51 = vsel %vm4684_vm6, %v3043_v32, %v4186_v47  ;;  %v4324_v47 = vld [vmem:[#allocation7 + $0x50] sm:$0xff]   ;;  %v4326_v32 = vld [vmem:[#allocation7 + $0x48] sm:$0xff]  }
 0xd95   :  { %2569 = vrot.lane.b32.xlu1 %v2566_v51, %s4438_s24  ;;  %2567 = vrot.lane.b32.xlu0 %v2566_v51, %s4451_s4  ;;  %v2505_v13 = vsel %vm4684_vm6, %v3041_v38, %v4188_v35  ;;  %v2770_v35 = vld [vmem:[#allocation9 + $0x18] sm:$0xff]  ;;  %v2767_v38 = vld [vmem:[#allocation9] sm:$0xff] }
 0xd99   :  { %2508 = vrot.lane.b32.xlu1 %v2505_v13, %s4438_s24  ;;  %2506 = vrot.lane.b32.xlu0 %v2505_v13, %s4451_s4 }
 0xd9d   :  { %2571 = vrot.lane.b32.xlu1 %v2566_v51, %s4450_s16  ;;  %2444 = vrot.lane.b32.xlu0 %v2439_v12, %s4450_s16 }
 0xda1   :  { %2510 = vrot.lane.b32.xlu0 %v2505_v13, %s4450_s16 }
 0xde6   :  { %v2441_v44 = vpop.permute.xlu0 %2440  ;;  %v2443_v53 = vpop.permute.xlu1 %2442 }
 0xde7   :  { %v2446_v54 = vmul.f32 %v2441_v44, %v5674_v37  ;;  %v2447_v39 = vmul.f32 %v2443_v53, %v2439_v12  ;;  %v4321_v12 = vld [vmem:[#allocation7 + $0x20] sm:$0xff]   ;;  %v5893_v53 = vld [vmem:[#allocation18_spill] sm:$0xff] }
 0xde8   :  { %v4329_v44 = vld [vmem:[#allocation7] sm:$0xff]  }
 0xde9   :  { %v2448_v42 = vadd.f32 %v2447_v39, %v2446_v54 }
 0xdeb   :  { %4189 = vtanh.f32 %v2448_v42 }
 0xdf8   :  { %v4190_v4 = vpop.eup %4189 }
 0xe07   :  { %v2568_v17 = vpop.permute.xlu0 %2567  ;;  %v2570_v25 = vpop.permute.xlu1 %2569 }
 0xe08   :  { %v2573_v43 = vmul.f32 %v2568_v17, %v5683_v50  ;;  %v2574_v6 = vmul.f32 %v2570_v25, %v2566_v51  ;;  %v2768_v51 = vld [vmem:[#allocation9 + $0x8] sm:$0xff] }
 0xe0a   :  { %v5750_v60 = vadd.f32 %v2574_v6, %v2573_v43 }
 0xe0b   :  { %v2507_v29 = vpop.permute.xlu0 %2506  ;;  %v2509_v26 = vpop.permute.xlu1 %2508 }
 0xe0c   :  { %4191 = vtanh.f32 %v5750_v60  ;;  %v2512_v30 = vmul.f32 %v2507_v29, %v5689_v57  ;;  %v2513_v63 = vmul.f32 %v2509_v26, %v2505_v13  ;;  %v4327_v13 = vld [vmem:[#allocation7 + $0x8] sm:$0xff]  }
 0xe0e   :  { %v5754_v61 = vadd.f32 %v2513_v63, %v2512_v30 }
 0xe0f   :  { %v2445_v37 = vpop.permute.xlu0 %2444  ;;  %v2572_v50 = vpop.permute.xlu1 %2571 }
 0xe10   :  { %4193 = vtanh.f32 %v5754_v61  ;;  %v2450_v33 = vmul.f32 %v4190_v4, %v2445_v37 }
 0xe12   :  { %v2581_v10 = vrot.slane %v2450_v33, %v4861_v15  ;;  %v4316_v15 = vld [vmem:[#allocation7 + $0x70] sm:$0xff]  }
 0xe13   :  { %v2511_v14 = vpop.permute.xlu0 %2510 }
 0xe14   :  { %v2582_v56 = vpack.c.bf16 %v2581_v10, %v2581_v10 }
 0xe19   :  { %v4192_v46 = vpop.eup %4191 }
 0xe1a   :  { %v5757_v28 = vmul.f32 %v4192_v46, %v2572_v50  ;;  %v5773_v50 = vld [vmem:[%s5838_s11] ss:$0 sm:$0xff] }
 0xe1c   :  { %v2644_v21 = vpack.c.bf16 %v5757_v28, %v5757_v28 }
 0xe1d   :  { %v4194_v31 = vpop.eup %4193 }
 0xe1e   :  { %v2516_v57 = vmul.f32 %v4194_v31, %v2511_v14  ;;  %2677 = vmatprep.mubr.bf16.mxu1 %v2644_v21 }
 0xe20   :  { %v2583_v48 = vpack.c.bf16 %v2516_v57, %v2516_v57 }
 0xe22   :  { %2616 = vmatprep.mubr.bf16.mxu0 %v2583_v48  ;;  %2678 = vmatmul.mubr.bf16.vlgmr.msra.gmra.mxu1 %v2583_v48 }
 0xe23   :  { %3904 = vmatpush3.msra.mxu1 %v2782_v23  ;;  %2617 = vmatmul.mubr.bf16.vlgmr.msra.gmra.mxu0 %v2582_v56  ;;  %v4328_v23 = vld [vmem:[#allocation7 + $0x40] sm:$0xff]  }
 0xe24   :  { %3905 = vmatprep.subr.mxu1 %v2781_v5  ;;  %3935 = vmatprep.mubr.f32.mxu1 %v5892_v9 }
 0xe25   :  { %3906 = vmatpush3.msra.mxu1 %v2781_v5  ;;  %3654 = vmatpush3.bf16.msra.mxu0 %v4315_v19 }
 0xe26   :  { %3907 = vmatprep.subr.mxu1 %v2780_v3  ;;  %3655 = vmatprep.subr.bf16.mxu0 %v4316_v15 }
 0xe27   :  { %3908 = vmatpush3.msra.mxu1 %v2780_v3 }
 0xe28   :  { %3909 = vmatprep.subr.mxu1 %v2779_v40 }
 0xe29   :  { %3910 = vmatpush3.msra.mxu1 %v2779_v40  ;;  %3656 = vmatpush3.bf16.msra.mxu0 %v4317_v7 }
 0xe2a   :  { %3911 = vmatprep.subr.mxu1 %v2778_v8  ;;  %3657 = vmatprep.subr.bf16.mxu0 %v4318_v58 }
 0xe2b   :  { %3912 = vmatpush3.msra.mxu1 %v2778_v8 }
 0xe2c   :  { %3913 = vmatprep.subr.mxu1 %v2777_v22 }
 0xe2d   :  { %3914 = vmatpush3.msra.mxu1 %v2777_v22  ;;  %3658 = vmatpush3.bf16.msra.mxu0 %v4319_v2 }
 0xe2e   :  { %3915 = vmatprep.subr.mxu1 %v2776_v41  ;;  %3659 = vmatprep.subr.bf16.mxu0 %v4320_v45 }
 0xe2f   :  { %3916 = vmatpush3.msra.mxu1 %v2776_v41 }
 0xe30   :  { %3917 = vmatprep.subr.mxu1 %v2775_v20 }
 0xe31   :  { %3918 = vmatpush3.msra.mxu1 %v2775_v20  ;;  %3660 = vmatpush3.bf16.msra.mxu0 %v4321_v12 }
 0xe32   :  { %3919 = vmatprep.subr.mxu1 %v2774_v16  ;;  %3661 = vmatprep.subr.bf16.mxu0 %v4322_v52 }
 0xe33   :  { %3920 = vmatpush3.msra.mxu1 %v2774_v16 }
 0xe34   :  { %3921 = vmatprep.subr.mxu1 %v2773_v24 }
 0xe35   :  { %3922 = vmatpush3.msra.mxu1 %v2773_v24  ;;  %3662 = vmatpush3.bf16.msra.mxu0 %v4323_v27 }
 0xe36   :  { %3923 = vmatprep.subr.mxu1 %v2772_v11  ;;  %3663 = vmatprep.subr.bf16.mxu0 %v4324_v47 }
 0xe37   :  { %3924 = vmatpush3.msra.mxu1 %v2772_v11 }
 0xe38   :  { %3925 = vmatprep.subr.mxu1 %v2771_v34 }
 0xe39   :  { %3926 = vmatpush3.msra.mxu1 %v2771_v34  ;;  %3664 = vmatpush3.bf16.msra.mxu0 %v4325_v18 }
 0xe3a   :  { %3927 = vmatprep.subr.mxu1 %v2770_v35  ;;  %3665 = vmatprep.subr.bf16.mxu0 %v4326_v32 }
 0xe3b   :  { %3928 = vmatpush3.msra.mxu1 %v2770_v35 }
 0xe3c   :  { %3929 = vmatprep.subr.mxu1 %v2769_v55 }
 0xe3d   :  { %3930 = vmatpush3.msra.mxu1 %v2769_v55  ;;  %3666 = vmatpush3.bf16.msra.mxu0 %v4327_v13 }
 0xe3e   :  { %3931 = vmatprep.subr.mxu1 %v2768_v51  ;;  %3667 = vmatprep.subr.bf16.mxu0 %v4328_v23 }
 0xe3f   :  { %3932 = vmatpush3.msra.mxu1 %v2768_v51 }
 0xe40   :  { %3933 = vmatprep.subr.mxu1 %v2767_v38 }
 0xe41   :  { %3934 = vmatpush3.msra.mxu1 %v2767_v38  ;;  %3668 = vmatpush3.bf16.msra.mxu0 %v4329_v44 }
 0xe42   :  { %3936 = vmatmul.mubr.f32.vlgmr.msra.gmra.mxu1 %v5893_v53 }
 0xe43   :  { %3938 = vmatprep.mubr.f32.mxu1 %v5475_v59 }
 0xe46   :  { %3939 = vmatmul.mubr.f32.gmra.mxu1 %v5617_v0 }
 0xe47   :  { %3941 = vmatprep.mubr.f32.mxu1 %v5698_v1 }
 0xe4a   :  { %3942 = vmatmul.mubr.f32.gmra.mxu1 %v5757_v28 }
 0xee2   :  { %v3647_v54 = vpop.f32.mrf.mxu1 }
 0xee3   :  { %v3625_v39 = vpop.f32.mrf.mxu0 }
 0xee4   :  { %v3648_v42 = vpop.f32.mrf.mxu1 }
 0xee5   :  { %v3649_v17 = vadd.f32 %v3648_v42, %v3647_v54  ;;  %v3626_v25 = vpop.f32.mrf.mxu0 }
 0xee6   :  { %v3627_v43 = vadd.f32 %v3626_v25, %v3625_v39  ;;  %v3650_v6 = vpop.f32.mrf.mxu1 }
 0xee7   :  { %v2680_v29 = vadd.f32 %v5553_v36, %v3649_v17  ;;  %v3628_v26 = vpop.f32.mrf.mxu0 }
 0xee8   :  { %v2619_v30 = vadd.f32 %v5730_v49, %v3627_v43  ;;  %v3651_v63 = vpop.f32.mrf.mxu1 }
 0xee9   :  { %v3046_v59 = vmul.f32 -1.442695, %v2680_v29  ;;  %v3629_v37 = vpop.f32.mrf.mxu0 }
 0xeea   :  { %v3044_v0 = vmul.f32 -1.442695, %v2619_v30 }
 0xeeb   :  { %4195 = vpow2.f32 %v3046_v59 }
 0xeec   :  { %4197 = vpow2.f32 %v3044_v0 }
 0xef8   :  { %v4196_v1 = vpop.eup %4195 }
 0xef9   :  { %v4198_v4 = vpop.eup %4197  ;;  %v2688_v46 = vadd.f32 1.0, %v4196_v1 }
 0xefa   :  { %v2627_v33 = vadd.f32 1.0, %v4198_v4 }
 0xefb   :  { %4199 = vrcp.f32 %v2688_v46 }
 0xefc   :  { %4201 = vrcp.f32 %v2627_v33 }
 0xf02   :  { %v3937_v36 = vpop.f32.mrf.mxu1 }
 0xf03   :  { %v2862_v49 = vadd.f32 %v3937_v36, %v5773_v50 }
 0xf04   :  { %v2856_v28 = vpop.f32.mrf.mxu1 }
 0xf05   :  { %2896 = vst [vmem:[%s5839_s12 + $0x8] sm:$0xff] %v2862_v49  ;;  %v2857_v21 = vadd.f32 %v5773_v50, %v2856_v28 }
 0xf06   :  { %v3940_v31 = vpop.f32.mrf.mxu1 }
 0xf07   :  { %2895 = vst [vmem:[%s5839_s12] sm:$0xff] %v2857_v21  ;;  %v2872_v10 = vadd.f32 %v3940_v31, %v5773_v50 }
 0xf08   :  { %v4200_v14 = vpop.eup %4199  ;;  %v2866_v57 = vpop.f32.mrf.mxu1 }
 0xf09   :  { %v4202_v48 = vpop.eup %4201  ;;  %2898 = vst [vmem:[%s5839_s12 + $0x18] sm:$0xff] %v2872_v10  ;;  %v2867_v56 = vadd.f32 %v5773_v50, %v2866_v57  ;;  %v2691_v5 = vmul.f32 2.0, %v4200_v14 }
 0xf0a   :  { %v3943_v3 = vpop.f32.mrf.mxu1  ;;  %v2630_v9 = vmul.f32 2.0, %v4202_v48 }
 0xf0b   :  { %2897 = vst [vmem:[%s5839_s12 + $0x10] sm:$0xff] %v2867_v56  ;;  %v2882_v40 = vadd.f32 %v3943_v3, %v5773_v50  ;;  %v3047_v19 = vadd.f32 -1.0, %v2691_v5 }
 0xf0c   :  { %v2876_v15 = vpop.f32.mrf.mxu1  ;;  %v3045_v7 = vadd.f32 -1.0, %v2630_v9 }
 0xf0d   :  { %2900 = vst [vmem:[%s5839_s12 + $0x28] sm:$0xff] %v2882_v40  ;;  %v2877_v8 = vadd.f32 %v5773_v50, %v2876_v15  ;;  %v2693_v22 = vsel %vm4684_vm6, %v3047_v19, %v4200_v14 }
 0xf0e   :  { %2696 = vrot.lane.b32.xlu0 %v2693_v22, %s4438_s24  ;;  %2694 = vrot.lane.b32.xlu1 %v2693_v22, %s4451_s4  ;;  %v2632_v58 = vsel %vm4684_vm6, %v3045_v7, %v4202_v48 }
 0xf0f   :  { %2899 = vst [vmem:[%s5839_s12 + $0x20] sm:$0xff] %v2877_v8 }
 0xf12   :  { %2635 = vrot.lane.b32.xlu0 %v2632_v58, %s4438_s24  ;;  %2633 = vrot.lane.b32.xlu1 %v2632_v58, %s4451_s4 }
 0xf16   :  { %2637 = vrot.lane.b32.xlu0 %v2632_v58, %s4450_s16  ;;  %2698 = vrot.lane.b32.xlu1 %v2693_v22, %s4450_s16 }
 0xf80   :  { %v2697_v41 = vpop.permute.xlu0 %2696  ;;  %v2695_v20 = vpop.permute.xlu1 %2694 }
 0xf81   :  { %v2701_v2 = vmul.f32 %v2697_v41, %v2693_v22  ;;  %v2700_v45 = vmul.f32 %v2695_v20, %v5750_v60 }
 0xf83   :  { %v2702_v16 = vadd.f32 %v2701_v2, %v2700_v45 }
 0xf84   :  { %v2636_v24 = vpop.permute.xlu0 %2635  ;;  %v2634_v12 = vpop.permute.xlu1 %2633 }
 0xf85   :  { %4203 = vtanh.f32 %v2702_v16  ;;  %v2640_v52 = vmul.f32 %v2636_v24, %v2632_v58  ;;  %v2639_v11 = vmul.f32 %v2634_v12, %v5754_v61  ;;  %v4330_v61 = vld [vmem:[%s5836_s9] ss:$0 sm:$0xff] }
 0xf87   :  { %v2641_v34 = vadd.f32 %v2640_v52, %v2639_v11 }
 0xf88   :  { %v2699_v47 = vpop.permute.xlu1 %2698  ;;  %v2638_v32 = vpop.permute.xlu0 %2637 }
 0xf89   :  { %4205 = vtanh.f32 %v2641_v34 }
 0xf92   :  { %v4204_v27 = vpop.eup %4203 }
 0xf93   :  { %v2704_v35 = vmul.f32 %v4204_v27, %v2699_v47 }
 0xf95   :  { %v2706_v55 = vpack.c.bf16 %v2704_v35, %v2704_v35  ;;  %3944 = vmatprep.mubr.f32.mxu1 %v2704_v35 }
 0xf96   :  { %v4206_v18 = vpop.eup %4205 }
 0xf97   :  { %v2643_v51 = vmul.f32 %v4206_v18, %v2638_v32  ;;  %2739 = vmatprep.mubr.bf16.mxu0 %v2706_v55 }
 0xf99   :  { %v2705_v38 = vpack.c.bf16 %v2643_v51, %v2643_v51 }
 0xf9b   :  { %2740 = vmatmul.mubr.bf16.vlgmr.msra.gmra.mxu0 %v2705_v38 }
0x105b   :  { %v3669_v60 = vpop.f32.mrf.mxu0 }
0x105d   :  { %v3670_v13 = vpop.f32.mrf.mxu0 }
0x105e   :  { %v3671_v23 = vadd.f32 %v3670_v13, %v3669_v60 }
0x105f   :  { %v3672_v44 = vpop.f32.mrf.mxu0 }
0x1060   :  { %v2742_v53 = vadd.f32 %v4330_v61, %v3671_v23 }
0x1061   :  { %v3673_v54 = vpop.f32.mrf.mxu0 }
0x1062   :  { %v3048_v39 = vmul.f32 -1.442695, %v2742_v53 }
0x1064   :  { %4207 = vpow2.f32 %v3048_v39 }
0x1071   :  { %v4208_v42 = vpop.eup %4207 }
0x1072   :  { %v2750_v17 = vadd.f32 1.0, %v4208_v42 }
0x1074   :  { %4209 = vrcp.f32 %v2750_v17 }
0x1081   :  { %v4210_v25 = vpop.eup %4209 }
0x1082   :  { %v2753_v43 = vmul.f32 2.0, %v4210_v25 }
0x1084   :  { %v3049_v6 = vadd.f32 -1.0, %v2753_v43 }
0x1086   :  { %v2755_v29 = vsel %vm4684_vm6, %v3049_v6, %v4210_v25 }
0x1087   :  { %2758 = vrot.lane.b32.xlu0 %v2755_v29, %s4438_s24  ;;  %2756 = vrot.lane.b32.xlu1 %v2755_v29, %s4451_s4 }
0x108b   :  { %2760 = vrot.lane.b32.xlu1 %v2755_v29, %s4450_s16 }
0x10f9   :  { %v2759_v26 = vpop.permute.xlu0 %2758  ;;  %v2757_v30 = vpop.permute.xlu1 %2756 }
0x10fa   :  { %v2763_v63 = vmul.f32 %v2759_v26, %v2755_v29  ;;  %v2762_v59 = vmul.f32 %v2757_v30, %v2702_v16 }
0x10fc   :  { %v2764_v37 = vadd.f32 %v2763_v63, %v2762_v59 }
0x10fd   :  { %v2761_v1 = vpop.permute.xlu1 %2760 }
0x10fe   :  { %4211 = vtanh.f32 %v2764_v37 }
0x110b   :  { %v4212_v0 = vpop.eup %4211 }
0x110c   :  { %v2766_v4 = vmul.f32 %v4212_v0, %v2761_v1 }
0x110e   :  { %3945 = vmatmul.mubr.f32.gmra.mxu1 %v2766_v4 }
0x11ce   :  { %v3946_v46 = vpop.f32.mrf.mxu1 }
0x11cf   :  { %v2892_v62 = vadd.f32 %v3946_v46, %v5773_v50 }
0x11d0   :  { %v2886_v33 = vpop.f32.mrf.mxu1 }
0x11d1   :  { %2902 = vst [vmem:[%s5839_s12 + $0x38] sm:$0xff] %v2892_v62  ;;  %v2887_v36 = vadd.f32 %v5773_v50, %v2886_v33 }
0x11d3   :  { %2901 = vst [vmem:[%s5839_s12 + $0x30] sm:$0xff] %v2887_v36 }
0x11d4   :  { %2907 = vsyncpa [#allocation3], 1 }
0x11d5   :  { %2908 = vsyncpa [#allocation5], 1 }
0x11d6   :  { %2909 = vsyncpa [#allocation8], 1 }

</bundles_post_ra>
